<compile_context>
chip_gen: v5e
topology: v5e:2x2
jax: 0.10.0
libtpu: 0.0.40
codegen_flags: <defaults>
</compile_context>

<pallas_src>
import functools

import jax
import jax.numpy as jnp
from jax import lax
from jax.experimental import pallas as pl
from jax.experimental.pallas import tpu as pltpu


# --------------------------------------------------------------------------
# Pallas kernel: conv as k*k shifted-window matmuls + folded-BN bias + ReLU
# --------------------------------------------------------------------------
def _conv_kernel(x_ref, w_ref, b_ref, o_ref, *, k, stride, cin, wq, l_out, relu):
    # x_ref : (1, s*s*Cin, L_in)  bf16  flattened parity-plane padded image
    # w_ref : (k*k, Cout, Cin)    bf16  per-tap weights (BN scale folded in)
    # b_ref : (Cout, 1)           f32   folded BN bias / conv bias
    # o_ref : (1, Cout, L_out)    bf16  L_out = Ho * Wq  (lane-dense output)
    s = stride
    acc = jnp.zeros(o_ref.shape[1:], jnp.float32)
    for dy in range(k):
        for dx in range(k):
            plane = (dy % s) * s + (dx % s)            # parity plane index
            start = (dy // s) * wq + (dx // s)         # static flat offset
            xs = x_ref[0, pl.ds(plane * cin, cin), pl.ds(start, l_out)]
            acc += jnp.dot(w_ref[dy * k + dx], xs,
                           preferred_element_type=jnp.float32)      # MXU
    y = acc + b_ref[...]                                            # VPU, f32
    if relu:
        y = jnp.maximum(y, 0.0)
    o_ref[0] = y.astype(o_ref.dtype)


# --------------------------------------------------------------------------
# JAX glue: pad + (stride>1) space-to-depth parity split + flatten spatial
# --------------------------------------------------------------------------
def _prep_input(x, k, stride, pad):
    """NCHW -> (N, s*s*C, Hq*Wq + Wq) flattened parity planes (same dtype)."""
    N, C, H, W = x.shape
    s = stride
    xp = jnp.pad(x, ((0, 0), (0, 0), (pad, pad), (pad, pad)))
    Hp, Wp = H + 2 * pad, W + 2 * pad
    Hq, Wq = -(-Hp // s), -(-Wp // s)
    xp = jnp.pad(xp, ((0, 0), (0, 0), (0, Hq * s - Hp), (0, Wq * s - Wp)))
    if s > 1:
        xq = xp.reshape(N, C, Hq, s, Wq, s)
        xq = xq.transpose(0, 3, 5, 1, 2, 4).reshape(N, s * s * C, Hq, Wq)
    else:
        xq = xp
    xf = xq.reshape(N, s * s * C, Hq * Wq)
    xf = jnp.pad(xf, ((0, 0), (0, 0), (0, Wq)))   # tail: tap windows stay in-bounds
    return xf, Hq, Wq


def conv_bn_relu_pallas(x, w_hwio, bias, scale=None, *, k, stride, pad, relu):
    """One fused conv(+BN)+ReLU layer.  x: (N,Cin,H,W) bf16 -> (N,Cout,Ho,Wo) bf16."""
    N, Cin, H, W = x.shape
    Cout = w_hwio.shape[-1]
    s = stride
    Ho = (H + 2 * pad - k) // s + 1
    Wo = (W + 2 * pad - k) // s + 1

    xf, Hq, Wq = _prep_input(x, k, s, pad)
    L_in = xf.shape[-1]
    L_out = Ho * Wq

    w = w_hwio if scale is None else w_hwio * scale             # fold BN scale (f32)
    wk = w.reshape(k * k, Cin, Cout).transpose(0, 2, 1).astype(jnp.bfloat16)
    b2 = bias.reshape(Cout, 1).astype(jnp.float32)

    out = pl.pallas_call(
        functools.partial(_conv_kernel, k=k, stride=s, cin=Cin,
                          wq=Wq, l_out=L_out, relu=relu),
        out_shape=jax.ShapeDtypeStruct((N, Cout, L_out), jnp.bfloat16),
        grid=(N,),
        in_specs=[
            pl.BlockSpec((1, s * s * Cin, L_in), lambda n: (n, 0, 0)),
            pl.BlockSpec((k * k, Cout, Cin), lambda n: (0, 0, 0)),
            pl.BlockSpec((Cout, 1), lambda n: (0, 0)),
        ],
        out_specs=pl.BlockSpec((1, Cout, L_out), lambda n: (n, 0, 0)),
        compiler_params=pltpu.CompilerParams(
            dimension_semantics=("parallel",)),
    )(xf, wk, b2)

    # (N, Cout, Ho*Wq) -> (N, Cout, Ho, Wq), drop the Wq-Wo junk columns.
    return out.reshape(N, Cout, Ho, Wq)[:, :, :, :Wo]


# --------------------------------------------------------------------------
# Parameter construction (deterministic, synthetic)
# --------------------------------------------------------------------------
_LAYER_CFG = [
    # name,     cin, cout, k, stride, pad
    ("conv0",     3,    8, 3, 1, 1),
    ("conv1",     8,    8, 3, 1, 1),
    ("conv2",     8,   16, 5, 2, 2),
    ("conv3",    16,   16, 3, 1, 1),
    ("conv4",    16,   16, 3, 1, 1),
    ("conv5",    16,   32, 5, 2, 2),
    ("conv6",    32,   32, 3, 1, 1),
    ("feature",  32,   32, 3, 1, 1),   # plain conv with bias, no BN/ReLU
]
_BN_EPS = 1e-5


def init_params(key):
    params = {}
    for name, cin, cout, k, _, _ in _LAYER_CFG:
        key, kw, kg, kb, km, kv, kcb = jax.random.split(key, 7)
        fan_in = cin * k * k
        w = jax.random.normal(kw, (k, k, cin, cout), jnp.float32) / jnp.sqrt(fan_in)
        p = {"w": w}
        if name == "feature":
            p["conv_bias"] = 0.1 * jax.random.normal(kcb, (cout,), jnp.float32)
        else:
            gamma = 0.5 + jax.random.uniform(kg, (cout,), jnp.float32)
            beta = 0.1 * jax.random.normal(kb, (cout,), jnp.float32)
            mean = 0.1 * jax.random.normal(km, (cout,), jnp.float32)
            var = 0.5 + jax.random.uniform(kv, (cout,), jnp.float32)
            scale = gamma / jnp.sqrt(var + _BN_EPS)
            p["scale"] = scale
            p["bias"] = beta - mean * scale
        params[name] = p
    return params


# --------------------------------------------------------------------------
# FeatureNet forward (NCHW in / NCHW out, like the PyTorch module)
# --------------------------------------------------------------------------
def feature_net_forward(params, x_nchw):
    x = x_nchw.astype(jnp.bfloat16)
    for name, _, _, k, stride, pad in _LAYER_CFG:
        p = params[name]
        if name == "feature":
            x = conv_bn_relu_pallas(x, p["w"], p["conv_bias"], None,
                                    k=k, stride=stride, pad=pad, relu=False)
        else:
            x = conv_bn_relu_pallas(x, p["w"], p["bias"], p["scale"],
                                    k=k, stride=stride, pad=pad, relu=True)
    return x.astype(jnp.float32)


# Pure-JAX reference with the same bf16-operand / f32-accumulate policy.
def feature_net_reference(params, x_nchw):
    x = x_nchw.astype(jnp.bfloat16)
    for name, _, cout, k, stride, pad in _LAYER_CFG:
        p = params[name]
        if name == "feature":
            w, b = p["w"], p["conv_bias"]
        else:
            w, b = p["w"] * p["scale"], p["bias"]
        y = lax.conv_general_dilated(
            x, w.astype(jnp.bfloat16),
            window_strides=(stride, stride),
            padding=[(pad, pad), (pad, pad)],
            dimension_numbers=("NCHW", "HWIO", "NCHW"),
            preferred_element_type=jnp.float32)
        y = y + b.reshape(1, cout, 1, 1)
        if name != "feature":
            y = jnp.maximum(y, 0.0)
        x = y.astype(jnp.bfloat16)
    return x.astype(jnp.float32)


if __name__ == "__main__":
    key = jax.random.PRNGKey(0)
    kp, kx = jax.random.split(key)
    params = init_params(kp)

    # Small input consistent with the module: 3-channel NCHW image.
    x = jax.random.normal(kx, (2, 3, 16, 16), jnp.float32)

    out = jax.block_until_ready(jax.jit(feature_net_forward)(params, x))
    assert out.shape == (2, 32, 4, 4), out.shape

    ref = jax.block_until_ready(jax.jit(feature_net_reference)(params, x))
    err = float(jnp.max(jnp.abs(out - ref)))
    assert jnp.allclose(out, ref, atol=5e-2, rtol=5e-2), err

    print("KERNEL_OK")
</pallas_src>

<mosaic_0001>
module attributes {stable_mosaic.version = 11 : i64} {
  func.func @_conv_kernel(%arg0: i32, %arg1: memref<1x3x342xbf16, #tpu.memory_space<vmem>>, %arg2: memref<9x8x3xbf16, #tpu.memory_space<vmem>>, %arg3: memref<8x1xf32, #tpu.memory_space<vmem>>, %arg4: memref<1x8x288xbf16, #tpu.memory_space<vmem>>) attributes {dimension_semantics = [#tpu.dimension_semantics<parallel>], iteration_bounds = array<i64: 2>, scalar_prefetch = 0 : i64, scratch_operands = 0 : i64, tpu.core_type = #tpu.core_type<tc>, window_params = [{transform_indices = @transform_0, window_bounds = array<i64: 1, 3, 342>}, {pipeline_mode = #tpu.pipeline_mode<synchronous>, transform_indices = @transform_1, window_bounds = array<i64: 9, 8, 3>}, {pipeline_mode = #tpu.pipeline_mode<synchronous>, transform_indices = @transform_2, window_bounds = array<i64: 8, 1>}, {transform_indices = @transform_3, window_bounds = array<i64: 1, 8, 288>}]} {
    %cst = arith.constant 0.000000e+00 : f32
    %0 = vector.broadcast %cst : f32 to vector<8x288xf32>
    %c0 = arith.constant 0 : index
    %c0_0 = arith.constant 0 : index
    %c0_1 = arith.constant 0 : index
    %1 = vector.load %arg1[%c0, %c0_0, %c0_1] : memref<1x3x342xbf16, #tpu.memory_space<vmem>>, vector<1x3x288xbf16>
    %2 = vector.shape_cast %1 : vector<1x3x288xbf16> to vector<3x288xbf16>
    %c0_2 = arith.constant 0 : index
    %c0_3 = arith.constant 0 : index
    %c0_4 = arith.constant 0 : index
    %3 = vector.load %arg2[%c0_2, %c0_3, %c0_4] : memref<9x8x3xbf16, #tpu.memory_space<vmem>>, vector<1x8x3xbf16>
    %4 = vector.shape_cast %3 : vector<1x8x3xbf16> to vector<8x3xbf16>
    %cst_5 = arith.constant dense<0.000000e+00> : vector<8x288xf32>
    %5 = tpu.matmul %4, %2, %cst_5 {dimension_numbers = #tpu.dot_dimension_numbers<[1], [0], [0], [1], [0, 0, 1, 1], [], []>} : vector<8x3xbf16>, vector<3x288xbf16>, vector<8x288xf32> -> vector<8x288xf32>
    %6 = arith.addf %0, %5 : vector<8x288xf32>
    %c0_6 = arith.constant 0 : index
    %c0_7 = arith.constant 0 : index
    %c1 = arith.constant 1 : index
    %7 = vector.load %arg1[%c0_6, %c0_7, %c1] : memref<1x3x342xbf16, #tpu.memory_space<vmem>>, vector<1x3x288xbf16>
    %8 = vector.shape_cast %7 : vector<1x3x288xbf16> to vector<3x288xbf16>
    %c1_8 = arith.constant 1 : index
    %c0_9 = arith.constant 0 : index
    %c0_10 = arith.constant 0 : index
    %9 = vector.load %arg2[%c1_8, %c0_9, %c0_10] : memref<9x8x3xbf16, #tpu.memory_space<vmem>>, vector<1x8x3xbf16>
    %10 = vector.shape_cast %9 : vector<1x8x3xbf16> to vector<8x3xbf16>
    %cst_11 = arith.constant dense<0.000000e+00> : vector<8x288xf32>
    %11 = tpu.matmul %10, %8, %cst_11 {dimension_numbers = #tpu.dot_dimension_numbers<[1], [0], [0], [1], [0, 0, 1, 1], [], []>} : vector<8x3xbf16>, vector<3x288xbf16>, vector<8x288xf32> -> vector<8x288xf32>
    %12 = arith.addf %6, %11 : vector<8x288xf32>
    %c0_12 = arith.constant 0 : index
    %c0_13 = arith.constant 0 : index
    %c2 = arith.constant 2 : index
    %13 = vector.load %arg1[%c0_12, %c0_13, %c2] : memref<1x3x342xbf16, #tpu.memory_space<vmem>>, vector<1x3x288xbf16>
    %14 = vector.shape_cast %13 : vector<1x3x288xbf16> to vector<3x288xbf16>
    %c2_14 = arith.constant 2 : index
    %c0_15 = arith.constant 0 : index
    %c0_16 = arith.constant 0 : index
    %15 = vector.load %arg2[%c2_14, %c0_15, %c0_16] : memref<9x8x3xbf16, #tpu.memory_space<vmem>>, vector<1x8x3xbf16>
    %16 = vector.shape_cast %15 : vector<1x8x3xbf16> to vector<8x3xbf16>
    %cst_17 = arith.constant dense<0.000000e+00> : vector<8x288xf32>
    %17 = tpu.matmul %16, %14, %cst_17 {dimension_numbers = #tpu.dot_dimension_numbers<[1], [0], [0], [1], [0, 0, 1, 1], [], []>} : vector<8x3xbf16>, vector<3x288xbf16>, vector<8x288xf32> -> vector<8x288xf32>
    %18 = arith.addf %12, %17 : vector<8x288xf32>
    %c0_18 = arith.constant 0 : index
    %c0_19 = arith.constant 0 : index
    %c18 = arith.constant 18 : index
    %19 = vector.load %arg1[%c0_18, %c0_19, %c18] : memref<1x3x342xbf16, #tpu.memory_space<vmem>>, vector<1x3x288xbf16>
    %20 = vector.shape_cast %19 : vector<1x3x288xbf16> to vector<3x288xbf16>
    %c3 = arith.constant 3 : index
    %c0_20 = arith.constant 0 : index
    %c0_21 = arith.constant 0 : index
    %21 = vector.load %arg2[%c3, %c0_20, %c0_21] : memref<9x8x3xbf16, #tpu.memory_space<vmem>>, vector<1x8x3xbf16>
    %22 = vector.shape_cast %21 : vector<1x8x3xbf16> to vector<8x3xbf16>
    %cst_22 = arith.constant dense<0.000000e+00> : vector<8x288xf32>
    %23 = tpu.matmul %22, %20, %cst_22 {dimension_numbers = #tpu.dot_dimension_numbers<[1], [0], [0], [1], [0, 0, 1, 1], [], []>} : vector<8x3xbf16>, vector<3x288xbf16>, vector<8x288xf32> -> vector<8x288xf32>
    %24 = arith.addf %18, %23 : vector<8x288xf32>
    %c0_23 = arith.constant 0 : index
    %c0_24 = arith.constant 0 : index
    %c19 = arith.constant 19 : index
    %25 = vector.load %arg1[%c0_23, %c0_24, %c19] : memref<1x3x342xbf16, #tpu.memory_space<vmem>>, vector<1x3x288xbf16>
    %26 = vector.shape_cast %25 : vector<1x3x288xbf16> to vector<3x288xbf16>
    %c4 = arith.constant 4 : index
    %c0_25 = arith.constant 0 : index
    %c0_26 = arith.constant 0 : index
    %27 = vector.load %arg2[%c4, %c0_25, %c0_26] : memref<9x8x3xbf16, #tpu.memory_space<vmem>>, vector<1x8x3xbf16>
    %28 = vector.shape_cast %27 : vector<1x8x3xbf16> to vector<8x3xbf16>
    %cst_27 = arith.constant dense<0.000000e+00> : vector<8x288xf32>
    %29 = tpu.matmul %28, %26, %cst_27 {dimension_numbers = #tpu.dot_dimension_numbers<[1], [0], [0], [1], [0, 0, 1, 1], [], []>} : vector<8x3xbf16>, vector<3x288xbf16>, vector<8x288xf32> -> vector<8x288xf32>
    %30 = arith.addf %24, %29 : vector<8x288xf32>
    %c0_28 = arith.constant 0 : index
    %c0_29 = arith.constant 0 : index
    %c20 = arith.constant 20 : index
    %31 = vector.load %arg1[%c0_28, %c0_29, %c20] : memref<1x3x342xbf16, #tpu.memory_space<vmem>>, vector<1x3x288xbf16>
    %32 = vector.shape_cast %31 : vector<1x3x288xbf16> to vector<3x288xbf16>
    %c5 = arith.constant 5 : index
    %c0_30 = arith.constant 0 : index
    %c0_31 = arith.constant 0 : index
    %33 = vector.load %arg2[%c5, %c0_30, %c0_31] : memref<9x8x3xbf16, #tpu.memory_space<vmem>>, vector<1x8x3xbf16>
    %34 = vector.shape_cast %33 : vector<1x8x3xbf16> to vector<8x3xbf16>
    %cst_32 = arith.constant dense<0.000000e+00> : vector<8x288xf32>
    %35 = tpu.matmul %34, %32, %cst_32 {dimension_numbers = #tpu.dot_dimension_numbers<[1], [0], [0], [1], [0, 0, 1, 1], [], []>} : vector<8x3xbf16>, vector<3x288xbf16>, vector<8x288xf32> -> vector<8x288xf32>
    %36 = arith.addf %30, %35 : vector<8x288xf32>
    %c0_33 = arith.constant 0 : index
    %c0_34 = arith.constant 0 : index
    %c36 = arith.constant 36 : index
    %37 = vector.load %arg1[%c0_33, %c0_34, %c36] : memref<1x3x342xbf16, #tpu.memory_space<vmem>>, vector<1x3x288xbf16>
    %38 = vector.shape_cast %37 : vector<1x3x288xbf16> to vector<3x288xbf16>
    %c6 = arith.constant 6 : index
    %c0_35 = arith.constant 0 : index
    %c0_36 = arith.constant 0 : index
    %39 = vector.load %arg2[%c6, %c0_35, %c0_36] : memref<9x8x3xbf16, #tpu.memory_space<vmem>>, vector<1x8x3xbf16>
    %40 = vector.shape_cast %39 : vector<1x8x3xbf16> to vector<8x3xbf16>
    %cst_37 = arith.constant dense<0.000000e+00> : vector<8x288xf32>
    %41 = tpu.matmul %40, %38, %cst_37 {dimension_numbers = #tpu.dot_dimension_numbers<[1], [0], [0], [1], [0, 0, 1, 1], [], []>} : vector<8x3xbf16>, vector<3x288xbf16>, vector<8x288xf32> -> vector<8x288xf32>
    %42 = arith.addf %36, %41 : vector<8x288xf32>
    %c0_38 = arith.constant 0 : index
    %c0_39 = arith.constant 0 : index
    %c37 = arith.constant 37 : index
    %43 = vector.load %arg1[%c0_38, %c0_39, %c37] : memref<1x3x342xbf16, #tpu.memory_space<vmem>>, vector<1x3x288xbf16>
    %44 = vector.shape_cast %43 : vector<1x3x288xbf16> to vector<3x288xbf16>
    %c7 = arith.constant 7 : index
    %c0_40 = arith.constant 0 : index
    %c0_41 = arith.constant 0 : index
    %45 = vector.load %arg2[%c7, %c0_40, %c0_41] : memref<9x8x3xbf16, #tpu.memory_space<vmem>>, vector<1x8x3xbf16>
    %46 = vector.shape_cast %45 : vector<1x8x3xbf16> to vector<8x3xbf16>
    %cst_42 = arith.constant dense<0.000000e+00> : vector<8x288xf32>
    %47 = tpu.matmul %46, %44, %cst_42 {dimension_numbers = #tpu.dot_dimension_numbers<[1], [0], [0], [1], [0, 0, 1, 1], [], []>} : vector<8x3xbf16>, vector<3x288xbf16>, vector<8x288xf32> -> vector<8x288xf32>
    %48 = arith.addf %42, %47 : vector<8x288xf32>
    %c0_43 = arith.constant 0 : index
    %c0_44 = arith.constant 0 : index
    %c38 = arith.constant 38 : index
    %49 = vector.load %arg1[%c0_43, %c0_44, %c38] : memref<1x3x342xbf16, #tpu.memory_space<vmem>>, vector<1x3x288xbf16>
    %50 = vector.shape_cast %49 : vector<1x3x288xbf16> to vector<3x288xbf16>
    %c8 = arith.constant 8 : index
    %c0_45 = arith.constant 0 : index
    %c0_46 = arith.constant 0 : index
    %51 = vector.load %arg2[%c8, %c0_45, %c0_46] : memref<9x8x3xbf16, #tpu.memory_space<vmem>>, vector<1x8x3xbf16>
    %52 = vector.shape_cast %51 : vector<1x8x3xbf16> to vector<8x3xbf16>
    %cst_47 = arith.constant dense<0.000000e+00> : vector<8x288xf32>
    %53 = tpu.matmul %52, %50, %cst_47 {dimension_numbers = #tpu.dot_dimension_numbers<[1], [0], [0], [1], [0, 0, 1, 1], [], []>} : vector<8x3xbf16>, vector<3x288xbf16>, vector<8x288xf32> -> vector<8x288xf32>
    %54 = arith.addf %48, %53 : vector<8x288xf32>
    %c0_48 = arith.constant 0 : index
    %c0_49 = arith.constant 0 : index
    %55 = vector.load %arg3[%c0_48, %c0_49] : memref<8x1xf32, #tpu.memory_space<vmem>>, vector<8x1xf32>
    %56 = vector.broadcast %55 : vector<8x1xf32> to vector<8x288xf32>
    %57 = arith.addf %54, %56 : vector<8x288xf32>
    %cst_50 = arith.constant 0.000000e+00 : f32
    %58 = vector.broadcast %cst_50 : f32 to vector<8x288xf32>
    %59 = arith.maximumf %57, %58 : vector<8x288xf32>
    %60 = arith.truncf %59 : vector<8x288xf32> to vector<8x288xbf16>
    %c0_51 = arith.constant 0 : index
    %c0_52 = arith.constant 0 : index
    %c0_53 = arith.constant 0 : index
    %61 = vector.load %arg4[%c0_51, %c0_52, %c0_53] : memref<1x8x288xbf16, #tpu.memory_space<vmem>>, vector<1x8x288xbf16>
    %62 = vector.shape_cast %61 : vector<1x8x288xbf16> to vector<8x288xbf16>
    %63 = vector.shape_cast %60 : vector<8x288xbf16> to vector<1x8x288xbf16>
    tpu.vector_store %arg4[%c0_51, %c0_52, %c0_53], %63 {strides = array<i32>} : memref<1x8x288xbf16, #tpu.memory_space<vmem>>, vector<1x8x288xbf16>,
    return
  }
  func.func @transform_0(%arg0: i32) -> (i32, i32, i32) {
    %c0_i32 = arith.constant 0 : i32
    %c0_i32_0 = arith.constant 0 : i32
    %c0_i32_1 = arith.constant 0 : i32
    return %arg0, %c0_i32, %c0_i32_0 : i32, i32, i32
  }
  func.func @transform_1(%arg0: i32) -> (i32, i32, i32) {
    %c0_i32 = arith.constant 0 : i32
    %c0_i32_0 = arith.constant 0 : i32
    %c0_i32_1 = arith.constant 0 : i32
    %c0_i32_2 = arith.constant 0 : i32
    return %c0_i32, %c0_i32_0, %c0_i32_1 : i32, i32, i32
  }
  func.func @transform_2(%arg0: i32) -> (i32, i32) {
    %c0_i32 = arith.constant 0 : i32
    %c0_i32_0 = arith.constant 0 : i32
    %c0_i32_1 = arith.constant 0 : i32
    return %c0_i32, %c0_i32_0 : i32, i32
  }
  func.func @transform_3(%arg0: i32) -> (i32, i32, i32) {
    %c0_i32 = arith.constant 0 : i32
    %c0_i32_0 = arith.constant 0 : i32
    %c0_i32_1 = arith.constant 0 : i32
    return %arg0, %c0_i32, %c0_i32_0 : i32, i32, i32
  }
}

module attributes {stable_mosaic.version = 11 : i64} {
  func.func @_conv_kernel(%arg0: i32, %arg1: memref<1x8x342xbf16, #tpu.memory_space<vmem>>, %arg2: memref<9x8x8xbf16, #tpu.memory_space<vmem>>, %arg3: memref<8x1xf32, #tpu.memory_space<vmem>>, %arg4: memref<1x8x288xbf16, #tpu.memory_space<vmem>>) attributes {dimension_semantics = [#tpu.dimension_semantics<parallel>], iteration_bounds = array<i64: 2>, scalar_prefetch = 0 : i64, scratch_operands = 0 : i64, tpu.core_type = #tpu.core_type<tc>, window_params = [{transform_indices = @transform_0, window_bounds = array<i64: 1, 8, 342>}, {pipeline_mode = #tpu.pipeline_mode<synchronous>, transform_indices = @transform_1, window_bounds = array<i64: 9, 8, 8>}, {pipeline_mode = #tpu.pipeline_mode<synchronous>, transform_indices = @transform_2, window_bounds = array<i64: 8, 1>}, {transform_indices = @transform_3, window_bounds = array<i64: 1, 8, 288>}]} {
    %cst = arith.constant 0.000000e+00 : f32
    %0 = vector.broadcast %cst : f32 to vector<8x288xf32>
    %c0 = arith.constant 0 : index
    %c0_0 = arith.constant 0 : index
    %c0_1 = arith.constant 0 : index
    %1 = vector.load %arg1[%c0, %c0_0, %c0_1] : memref<1x8x342xbf16, #tpu.memory_space<vmem>>, vector<1x8x288xbf16>
    %2 = vector.shape_cast %1 : vector<1x8x288xbf16> to vector<8x288xbf16>
    %c0_2 = arith.constant 0 : index
    %c0_3 = arith.constant 0 : index
    %c0_4 = arith.constant 0 : index
    %3 = vector.load %arg2[%c0_2, %c0_3, %c0_4] : memref<9x8x8xbf16, #tpu.memory_space<vmem>>, vector<1x8x8xbf16>
    %4 = vector.shape_cast %3 : vector<1x8x8xbf16> to vector<8x8xbf16>
    %cst_5 = arith.constant dense<0.000000e+00> : vector<8x288xf32>
    %5 = tpu.matmul %4, %2, %cst_5 {dimension_numbers = #tpu.dot_dimension_numbers<[1], [0], [0], [1], [0, 0, 1, 1], [], []>} : vector<8x8xbf16>, vector<8x288xbf16>, vector<8x288xf32> -> vector<8x288xf32>
    %6 = arith.addf %0, %5 : vector<8x288xf32>
    %c0_6 = arith.constant 0 : index
    %c0_7 = arith.constant 0 : index
    %c1 = arith.constant 1 : index
    %7 = vector.load %arg1[%c0_6, %c0_7, %c1] : memref<1x8x342xbf16, #tpu.memory_space<vmem>>, vector<1x8x288xbf16>
    %8 = vector.shape_cast %7 : vector<1x8x288xbf16> to vector<8x288xbf16>
    %c1_8 = arith.constant 1 : index
    %c0_9 = arith.constant 0 : index
    %c0_10 = arith.constant 0 : index
    %9 = vector.load %arg2[%c1_8, %c0_9, %c0_10] : memref<9x8x8xbf16, #tpu.memory_space<vmem>>, vector<1x8x8xbf16>
    %10 = vector.shape_cast %9 : vector<1x8x8xbf16> to vector<8x8xbf16>
    %cst_11 = arith.constant dense<0.000000e+00> : vector<8x288xf32>
    %11 = tpu.matmul %10, %8, %cst_11 {dimension_numbers = #tpu.dot_dimension_numbers<[1], [0], [0], [1], [0, 0, 1, 1], [], []>} : vector<8x8xbf16>, vector<8x288xbf16>, vector<8x288xf32> -> vector<8x288xf32>
    %12 = arith.addf %6, %11 : vector<8x288xf32>
    %c0_12 = arith.constant 0 : index
    %c0_13 = arith.constant 0 : index
    %c2 = arith.constant 2 : index
    %13 = vector.load %arg1[%c0_12, %c0_13, %c2] : memref<1x8x342xbf16, #tpu.memory_space<vmem>>, vector<1x8x288xbf16>
    %14 = vector.shape_cast %13 : vector<1x8x288xbf16> to vector<8x288xbf16>
    %c2_14 = arith.constant 2 : index
    %c0_15 = arith.constant 0 : index
    %c0_16 = arith.constant 0 : index
    %15 = vector.load %arg2[%c2_14, %c0_15, %c0_16] : memref<9x8x8xbf16, #tpu.memory_space<vmem>>, vector<1x8x8xbf16>
    %16 = vector.shape_cast %15 : vector<1x8x8xbf16> to vector<8x8xbf16>
    %cst_17 = arith.constant dense<0.000000e+00> : vector<8x288xf32>
    %17 = tpu.matmul %16, %14, %cst_17 {dimension_numbers = #tpu.dot_dimension_numbers<[1], [0], [0], [1], [0, 0, 1, 1], [], []>} : vector<8x8xbf16>, vector<8x288xbf16>, vector<8x288xf32> -> vector<8x288xf32>
    %18 = arith.addf %12, %17 : vector<8x288xf32>
    %c0_18 = arith.constant 0 : index
    %c0_19 = arith.constant 0 : index
    %c18 = arith.constant 18 : index
    %19 = vector.load %arg1[%c0_18, %c0_19, %c18] : memref<1x8x342xbf16, #tpu.memory_space<vmem>>, vector<1x8x288xbf16>
    %20 = vector.shape_cast %19 : vector<1x8x288xbf16> to vector<8x288xbf16>
    %c3 = arith.constant 3 : index
    %c0_20 = arith.constant 0 : index
    %c0_21 = arith.constant 0 : index
    %21 = vector.load %arg2[%c3, %c0_20, %c0_21] : memref<9x8x8xbf16, #tpu.memory_space<vmem>>, vector<1x8x8xbf16>
    %22 = vector.shape_cast %21 : vector<1x8x8xbf16> to vector<8x8xbf16>
    %cst_22 = arith.constant dense<0.000000e+00> : vector<8x288xf32>
    %23 = tpu.matmul %22, %20, %cst_22 {dimension_numbers = #tpu.dot_dimension_numbers<[1], [0], [0], [1], [0, 0, 1, 1], [], []>} : vector<8x8xbf16>, vector<8x288xbf16>, vector<8x288xf32> -> vector<8x288xf32>
    %24 = arith.addf %18, %23 : vector<8x288xf32>
    %c0_23 = arith.constant 0 : index
    %c0_24 = arith.constant 0 : index
    %c19 = arith.constant 19 : index
    %25 = vector.load %arg1[%c0_23, %c0_24, %c19] : memref<1x8x342xbf16, #tpu.memory_space<vmem>>, vector<1x8x288xbf16>
    %26 = vector.shape_cast %25 : vector<1x8x288xbf16> to vector<8x288xbf16>
    %c4 = arith.constant 4 : index
    %c0_25 = arith.constant 0 : index
    %c0_26 = arith.constant 0 : index
    %27 = vector.load %arg2[%c4, %c0_25, %c0_26] : memref<9x8x8xbf16, #tpu.memory_space<vmem>>, vector<1x8x8xbf16>
    %28 = vector.shape_cast %27 : vector<1x8x8xbf16> to vector<8x8xbf16>
    %cst_27 = arith.constant dense<0.000000e+00> : vector<8x288xf32>
    %29 = tpu.matmul %28, %26, %cst_27 {dimension_numbers = #tpu.dot_dimension_numbers<[1], [0], [0], [1], [0, 0, 1, 1], [], []>} : vector<8x8xbf16>, vector<8x288xbf16>, vector<8x288xf32> -> vector<8x288xf32>
    %30 = arith.addf %24, %29 : vector<8x288xf32>
    %c0_28 = arith.constant 0 : index
    %c0_29 = arith.constant 0 : index
    %c20 = arith.constant 20 : index
    %31 = vector.load %arg1[%c0_28, %c0_29, %c20] : memref<1x8x342xbf16, #tpu.memory_space<vmem>>, vector<1x8x288xbf16>
    %32 = vector.shape_cast %31 : vector<1x8x288xbf16> to vector<8x288xbf16>
    %c5 = arith.constant 5 : index
    %c0_30 = arith.constant 0 : index
    %c0_31 = arith.constant 0 : index
    %33 = vector.load %arg2[%c5, %c0_30, %c0_31] : memref<9x8x8xbf16, #tpu.memory_space<vmem>>, vector<1x8x8xbf16>
    %34 = vector.shape_cast %33 : vector<1x8x8xbf16> to vector<8x8xbf16>
    %cst_32 = arith.constant dense<0.000000e+00> : vector<8x288xf32>
    %35 = tpu.matmul %34, %32, %cst_32 {dimension_numbers = #tpu.dot_dimension_numbers<[1], [0], [0], [1], [0, 0, 1, 1], [], []>} : vector<8x8xbf16>, vector<8x288xbf16>, vector<8x288xf32> -> vector<8x288xf32>
    %36 = arith.addf %30, %35 : vector<8x288xf32>
    %c0_33 = arith.constant 0 : index
    %c0_34 = arith.constant 0 : index
    %c36 = arith.constant 36 : index
    %37 = vector.load %arg1[%c0_33, %c0_34, %c36] : memref<1x8x342xbf16, #tpu.memory_space<vmem>>, vector<1x8x288xbf16>
    %38 = vector.shape_cast %37 : vector<1x8x288xbf16> to vector<8x288xbf16>
    %c6 = arith.constant 6 : index
    %c0_35 = arith.constant 0 : index
    %c0_36 = arith.constant 0 : index
    %39 = vector.load %arg2[%c6, %c0_35, %c0_36] : memref<9x8x8xbf16, #tpu.memory_space<vmem>>, vector<1x8x8xbf16>
    %40 = vector.shape_cast %39 : vector<1x8x8xbf16> to vector<8x8xbf16>
    %cst_37 = arith.constant dense<0.000000e+00> : vector<8x288xf32>
    %41 = tpu.matmul %40, %38, %cst_37 {dimension_numbers = #tpu.dot_dimension_numbers<[1], [0], [0], [1], [0, 0, 1, 1], [], []>} : vector<8x8xbf16>, vector<8x288xbf16>, vector<8x288xf32> -> vector<8x288xf32>
    %42 = arith.addf %36, %41 : vector<8x288xf32>
    %c0_38 = arith.constant 0 : index
    %c0_39 = arith.constant 0 : index
    %c37 = arith.constant 37 : index
    %43 = vector.load %arg1[%c0_38, %c0_39, %c37] : memref<1x8x342xbf16, #tpu.memory_space<vmem>>, vector<1x8x288xbf16>
    %44 = vector.shape_cast %43 : vector<1x8x288xbf16> to vector<8x288xbf16>
    %c7 = arith.constant 7 : index
    %c0_40 = arith.constant 0 : index
    %c0_41 = arith.constant 0 : index
    %45 = vector.load %arg2[%c7, %c0_40, %c0_41] : memref<9x8x8xbf16, #tpu.memory_space<vmem>>, vector<1x8x8xbf16>
    %46 = vector.shape_cast %45 : vector<1x8x8xbf16> to vector<8x8xbf16>
    %cst_42 = arith.constant dense<0.000000e+00> : vector<8x288xf32>
    %47 = tpu.matmul %46, %44, %cst_42 {dimension_numbers = #tpu.dot_dimension_numbers<[1], [0], [0], [1], [0, 0, 1, 1], [], []>} : vector<8x8xbf16>, vector<8x288xbf16>, vector<8x288xf32> -> vector<8x288xf32>
    %48 = arith.addf %42, %47 : vector<8x288xf32>
    %c0_43 = arith.constant 0 : index
    %c0_44 = arith.constant 0 : index
    %c38 = arith.constant 38 : index
    %49 = vector.load %arg1[%c0_43, %c0_44, %c38] : memref<1x8x342xbf16, #tpu.memory_space<vmem>>, vector<1x8x288xbf16>
    %50 = vector.shape_cast %49 : vector<1x8x288xbf16> to vector<8x288xbf16>
    %c8 = arith.constant 8 : index
    %c0_45 = arith.constant 0 : index
    %c0_46 = arith.constant 0 : index
    %51 = vector.load %arg2[%c8, %c0_45, %c0_46] : memref<9x8x8xbf16, #tpu.memory_space<vmem>>, vector<1x8x8xbf16>
    %52 = vector.shape_cast %51 : vector<1x8x8xbf16> to vector<8x8xbf16>
    %cst_47 = arith.constant dense<0.000000e+00> : vector<8x288xf32>
    %53 = tpu.matmul %52, %50, %cst_47 {dimension_numbers = #tpu.dot_dimension_numbers<[1], [0], [0], [1], [0, 0, 1, 1], [], []>} : vector<8x8xbf16>, vector<8x288xbf16>, vector<8x288xf32> -> vector<8x288xf32>
    %54 = arith.addf %48, %53 : vector<8x288xf32>
    %c0_48 = arith.constant 0 : index
    %c0_49 = arith.constant 0 : index
    %55 = vector.load %arg3[%c0_48, %c0_49] : memref<8x1xf32, #tpu.memory_space<vmem>>, vector<8x1xf32>
    %56 = vector.broadcast %55 : vector<8x1xf32> to vector<8x288xf32>
    %57 = arith.addf %54, %56 : vector<8x288xf32>
    %cst_50 = arith.constant 0.000000e+00 : f32
    %58 = vector.broadcast %cst_50 : f32 to vector<8x288xf32>
    %59 = arith.maximumf %57, %58 : vector<8x288xf32>
    %60 = arith.truncf %59 : vector<8x288xf32> to vector<8x288xbf16>
    %c0_51 = arith.constant 0 : index
    %c0_52 = arith.constant 0 : index
    %c0_53 = arith.constant 0 : index
    %61 = vector.load %arg4[%c0_51, %c0_52, %c0_53] : memref<1x8x288xbf16, #tpu.memory_space<vmem>>, vector<1x8x288xbf16>
    %62 = vector.shape_cast %61 : vector<1x8x288xbf16> to vector<8x288xbf16>
    %63 = vector.shape_cast %60 : vector<8x288xbf16> to vector<1x8x288xbf16>
    tpu.vector_store %arg4[%c0_51, %c0_52, %c0_53], %63 {strides = array<i32>} : memref<1x8x288xbf16, #tpu.memory_space<vmem>>, vector<1x8x288xbf16>,
    return
  }
  func.func @transform_0(%arg0: i32) -> (i32, i32, i32) {
    %c0_i32 = arith.constant 0 : i32
    %c0_i32_0 = arith.constant 0 : i32
    %c0_i32_1 = arith.constant 0 : i32
    return %arg0, %c0_i32, %c0_i32_0 : i32, i32, i32
  }
  func.func @transform_1(%arg0: i32) -> (i32, i32, i32) {
    %c0_i32 = arith.constant 0 : i32
    %c0_i32_0 = arith.constant 0 : i32
    %c0_i32_1 = arith.constant 0 : i32
    %c0_i32_2 = arith.constant 0 : i32
    return %c0_i32, %c0_i32_0, %c0_i32_1 : i32, i32, i32
  }
  func.func @transform_2(%arg0: i32) -> (i32, i32) {
    %c0_i32 = arith.constant 0 : i32
    %c0_i32_0 = arith.constant 0 : i32
    %c0_i32_1 = arith.constant 0 : i32
    return %c0_i32, %c0_i32_0 : i32, i32
  }
  func.func @transform_3(%arg0: i32) -> (i32, i32, i32) {
    %c0_i32 = arith.constant 0 : i32
    %c0_i32_0 = arith.constant 0 : i32
    %c0_i32_1 = arith.constant 0 : i32
    return %arg0, %c0_i32, %c0_i32_0 : i32, i32, i32
  }
}

module attributes {stable_mosaic.version = 11 : i64} {
  func.func @_conv_kernel(%arg0: i32, %arg1: memref<1x32x110xbf16, #tpu.memory_space<vmem>>, %arg2: memref<25x16x8xbf16, #tpu.memory_space<vmem>>, %arg3: memref<16x1xf32, #tpu.memory_space<vmem>>, %arg4: memref<1x16x80xbf16, #tpu.memory_space<vmem>>) attributes {dimension_semantics = [#tpu.dimension_semantics<parallel>], iteration_bounds = array<i64: 2>, scalar_prefetch = 0 : i64, scratch_operands = 0 : i64, tpu.core_type = #tpu.core_type<tc>, window_params = [{transform_indices = @transform_0, window_bounds = array<i64: 1, 32, 110>}, {pipeline_mode = #tpu.pipeline_mode<synchronous>, transform_indices = @transform_1, window_bounds = array<i64: 25, 16, 8>}, {pipeline_mode = #tpu.pipeline_mode<synchronous>, transform_indices = @transform_2, window_bounds = array<i64: 16, 1>}, {transform_indices = @transform_3, window_bounds = array<i64: 1, 16, 80>}]} {
    %cst = arith.constant 0.000000e+00 : f32
    %0 = vector.broadcast %cst : f32 to vector<16x80xf32>
    %c0 = arith.constant 0 : index
    %c0_0 = arith.constant 0 : index
    %c0_1 = arith.constant 0 : index
    %1 = vector.load %arg1[%c0, %c0_0, %c0_1] : memref<1x32x110xbf16, #tpu.memory_space<vmem>>, vector<1x8x80xbf16>
    %2 = vector.shape_cast %1 : vector<1x8x80xbf16> to vector<8x80xbf16>
    %c0_2 = arith.constant 0 : index
    %c0_3 = arith.constant 0 : index
    %c0_4 = arith.constant 0 : index
    %3 = vector.load %arg2[%c0_2, %c0_3, %c0_4] : memref<25x16x8xbf16, #tpu.memory_space<vmem>>, vector<1x16x8xbf16>
    %4 = vector.shape_cast %3 : vector<1x16x8xbf16> to vector<16x8xbf16>
    %cst_5 = arith.constant dense<0.000000e+00> : vector<16x80xf32>
    %5 = tpu.matmul %4, %2, %cst_5 {dimension_numbers = #tpu.dot_dimension_numbers<[1], [0], [0], [1], [0, 0, 1, 1], [], []>} : vector<16x8xbf16>, vector<8x80xbf16>, vector<16x80xf32> -> vector<16x80xf32>
    %6 = arith.addf %0, %5 : vector<16x80xf32>
    %c0_6 = arith.constant 0 : index
    %c8 = arith.constant 8 : index
    %c0_7 = arith.constant 0 : index
    %7 = vector.load %arg1[%c0_6, %c8, %c0_7] : memref<1x32x110xbf16, #tpu.memory_space<vmem>>, vector<1x8x80xbf16>
    %8 = vector.shape_cast %7 : vector<1x8x80xbf16> to vector<8x80xbf16>
    %c1 = arith.constant 1 : index
    %c0_8 = arith.constant 0 : index
    %c0_9 = arith.constant 0 : index
    %9 = vector.load %arg2[%c1, %c0_8, %c0_9] : memref<25x16x8xbf16, #tpu.memory_space<vmem>>, vector<1x16x8xbf16>
    %10 = vector.shape_cast %9 : vector<1x16x8xbf16> to vector<16x8xbf16>
    %cst_10 = arith.constant dense<0.000000e+00> : vector<16x80xf32>
    %11 = tpu.matmul %10, %8, %cst_10 {dimension_numbers = #tpu.dot_dimension_numbers<[1], [0], [0], [1], [0, 0, 1, 1], [], []>} : vector<16x8xbf16>, vector<8x80xbf16>, vector<16x80xf32> -> vector<16x80xf32>
    %12 = arith.addf %6, %11 : vector<16x80xf32>
    %c0_11 = arith.constant 0 : index
    %c0_12 = arith.constant 0 : index
    %c1_13 = arith.constant 1 : index
    %13 = vector.load %arg1[%c0_11, %c0_12, %c1_13] : memref<1x32x110xbf16, #tpu.memory_space<vmem>>, vector<1x8x80xbf16>
    %14 = vector.shape_cast %13 : vector<1x8x80xbf16> to vector<8x80xbf16>
    %c2 = arith.constant 2 : index
    %c0_14 = arith.constant 0 : index
    %c0_15 = arith.constant 0 : index
    %15 = vector.load %arg2[%c2, %c0_14, %c0_15] : memref<25x16x8xbf16, #tpu.memory_space<vmem>>, vector<1x16x8xbf16>
    %16 = vector.shape_cast %15 : vector<1x16x8xbf16> to vector<16x8xbf16>
    %cst_16 = arith.constant dense<0.000000e+00> : vector<16x80xf32>
    %17 = tpu.matmul %16, %14, %cst_16 {dimension_numbers = #tpu.dot_dimension_numbers<[1], [0], [0], [1], [0, 0, 1, 1], [], []>} : vector<16x8xbf16>, vector<8x80xbf16>, vector<16x80xf32> -> vector<16x80xf32>
    %18 = arith.addf %12, %17 : vector<16x80xf32>
    %c0_17 = arith.constant 0 : index
    %c8_18 = arith.constant 8 : index
    %c1_19 = arith.constant 1 : index
    %19 = vector.load %arg1[%c0_17, %c8_18, %c1_19] : memref<1x32x110xbf16, #tpu.memory_space<vmem>>, vector<1x8x80xbf16>
    %20 = vector.shape_cast %19 : vector<1x8x80xbf16> to vector<8x80xbf16>
    %c3 = arith.constant 3 : index
    %c0_20 = arith.constant 0 : index
    %c0_21 = arith.constant 0 : index
    %21 = vector.load %arg2[%c3, %c0_20, %c0_21] : memref<25x16x8xbf16, #tpu.memory_space<vmem>>, vector<1x16x8xbf16>
    %22 = vector.shape_cast %21 : vector<1x16x8xbf16> to vector<16x8xbf16>
    %cst_22 = arith.constant dense<0.000000e+00> : vector<16x80xf32>
    %23 = tpu.matmul %22, %20, %cst_22 {dimension_numbers = #tpu.dot_dimension_numbers<[1], [0], [0], [1], [0, 0, 1, 1], [], []>} : vector<16x8xbf16>, vector<8x80xbf16>, vector<16x80xf32> -> vector<16x80xf32>
    %24 = arith.addf %18, %23 : vector<16x80xf32>
    %c0_23 = arith.constant 0 : index
    %c0_24 = arith.constant 0 : index
    %c2_25 = arith.constant 2 : index
    %25 = vector.load %arg1[%c0_23, %c0_24, %c2_25] : memref<1x32x110xbf16, #tpu.memory_space<vmem>>, vector<1x8x80xbf16>
    %26 = vector.shape_cast %25 : vector<1x8x80xbf16> to vector<8x80xbf16>
    %c4 = arith.constant 4 : index
    %c0_26 = arith.constant 0 : index
    %c0_27 = arith.constant 0 : index
    %27 = vector.load %arg2[%c4, %c0_26, %c0_27] : memref<25x16x8xbf16, #tpu.memory_space<vmem>>, vector<1x16x8xbf16>
    %28 = vector.shape_cast %27 : vector<1x16x8xbf16> to vector<16x8xbf16>
    %cst_28 = arith.constant dense<0.000000e+00> : vector<16x80xf32>
    %29 = tpu.matmul %28, %26, %cst_28 {dimension_numbers = #tpu.dot_dimension_numbers<[1], [0], [0], [1], [0, 0, 1, 1], [], []>} : vector<16x8xbf16>, vector<8x80xbf16>, vector<16x80xf32> -> vector<16x80xf32>
    %30 = arith.addf %24, %29 : vector<16x80xf32>
    %c0_29 = arith.constant 0 : index
    %c16 = arith.constant 16 : index
    %c0_30 = arith.constant 0 : index
    %31 = vector.load %arg1[%c0_29, %c16, %c0_30] : memref<1x32x110xbf16, #tpu.memory_space<vmem>>, vector<1x8x80xbf16>
    %32 = vector.shape_cast %31 : vector<1x8x80xbf16> to vector<8x80xbf16>
    %c5 = arith.constant 5 : index
    %c0_31 = arith.constant 0 : index
    %c0_32 = arith.constant 0 : index
    %33 = vector.load %arg2[%c5, %c0_31, %c0_32] : memref<25x16x8xbf16, #tpu.memory_space<vmem>>, vector<1x16x8xbf16>
    %34 = vector.shape_cast %33 : vector<1x16x8xbf16> to vector<16x8xbf16>
    %cst_33 = arith.constant dense<0.000000e+00> : vector<16x80xf32>
    %35 = tpu.matmul %34, %32, %cst_33 {dimension_numbers = #tpu.dot_dimension_numbers<[1], [0], [0], [1], [0, 0, 1, 1], [], []>} : vector<16x8xbf16>, vector<8x80xbf16>, vector<16x80xf32> -> vector<16x80xf32>
    %36 = arith.addf %30, %35 : vector<16x80xf32>
    %c0_34 = arith.constant 0 : index
    %c24 = arith.constant 24 : index
    %c0_35 = arith.constant 0 : index
    %37 = vector.load %arg1[%c0_34, %c24, %c0_35] : memref<1x32x110xbf16, #tpu.memory_space<vmem>>, vector<1x8x80xbf16>
    %38 = vector.shape_cast %37 : vector<1x8x80xbf16> to vector<8x80xbf16>
    %c6 = arith.constant 6 : index
    %c0_36 = arith.constant 0 : index
    %c0_37 = arith.constant 0 : index
    %39 = vector.load %arg2[%c6, %c0_36, %c0_37] : memref<25x16x8xbf16, #tpu.memory_space<vmem>>, vector<1x16x8xbf16>
    %40 = vector.shape_cast %39 : vector<1x16x8xbf16> to vector<16x8xbf16>
    %cst_38 = arith.constant dense<0.000000e+00> : vector<16x80xf32>
    %41 = tpu.matmul %40, %38, %cst_38 {dimension_numbers = #tpu.dot_dimension_numbers<[1], [0], [0], [1], [0, 0, 1, 1], [], []>} : vector<16x8xbf16>, vector<8x80xbf16>, vector<16x80xf32> -> vector<16x80xf32>
    %42 = arith.addf %36, %41 : vector<16x80xf32>
    %c0_39 = arith.constant 0 : index
    %c16_40 = arith.constant 16 : index
    %c1_41 = arith.constant 1 : index
    %43 = vector.load %arg1[%c0_39, %c16_40, %c1_41] : memref<1x32x110xbf16, #tpu.memory_space<vmem>>, vector<1x8x80xbf16>
    %44 = vector.shape_cast %43 : vector<1x8x80xbf16> to vector<8x80xbf16>
    %c7 = arith.constant 7 : index
    %c0_42 = arith.constant 0 : index
    %c0_43 = arith.constant 0 : index
    %45 = vector.load %arg2[%c7, %c0_42, %c0_43] : memref<25x16x8xbf16, #tpu.memory_space<vmem>>, vector<1x16x8xbf16>
    %46 = vector.shape_cast %45 : vector<1x16x8xbf16> to vector<16x8xbf16>
    %cst_44 = arith.constant dense<0.000000e+00> : vector<16x80xf32>
    %47 = tpu.matmul %46, %44, %cst_44 {dimension_numbers = #tpu.dot_dimension_numbers<[1], [0], [0], [1], [0, 0, 1, 1], [], []>} : vector<16x8xbf16>, vector<8x80xbf16>, vector<16x80xf32> -> vector<16x80xf32>
    %48 = arith.addf %42, %47 : vector<16x80xf32>
    %c0_45 = arith.constant 0 : index
    %c24_46 = arith.constant 24 : index
    %c1_47 = arith.constant 1 : index
    %49 = vector.load %arg1[%c0_45, %c24_46, %c1_47] : memref<1x32x110xbf16, #tpu.memory_space<vmem>>, vector<1x8x80xbf16>
    %50 = vector.shape_cast %49 : vector<1x8x80xbf16> to vector<8x80xbf16>
    %c8_48 = arith.constant 8 : index
    %c0_49 = arith.constant 0 : index
    %c0_50 = arith.constant 0 : index
    %51 = vector.load %arg2[%c8_48, %c0_49, %c0_50] : memref<25x16x8xbf16, #tpu.memory_space<vmem>>, vector<1x16x8xbf16>
    %52 = vector.shape_cast %51 : vector<1x16x8xbf16> to vector<16x8xbf16>
    %cst_51 = arith.constant dense<0.000000e+00> : vector<16x80xf32>
    %53 = tpu.matmul %52, %50, %cst_51 {dimension_numbers = #tpu.dot_dimension_numbers<[1], [0], [0], [1], [0, 0, 1, 1], [], []>} : vector<16x8xbf16>, vector<8x80xbf16>, vector<16x80xf32> -> vector<16x80xf32>
    %54 = arith.addf %48, %53 : vector<16x80xf32>
    %c0_52 = arith.constant 0 : index
    %c16_53 = arith.constant 16 : index
    %c2_54 = arith.constant 2 : index
    %55 = vector.load %arg1[%c0_52, %c16_53, %c2_54] : memref<1x32x110xbf16, #tpu.memory_space<vmem>>, vector<1x8x80xbf16>
    %56 = vector.shape_cast %55 : vector<1x8x80xbf16> to vector<8x80xbf16>
    %c9 = arith.constant 9 : index
    %c0_55 = arith.constant 0 : index
    %c0_56 = arith.constant 0 : index
    %57 = vector.load %arg2[%c9, %c0_55, %c0_56] : memref<25x16x8xbf16, #tpu.memory_space<vmem>>, vector<1x16x8xbf16>
    %58 = vector.shape_cast %57 : vector<1x16x8xbf16> to vector<16x8xbf16>
    %cst_57 = arith.constant dense<0.000000e+00> : vector<16x80xf32>
    %59 = tpu.matmul %58, %56, %cst_57 {dimension_numbers = #tpu.dot_dimension_numbers<[1], [0], [0], [1], [0, 0, 1, 1], [], []>} : vector<16x8xbf16>, vector<8x80xbf16>, vector<16x80xf32> -> vector<16x80xf32>
    %60 = arith.addf %54, %59 : vector<16x80xf32>
    %c0_58 = arith.constant 0 : index
    %c0_59 = arith.constant 0 : index
    %c10 = arith.constant 10 : index
    %61 = vector.load %arg1[%c0_58, %c0_59, %c10] : memref<1x32x110xbf16, #tpu.memory_space<vmem>>, vector<1x8x80xbf16>
    %62 = vector.shape_cast %61 : vector<1x8x80xbf16> to vector<8x80xbf16>
    %c10_60 = arith.constant 10 : index
    %c0_61 = arith.constant 0 : index
    %c0_62 = arith.constant 0 : index
    %63 = vector.load %arg2[%c10_60, %c0_61, %c0_62] : memref<25x16x8xbf16, #tpu.memory_space<vmem>>, vector<1x16x8xbf16>
    %64 = vector.shape_cast %63 : vector<1x16x8xbf16> to vector<16x8xbf16>
    %cst_63 = arith.constant dense<0.000000e+00> : vector<16x80xf32>
    %65 = tpu.matmul %64, %62, %cst_63 {dimension_numbers = #tpu.dot_dimension_numbers<[1], [0], [0], [1], [0, 0, 1, 1], [], []>} : vector<16x8xbf16>, vector<8x80xbf16>, vector<16x80xf32> -> vector<16x80xf32>
    %66 = arith.addf %60, %65 : vector<16x80xf32>
    %c0_64 = arith.constant 0 : index
    %c8_65 = arith.constant 8 : index
    %c10_66 = arith.constant 10 : index
    %67 = vector.load %arg1[%c0_64, %c8_65, %c10_66] : memref<1x32x110xbf16, #tpu.memory_space<vmem>>, vector<1x8x80xbf16>
    %68 = vector.shape_cast %67 : vector<1x8x80xbf16> to vector<8x80xbf16>
    %c11 = arith.constant 11 : index
    %c0_67 = arith.constant 0 : index
    %c0_68 = arith.constant 0 : index
    %69 = vector.load %arg2[%c11, %c0_67, %c0_68] : memref<25x16x8xbf16, #tpu.memory_space<vmem>>, vector<1x16x8xbf16>
    %70 = vector.shape_cast %69 : vector<1x16x8xbf16> to vector<16x8xbf16>
    %cst_69 = arith.constant dense<0.000000e+00> : vector<16x80xf32>
    %71 = tpu.matmul %70, %68, %cst_69 {dimension_numbers = #tpu.dot_dimension_numbers<[1], [0], [0], [1], [0, 0, 1, 1], [], []>} : vector<16x8xbf16>, vector<8x80xbf16>, vector<16x80xf32> -> vector<16x80xf32>
    %72 = arith.addf %66, %71 : vector<16x80xf32>
    %c0_70 = arith.constant 0 : index
    %c0_71 = arith.constant 0 : index
    %c11_72 = arith.constant 11 : index
    %73 = vector.load %arg1[%c0_70, %c0_71, %c11_72] : memref<1x32x110xbf16, #tpu.memory_space<vmem>>, vector<1x8x80xbf16>
    %74 = vector.shape_cast %73 : vector<1x8x80xbf16> to vector<8x80xbf16>
    %c12 = arith.constant 12 : index
    %c0_73 = arith.constant 0 : index
    %c0_74 = arith.constant 0 : index
    %75 = vector.load %arg2[%c12, %c0_73, %c0_74] : memref<25x16x8xbf16, #tpu.memory_space<vmem>>, vector<1x16x8xbf16>
    %76 = vector.shape_cast %75 : vector<1x16x8xbf16> to vector<16x8xbf16>
    %cst_75 = arith.constant dense<0.000000e+00> : vector<16x80xf32>
    %77 = tpu.matmul %76, %74, %cst_75 {dimension_numbers = #tpu.dot_dimension_numbers<[1], [0], [0], [1], [0, 0, 1, 1], [], []>} : vector<16x8xbf16>, vector<8x80xbf16>, vector<16x80xf32> -> vector<16x80xf32>
    %78 = arith.addf %72, %77 : vector<16x80xf32>
    %c0_76 = arith.constant 0 : index
    %c8_77 = arith.constant 8 : index
    %c11_78 = arith.constant 11 : index
    %79 = vector.load %arg1[%c0_76, %c8_77, %c11_78] : memref<1x32x110xbf16, #tpu.memory_space<vmem>>, vector<1x8x80xbf16>
    %80 = vector.shape_cast %79 : vector<1x8x80xbf16> to vector<8x80xbf16>
    %c13 = arith.constant 13 : index
    %c0_79 = arith.constant 0 : index
    %c0_80 = arith.constant 0 : index
    %81 = vector.load %arg2[%c13, %c0_79, %c0_80] : memref<25x16x8xbf16, #tpu.memory_space<vmem>>, vector<1x16x8xbf16>
    %82 = vector.shape_cast %81 : vector<1x16x8xbf16> to vector<16x8xbf16>
    %cst_81 = arith.constant dense<0.000000e+00> : vector<16x80xf32>
    %83 = tpu.matmul %82, %80, %cst_81 {dimension_numbers = #tpu.dot_dimension_numbers<[1], [0], [0], [1], [0, 0, 1, 1], [], []>} : vector<16x8xbf16>, vector<8x80xbf16>, vector<16x80xf32> -> vector<16x80xf32>
    %84 = arith.addf %78, %83 : vector<16x80xf32>
    %c0_82 = arith.constant 0 : index
    %c0_83 = arith.constant 0 : index
    %c12_84 = arith.constant 12 : index
    %85 = vector.load %arg1[%c0_82, %c0_83, %c12_84] : memref<1x32x110xbf16, #tpu.memory_space<vmem>>, vector<1x8x80xbf16>
    %86 = vector.shape_cast %85 : vector<1x8x80xbf16> to vector<8x80xbf16>
    %c14 = arith.constant 14 : index
    %c0_85 = arith.constant 0 : index
    %c0_86 = arith.constant 0 : index
    %87 = vector.load %arg2[%c14, %c0_85, %c0_86] : memref<25x16x8xbf16, #tpu.memory_space<vmem>>, vector<1x16x8xbf16>
    %88 = vector.shape_cast %87 : vector<1x16x8xbf16> to vector<16x8xbf16>
    %cst_87 = arith.constant dense<0.000000e+00> : vector<16x80xf32>
    %89 = tpu.matmul %88, %86, %cst_87 {dimension_numbers = #tpu.dot_dimension_numbers<[1], [0], [0], [1], [0, 0, 1, 1], [], []>} : vector<16x8xbf16>, vector<8x80xbf16>, vector<16x80xf32> -> vector<16x80xf32>
    %90 = arith.addf %84, %89 : vector<16x80xf32>
    %c0_88 = arith.constant 0 : index
    %c16_89 = arith.constant 16 : index
    %c10_90 = arith.constant 10 : index
    %91 = vector.load %arg1[%c0_88, %c16_89, %c10_90] : memref<1x32x110xbf16, #tpu.memory_space<vmem>>, vector<1x8x80xbf16>
    %92 = vector.shape_cast %91 : vector<1x8x80xbf16> to vector<8x80xbf16>
    %c15 = arith.constant 15 : index
    %c0_91 = arith.constant 0 : index
    %c0_92 = arith.constant 0 : index
    %93 = vector.load %arg2[%c15, %c0_91, %c0_92] : memref<25x16x8xbf16, #tpu.memory_space<vmem>>, vector<1x16x8xbf16>
    %94 = vector.shape_cast %93 : vector<1x16x8xbf16> to vector<16x8xbf16>
    %cst_93 = arith.constant dense<0.000000e+00> : vector<16x80xf32>
    %95 = tpu.matmul %94, %92, %cst_93 {dimension_numbers = #tpu.dot_dimension_numbers<[1], [0], [0], [1], [0, 0, 1, 1], [], []>} : vector<16x8xbf16>, vector<8x80xbf16>, vector<16x80xf32> -> vector<16x80xf32>
    %96 = arith.addf %90, %95 : vector<16x80xf32>
    %c0_94 = arith.constant 0 : index
    %c24_95 = arith.constant 24 : index
    %c10_96 = arith.constant 10 : index
    %97 = vector.load %arg1[%c0_94, %c24_95, %c10_96] : memref<1x32x110xbf16, #tpu.memory_space<vmem>>, vector<1x8x80xbf16>
    %98 = vector.shape_cast %97 : vector<1x8x80xbf16> to vector<8x80xbf16>
    %c16_97 = arith.constant 16 : index
    %c0_98 = arith.constant 0 : index
    %c0_99 = arith.constant 0 : index
    %99 = vector.load %arg2[%c16_97, %c0_98, %c0_99] : memref<25x16x8xbf16, #tpu.memory_space<vmem>>, vector<1x16x8xbf16>
    %100 = vector.shape_cast %99 : vector<1x16x8xbf16> to vector<16x8xbf16>
    %cst_100 = arith.constant dense<0.000000e+00> : vector<16x80xf32>
    %101 = tpu.matmul %100, %98, %cst_100 {dimension_numbers = #tpu.dot_dimension_numbers<[1], [0], [0], [1], [0, 0, 1, 1], [], []>} : vector<16x8xbf16>, vector<8x80xbf16>, vector<16x80xf32> -> vector<16x80xf32>
    %102 = arith.addf %96, %101 : vector<16x80xf32>
    %c0_101 = arith.constant 0 : index
    %c16_102 = arith.constant 16 : index
    %c11_103 = arith.constant 11 : index
    %103 = vector.load %arg1[%c0_101, %c16_102, %c11_103] : memref<1x32x110xbf16, #tpu.memory_space<vmem>>, vector<1x8x80xbf16>
    %104 = vector.shape_cast %103 : vector<1x8x80xbf16> to vector<8x80xbf16>
    %c17 = arith.constant 17 : index
    %c0_104 = arith.constant 0 : index
    %c0_105 = arith.constant 0 : index
    %105 = vector.load %arg2[%c17, %c0_104, %c0_105] : memref<25x16x8xbf16, #tpu.memory_space<vmem>>, vector<1x16x8xbf16>
    %106 = vector.shape_cast %105 : vector<1x16x8xbf16> to vector<16x8xbf16>
    %cst_106 = arith.constant dense<0.000000e+00> : vector<16x80xf32>
    %107 = tpu.matmul %106, %104, %cst_106 {dimension_numbers = #tpu.dot_dimension_numbers<[1], [0], [0], [1], [0, 0, 1, 1], [], []>} : vector<16x8xbf16>, vector<8x80xbf16>, vector<16x80xf32> -> vector<16x80xf32>
    %108 = arith.addf %102, %107 : vector<16x80xf32>
    %c0_107 = arith.constant 0 : index
    %c24_108 = arith.constant 24 : index
    %c11_109 = arith.constant 11 : index
    %109 = vector.load %arg1[%c0_107, %c24_108, %c11_109] : memref<1x32x110xbf16, #tpu.memory_space<vmem>>, vector<1x8x80xbf16>
    %110 = vector.shape_cast %109 : vector<1x8x80xbf16> to vector<8x80xbf16>
    %c18 = arith.constant 18 : index
    %c0_110 = arith.constant 0 : index
    %c0_111 = arith.constant 0 : index
    %111 = vector.load %arg2[%c18, %c0_110, %c0_111] : memref<25x16x8xbf16, #tpu.memory_space<vmem>>, vector<1x16x8xbf16>
    %112 = vector.shape_cast %111 : vector<1x16x8xbf16> to vector<16x8xbf16>
    %cst_112 = arith.constant dense<0.000000e+00> : vector<16x80xf32>
    %113 = tpu.matmul %112, %110, %cst_112 {dimension_numbers = #tpu.dot_dimension_numbers<[1], [0], [0], [1], [0, 0, 1, 1], [], []>} : vector<16x8xbf16>, vector<8x80xbf16>, vector<16x80xf32> -> vector<16x80xf32>
    %114 = arith.addf %108, %113 : vector<16x80xf32>
    %c0_113 = arith.constant 0 : index
    %c16_114 = arith.constant 16 : index
    %c12_115 = arith.constant 12 : index
    %115 = vector.load %arg1[%c0_113, %c16_114, %c12_115] : memref<1x32x110xbf16, #tpu.memory_space<vmem>>, vector<1x8x80xbf16>
    %116 = vector.shape_cast %115 : vector<1x8x80xbf16> to vector<8x80xbf16>
    %c19 = arith.constant 19 : index
    %c0_116 = arith.constant 0 : index
    %c0_117 = arith.constant 0 : index
    %117 = vector.load %arg2[%c19, %c0_116, %c0_117] : memref<25x16x8xbf16, #tpu.memory_space<vmem>>, vector<1x16x8xbf16>
    %118 = vector.shape_cast %117 : vector<1x16x8xbf16> to vector<16x8xbf16>
    %cst_118 = arith.constant dense<0.000000e+00> : vector<16x80xf32>
    %119 = tpu.matmul %118, %116, %cst_118 {dimension_numbers = #tpu.dot_dimension_numbers<[1], [0], [0], [1], [0, 0, 1, 1], [], []>} : vector<16x8xbf16>, vector<8x80xbf16>, vector<16x80xf32> -> vector<16x80xf32>
    %120 = arith.addf %114, %119 : vector<16x80xf32>
    %c0_119 = arith.constant 0 : index
    %c0_120 = arith.constant 0 : index
    %c20 = arith.constant 20 : index
    %121 = vector.load %arg1[%c0_119, %c0_120, %c20] : memref<1x32x110xbf16, #tpu.memory_space<vmem>>, vector<1x8x80xbf16>
    %122 = vector.shape_cast %121 : vector<1x8x80xbf16> to vector<8x80xbf16>
    %c20_121 = arith.constant 20 : index
    %c0_122 = arith.constant 0 : index
    %c0_123 = arith.constant 0 : index
    %123 = vector.load %arg2[%c20_121, %c0_122, %c0_123] : memref<25x16x8xbf16, #tpu.memory_space<vmem>>, vector<1x16x8xbf16>
    %124 = vector.shape_cast %123 : vector<1x16x8xbf16> to vector<16x8xbf16>
    %cst_124 = arith.constant dense<0.000000e+00> : vector<16x80xf32>
    %125 = tpu.matmul %124, %122, %cst_124 {dimension_numbers = #tpu.dot_dimension_numbers<[1], [0], [0], [1], [0, 0, 1, 1], [], []>} : vector<16x8xbf16>, vector<8x80xbf16>, vector<16x80xf32> -> vector<16x80xf32>
    %126 = arith.addf %120, %125 : vector<16x80xf32>
    %c0_125 = arith.constant 0 : index
    %c8_126 = arith.constant 8 : index
    %c20_127 = arith.constant 20 : index
    %127 = vector.load %arg1[%c0_125, %c8_126, %c20_127] : memref<1x32x110xbf16, #tpu.memory_space<vmem>>, vector<1x8x80xbf16>
    %128 = vector.shape_cast %127 : vector<1x8x80xbf16> to vector<8x80xbf16>
    %c21 = arith.constant 21 : index
    %c0_128 = arith.constant 0 : index
    %c0_129 = arith.constant 0 : index
    %129 = vector.load %arg2[%c21, %c0_128, %c0_129] : memref<25x16x8xbf16, #tpu.memory_space<vmem>>, vector<1x16x8xbf16>
    %130 = vector.shape_cast %129 : vector<1x16x8xbf16> to vector<16x8xbf16>
    %cst_130 = arith.constant dense<0.000000e+00> : vector<16x80xf32>
    %131 = tpu.matmul %130, %128, %cst_130 {dimension_numbers = #tpu.dot_dimension_numbers<[1], [0], [0], [1], [0, 0, 1, 1], [], []>} : vector<16x8xbf16>, vector<8x80xbf16>, vector<16x80xf32> -> vector<16x80xf32>
    %132 = arith.addf %126, %131 : vector<16x80xf32>
    %c0_131 = arith.constant 0 : index
    %c0_132 = arith.constant 0 : index
    %c21_133 = arith.constant 21 : index
    %133 = vector.load %arg1[%c0_131, %c0_132, %c21_133] : memref<1x32x110xbf16, #tpu.memory_space<vmem>>, vector<1x8x80xbf16>
    %134 = vector.shape_cast %133 : vector<1x8x80xbf16> to vector<8x80xbf16>
    %c22 = arith.constant 22 : index
    %c0_134 = arith.constant 0 : index
    %c0_135 = arith.constant 0 : index
    %135 = vector.load %arg2[%c22, %c0_134, %c0_135] : memref<25x16x8xbf16, #tpu.memory_space<vmem>>, vector<1x16x8xbf16>
    %136 = vector.shape_cast %135 : vector<1x16x8xbf16> to vector<16x8xbf16>
    %cst_136 = arith.constant dense<0.000000e+00> : vector<16x80xf32>
    %137 = tpu.matmul %136, %134, %cst_136 {dimension_numbers = #tpu.dot_dimension_numbers<[1], [0], [0], [1], [0, 0, 1, 1], [], []>} : vector<16x8xbf16>, vector<8x80xbf16>, vector<16x80xf32> -> vector<16x80xf32>
    %138 = arith.addf %132, %137 : vector<16x80xf32>
    %c0_137 = arith.constant 0 : index
    %c8_138 = arith.constant 8 : index
    %c21_139 = arith.constant 21 : index
    %139 = vector.load %arg1[%c0_137, %c8_138, %c21_139] : memref<1x32x110xbf16, #tpu.memory_space<vmem>>, vector<1x8x80xbf16>
    %140 = vector.shape_cast %139 : vector<1x8x80xbf16> to vector<8x80xbf16>
    %c23 = arith.constant 23 : index
    %c0_140 = arith.constant 0 : index
    %c0_141 = arith.constant 0 : index
    %141 = vector.load %arg2[%c23, %c0_140, %c0_141] : memref<25x16x8xbf16, #tpu.memory_space<vmem>>, vector<1x16x8xbf16>
    %142 = vector.shape_cast %141 : vector<1x16x8xbf16> to vector<16x8xbf16>
    %cst_142 = arith.constant dense<0.000000e+00> : vector<16x80xf32>
    %143 = tpu.matmul %142, %140, %cst_142 {dimension_numbers = #tpu.dot_dimension_numbers<[1], [0], [0], [1], [0, 0, 1, 1], [], []>} : vector<16x8xbf16>, vector<8x80xbf16>, vector<16x80xf32> -> vector<16x80xf32>
    %144 = arith.addf %138, %143 : vector<16x80xf32>
    %c0_143 = arith.constant 0 : index
    %c0_144 = arith.constant 0 : index
    %c22_145 = arith.constant 22 : index
    %145 = vector.load %arg1[%c0_143, %c0_144, %c22_145] : memref<1x32x110xbf16, #tpu.memory_space<vmem>>, vector<1x8x80xbf16>
    %146 = vector.shape_cast %145 : vector<1x8x80xbf16> to vector<8x80xbf16>
    %c24_146 = arith.constant 24 : index
    %c0_147 = arith.constant 0 : index
    %c0_148 = arith.constant 0 : index
    %147 = vector.load %arg2[%c24_146, %c0_147, %c0_148] : memref<25x16x8xbf16, #tpu.memory_space<vmem>>, vector<1x16x8xbf16>
    %148 = vector.shape_cast %147 : vector<1x16x8xbf16> to vector<16x8xbf16>
    %cst_149 = arith.constant dense<0.000000e+00> : vector<16x80xf32>
    %149 = tpu.matmul %148, %146, %cst_149 {dimension_numbers = #tpu.dot_dimension_numbers<[1], [0], [0], [1], [0, 0, 1, 1], [], []>} : vector<16x8xbf16>, vector<8x80xbf16>, vector<16x80xf32> -> vector<16x80xf32>
    %150 = arith.addf %144, %149 : vector<16x80xf32>
    %c0_150 = arith.constant 0 : index
    %c0_151 = arith.constant 0 : index
    %151 = vector.load %arg3[%c0_150, %c0_151] : memref<16x1xf32, #tpu.memory_space<vmem>>, vector<16x1xf32>
    %152 = vector.broadcast %151 : vector<16x1xf32> to vector<16x80xf32>
    %153 = arith.addf %150, %152 : vector<16x80xf32>
    %cst_152 = arith.constant 0.000000e+00 : f32
    %154 = vector.broadcast %cst_152 : f32 to vector<16x80xf32>
    %155 = arith.maximumf %153, %154 : vector<16x80xf32>
    %156 = arith.truncf %155 : vector<16x80xf32> to vector<16x80xbf16>
    %c0_153 = arith.constant 0 : index
    %c0_154 = arith.constant 0 : index
    %c0_155 = arith.constant 0 : index
    %157 = vector.load %arg4[%c0_153, %c0_154, %c0_155] : memref<1x16x80xbf16, #tpu.memory_space<vmem>>, vector<1x16x80xbf16>
    %158 = vector.shape_cast %157 : vector<1x16x80xbf16> to vector<16x80xbf16>
    %159 = vector.shape_cast %156 : vector<16x80xbf16> to vector<1x16x80xbf16>
    tpu.vector_store %arg4[%c0_153, %c0_154, %c0_155], %159 {strides = array<i32>} : memref<1x16x80xbf16, #tpu.memory_space<vmem>>, vector<1x16x80xbf16>,
    return
  }
  func.func @transform_0(%arg0: i32) -> (i32, i32, i32) {
    %c0_i32 = arith.constant 0 : i32
    %c0_i32_0 = arith.constant 0 : i32
    %c0_i32_1 = arith.constant 0 : i32
    return %arg0, %c0_i32, %c0_i32_0 : i32, i32, i32
  }
  func.func @transform_1(%arg0: i32) -> (i32, i32, i32) {
    %c0_i32 = arith.constant 0 : i32
    %c0_i32_0 = arith.constant 0 : i32
    %c0_i32_1 = arith.constant 0 : i32
    %c0_i32_2 = arith.constant 0 : i32
    return %c0_i32, %c0_i32_0, %c0_i32_1 : i32, i32, i32
  }
  func.func @transform_2(%arg0: i32) -> (i32, i32) {
    %c0_i32 = arith.constant 0 : i32
    %c0_i32_0 = arith.constant 0 : i32
    %c0_i32_1 = arith.constant 0 : i32
    return %c0_i32, %c0_i32_0 : i32, i32
  }
  func.func @transform_3(%arg0: i32) -> (i32, i32, i32) {
    %c0_i32 = arith.constant 0 : i32
    %c0_i32_0 = arith.constant 0 : i32
    %c0_i32_1 = arith.constant 0 : i32
    return %arg0, %c0_i32, %c0_i32_0 : i32, i32, i32
  }
}

module attributes {stable_mosaic.version = 11 : i64} {
  func.func @_conv_kernel(%arg0: i32, %arg1: memref<1x16x110xbf16, #tpu.memory_space<vmem>>, %arg2: memref<9x16x16xbf16, #tpu.memory_space<vmem>>, %arg3: memref<16x1xf32, #tpu.memory_space<vmem>>, %arg4: memref<1x16x80xbf16, #tpu.memory_space<vmem>>) attributes {dimension_semantics = [#tpu.dimension_semantics<parallel>], iteration_bounds = array<i64: 2>, scalar_prefetch = 0 : i64, scratch_operands = 0 : i64, tpu.core_type = #tpu.core_type<tc>, window_params = [{transform_indices = @transform_0, window_bounds = array<i64: 1, 16, 110>}, {pipeline_mode = #tpu.pipeline_mode<synchronous>, transform_indices = @transform_1, window_bounds = array<i64: 9, 16, 16>}, {pipeline_mode = #tpu.pipeline_mode<synchronous>, transform_indices = @transform_2, window_bounds = array<i64: 16, 1>}, {transform_indices = @transform_3, window_bounds = array<i64: 1, 16, 80>}]} {
    %cst = arith.constant 0.000000e+00 : f32
    %0 = vector.broadcast %cst : f32 to vector<16x80xf32>
    %c0 = arith.constant 0 : index
    %c0_0 = arith.constant 0 : index
    %c0_1 = arith.constant 0 : index
    %1 = vector.load %arg1[%c0, %c0_0, %c0_1] : memref<1x16x110xbf16, #tpu.memory_space<vmem>>, vector<1x16x80xbf16>
    %2 = vector.shape_cast %1 : vector<1x16x80xbf16> to vector<16x80xbf16>
    %c0_2 = arith.constant 0 : index
    %c0_3 = arith.constant 0 : index
    %c0_4 = arith.constant 0 : index
    %3 = vector.load %arg2[%c0_2, %c0_3, %c0_4] : memref<9x16x16xbf16, #tpu.memory_space<vmem>>, vector<1x16x16xbf16>
    %4 = vector.shape_cast %3 : vector<1x16x16xbf16> to vector<16x16xbf16>
    %cst_5 = arith.constant dense<0.000000e+00> : vector<16x80xf32>
    %5 = tpu.matmul %4, %2, %cst_5 {dimension_numbers = #tpu.dot_dimension_numbers<[1], [0], [0], [1], [0, 0, 1, 1], [], []>} : vector<16x16xbf16>, vector<16x80xbf16>, vector<16x80xf32> -> vector<16x80xf32>
    %6 = arith.addf %0, %5 : vector<16x80xf32>
    %c0_6 = arith.constant 0 : index
    %c0_7 = arith.constant 0 : index
    %c1 = arith.constant 1 : index
    %7 = vector.load %arg1[%c0_6, %c0_7, %c1] : memref<1x16x110xbf16, #tpu.memory_space<vmem>>, vector<1x16x80xbf16>
    %8 = vector.shape_cast %7 : vector<1x16x80xbf16> to vector<16x80xbf16>
    %c1_8 = arith.constant 1 : index
    %c0_9 = arith.constant 0 : index
    %c0_10 = arith.constant 0 : index
    %9 = vector.load %arg2[%c1_8, %c0_9, %c0_10] : memref<9x16x16xbf16, #tpu.memory_space<vmem>>, vector<1x16x16xbf16>
    %10 = vector.shape_cast %9 : vector<1x16x16xbf16> to vector<16x16xbf16>
    %cst_11 = arith.constant dense<0.000000e+00> : vector<16x80xf32>
    %11 = tpu.matmul %10, %8, %cst_11 {dimension_numbers = #tpu.dot_dimension_numbers<[1], [0], [0], [1], [0, 0, 1, 1], [], []>} : vector<16x16xbf16>, vector<16x80xbf16>, vector<16x80xf32> -> vector<16x80xf32>
    %12 = arith.addf %6, %11 : vector<16x80xf32>
    %c0_12 = arith.constant 0 : index
    %c0_13 = arith.constant 0 : index
    %c2 = arith.constant 2 : index
    %13 = vector.load %arg1[%c0_12, %c0_13, %c2] : memref<1x16x110xbf16, #tpu.memory_space<vmem>>, vector<1x16x80xbf16>
    %14 = vector.shape_cast %13 : vector<1x16x80xbf16> to vector<16x80xbf16>
    %c2_14 = arith.constant 2 : index
    %c0_15 = arith.constant 0 : index
    %c0_16 = arith.constant 0 : index
    %15 = vector.load %arg2[%c2_14, %c0_15, %c0_16] : memref<9x16x16xbf16, #tpu.memory_space<vmem>>, vector<1x16x16xbf16>
    %16 = vector.shape_cast %15 : vector<1x16x16xbf16> to vector<16x16xbf16>
    %cst_17 = arith.constant dense<0.000000e+00> : vector<16x80xf32>
    %17 = tpu.matmul %16, %14, %cst_17 {dimension_numbers = #tpu.dot_dimension_numbers<[1], [0], [0], [1], [0, 0, 1, 1], [], []>} : vector<16x16xbf16>, vector<16x80xbf16>, vector<16x80xf32> -> vector<16x80xf32>
    %18 = arith.addf %12, %17 : vector<16x80xf32>
    %c0_18 = arith.constant 0 : index
    %c0_19 = arith.constant 0 : index
    %c10 = arith.constant 10 : index
    %19 = vector.load %arg1[%c0_18, %c0_19, %c10] : memref<1x16x110xbf16, #tpu.memory_space<vmem>>, vector<1x16x80xbf16>
    %20 = vector.shape_cast %19 : vector<1x16x80xbf16> to vector<16x80xbf16>
    %c3 = arith.constant 3 : index
    %c0_20 = arith.constant 0 : index
    %c0_21 = arith.constant 0 : index
    %21 = vector.load %arg2[%c3, %c0_20, %c0_21] : memref<9x16x16xbf16, #tpu.memory_space<vmem>>, vector<1x16x16xbf16>
    %22 = vector.shape_cast %21 : vector<1x16x16xbf16> to vector<16x16xbf16>
    %cst_22 = arith.constant dense<0.000000e+00> : vector<16x80xf32>
    %23 = tpu.matmul %22, %20, %cst_22 {dimension_numbers = #tpu.dot_dimension_numbers<[1], [0], [0], [1], [0, 0, 1, 1], [], []>} : vector<16x16xbf16>, vector<16x80xbf16>, vector<16x80xf32> -> vector<16x80xf32>
    %24 = arith.addf %18, %23 : vector<16x80xf32>
    %c0_23 = arith.constant 0 : index
    %c0_24 = arith.constant 0 : index
    %c11 = arith.constant 11 : index
    %25 = vector.load %arg1[%c0_23, %c0_24, %c11] : memref<1x16x110xbf16, #tpu.memory_space<vmem>>, vector<1x16x80xbf16>
    %26 = vector.shape_cast %25 : vector<1x16x80xbf16> to vector<16x80xbf16>
    %c4 = arith.constant 4 : index
    %c0_25 = arith.constant 0 : index
    %c0_26 = arith.constant 0 : index
    %27 = vector.load %arg2[%c4, %c0_25, %c0_26] : memref<9x16x16xbf16, #tpu.memory_space<vmem>>, vector<1x16x16xbf16>
    %28 = vector.shape_cast %27 : vector<1x16x16xbf16> to vector<16x16xbf16>
    %cst_27 = arith.constant dense<0.000000e+00> : vector<16x80xf32>
    %29 = tpu.matmul %28, %26, %cst_27 {dimension_numbers = #tpu.dot_dimension_numbers<[1], [0], [0], [1], [0, 0, 1, 1], [], []>} : vector<16x16xbf16>, vector<16x80xbf16>, vector<16x80xf32> -> vector<16x80xf32>
    %30 = arith.addf %24, %29 : vector<16x80xf32>
    %c0_28 = arith.constant 0 : index
    %c0_29 = arith.constant 0 : index
    %c12 = arith.constant 12 : index
    %31 = vector.load %arg1[%c0_28, %c0_29, %c12] : memref<1x16x110xbf16, #tpu.memory_space<vmem>>, vector<1x16x80xbf16>
    %32 = vector.shape_cast %31 : vector<1x16x80xbf16> to vector<16x80xbf16>
    %c5 = arith.constant 5 : index
    %c0_30 = arith.constant 0 : index
    %c0_31 = arith.constant 0 : index
    %33 = vector.load %arg2[%c5, %c0_30, %c0_31] : memref<9x16x16xbf16, #tpu.memory_space<vmem>>, vector<1x16x16xbf16>
    %34 = vector.shape_cast %33 : vector<1x16x16xbf16> to vector<16x16xbf16>
    %cst_32 = arith.constant dense<0.000000e+00> : vector<16x80xf32>
    %35 = tpu.matmul %34, %32, %cst_32 {dimension_numbers = #tpu.dot_dimension_numbers<[1], [0], [0], [1], [0, 0, 1, 1], [], []>} : vector<16x16xbf16>, vector<16x80xbf16>, vector<16x80xf32> -> vector<16x80xf32>
    %36 = arith.addf %30, %35 : vector<16x80xf32>
    %c0_33 = arith.constant 0 : index
    %c0_34 = arith.constant 0 : index
    %c20 = arith.constant 20 : index
    %37 = vector.load %arg1[%c0_33, %c0_34, %c20] : memref<1x16x110xbf16, #tpu.memory_space<vmem>>, vector<1x16x80xbf16>
    %38 = vector.shape_cast %37 : vector<1x16x80xbf16> to vector<16x80xbf16>
    %c6 = arith.constant 6 : index
    %c0_35 = arith.constant 0 : index
    %c0_36 = arith.constant 0 : index
    %39 = vector.load %arg2[%c6, %c0_35, %c0_36] : memref<9x16x16xbf16, #tpu.memory_space<vmem>>, vector<1x16x16xbf16>
    %40 = vector.shape_cast %39 : vector<1x16x16xbf16> to vector<16x16xbf16>
    %cst_37 = arith.constant dense<0.000000e+00> : vector<16x80xf32>
    %41 = tpu.matmul %40, %38, %cst_37 {dimension_numbers = #tpu.dot_dimension_numbers<[1], [0], [0], [1], [0, 0, 1, 1], [], []>} : vector<16x16xbf16>, vector<16x80xbf16>, vector<16x80xf32> -> vector<16x80xf32>
    %42 = arith.addf %36, %41 : vector<16x80xf32>
    %c0_38 = arith.constant 0 : index
    %c0_39 = arith.constant 0 : index
    %c21 = arith.constant 21 : index
    %43 = vector.load %arg1[%c0_38, %c0_39, %c21] : memref<1x16x110xbf16, #tpu.memory_space<vmem>>, vector<1x16x80xbf16>
    %44 = vector.shape_cast %43 : vector<1x16x80xbf16> to vector<16x80xbf16>
    %c7 = arith.constant 7 : index
    %c0_40 = arith.constant 0 : index
    %c0_41 = arith.constant 0 : index
    %45 = vector.load %arg2[%c7, %c0_40, %c0_41] : memref<9x16x16xbf16, #tpu.memory_space<vmem>>, vector<1x16x16xbf16>
    %46 = vector.shape_cast %45 : vector<1x16x16xbf16> to vector<16x16xbf16>
    %cst_42 = arith.constant dense<0.000000e+00> : vector<16x80xf32>
    %47 = tpu.matmul %46, %44, %cst_42 {dimension_numbers = #tpu.dot_dimension_numbers<[1], [0], [0], [1], [0, 0, 1, 1], [], []>} : vector<16x16xbf16>, vector<16x80xbf16>, vector<16x80xf32> -> vector<16x80xf32>
    %48 = arith.addf %42, %47 : vector<16x80xf32>
    %c0_43 = arith.constant 0 : index
    %c0_44 = arith.constant 0 : index
    %c22 = arith.constant 22 : index
    %49 = vector.load %arg1[%c0_43, %c0_44, %c22] : memref<1x16x110xbf16, #tpu.memory_space<vmem>>, vector<1x16x80xbf16>
    %50 = vector.shape_cast %49 : vector<1x16x80xbf16> to vector<16x80xbf16>
    %c8 = arith.constant 8 : index
    %c0_45 = arith.constant 0 : index
    %c0_46 = arith.constant 0 : index
    %51 = vector.load %arg2[%c8, %c0_45, %c0_46] : memref<9x16x16xbf16, #tpu.memory_space<vmem>>, vector<1x16x16xbf16>
    %52 = vector.shape_cast %51 : vector<1x16x16xbf16> to vector<16x16xbf16>
    %cst_47 = arith.constant dense<0.000000e+00> : vector<16x80xf32>
    %53 = tpu.matmul %52, %50, %cst_47 {dimension_numbers = #tpu.dot_dimension_numbers<[1], [0], [0], [1], [0, 0, 1, 1], [], []>} : vector<16x16xbf16>, vector<16x80xbf16>, vector<16x80xf32> -> vector<16x80xf32>
    %54 = arith.addf %48, %53 : vector<16x80xf32>
    %c0_48 = arith.constant 0 : index
    %c0_49 = arith.constant 0 : index
    %55 = vector.load %arg3[%c0_48, %c0_49] : memref<16x1xf32, #tpu.memory_space<vmem>>, vector<16x1xf32>
    %56 = vector.broadcast %55 : vector<16x1xf32> to vector<16x80xf32>
    %57 = arith.addf %54, %56 : vector<16x80xf32>
    %cst_50 = arith.constant 0.000000e+00 : f32
    %58 = vector.broadcast %cst_50 : f32 to vector<16x80xf32>
    %59 = arith.maximumf %57, %58 : vector<16x80xf32>
    %60 = arith.truncf %59 : vector<16x80xf32> to vector<16x80xbf16>
    %c0_51 = arith.constant 0 : index
    %c0_52 = arith.constant 0 : index
    %c0_53 = arith.constant 0 : index
    %61 = vector.load %arg4[%c0_51, %c0_52, %c0_53] : memref<1x16x80xbf16, #tpu.memory_space<vmem>>, vector<1x16x80xbf16>
    %62 = vector.shape_cast %61 : vector<1x16x80xbf16> to vector<16x80xbf16>
    %63 = vector.shape_cast %60 : vector<16x80xbf16> to vector<1x16x80xbf16>
    tpu.vector_store %arg4[%c0_51, %c0_52, %c0_53], %63 {strides = array<i32>} : memref<1x16x80xbf16, #tpu.memory_space<vmem>>, vector<1x16x80xbf16>,
    return
  }
  func.func @transform_0(%arg0: i32) -> (i32, i32, i32) {
    %c0_i32 = arith.constant 0 : i32
    %c0_i32_0 = arith.constant 0 : i32
    %c0_i32_1 = arith.constant 0 : i32
    return %arg0, %c0_i32, %c0_i32_0 : i32, i32, i32
  }
  func.func @transform_1(%arg0: i32) -> (i32, i32, i32) {
    %c0_i32 = arith.constant 0 : i32
    %c0_i32_0 = arith.constant 0 : i32
    %c0_i32_1 = arith.constant 0 : i32
    %c0_i32_2 = arith.constant 0 : i32
    return %c0_i32, %c0_i32_0, %c0_i32_1 : i32, i32, i32
  }
  func.func @transform_2(%arg0: i32) -> (i32, i32) {
    %c0_i32 = arith.constant 0 : i32
    %c0_i32_0 = arith.constant 0 : i32
    %c0_i32_1 = arith.constant 0 : i32
    return %c0_i32, %c0_i32_0 : i32, i32
  }
  func.func @transform_3(%arg0: i32) -> (i32, i32, i32) {
    %c0_i32 = arith.constant 0 : i32
    %c0_i32_0 = arith.constant 0 : i32
    %c0_i32_1 = arith.constant 0 : i32
    return %arg0, %c0_i32, %c0_i32_0 : i32, i32, i32
  }
}

module attributes {stable_mosaic.version = 11 : i64} {
  func.func @_conv_kernel(%arg0: i32, %arg1: memref<1x64x42xbf16, #tpu.memory_space<vmem>>, %arg2: memref<25x32x16xbf16, #tpu.memory_space<vmem>>, %arg3: memref<32x1xf32, #tpu.memory_space<vmem>>, %arg4: memref<1x32x24xbf16, #tpu.memory_space<vmem>>) attributes {dimension_semantics = [#tpu.dimension_semantics<parallel>], iteration_bounds = array<i64: 2>, scalar_prefetch = 0 : i64, scratch_operands = 0 : i64, tpu.core_type = #tpu.core_type<tc>, window_params = [{transform_indices = @transform_0, window_bounds = array<i64: 1, 64, 42>}, {pipeline_mode = #tpu.pipeline_mode<synchronous>, transform_indices = @transform_1, window_bounds = array<i64: 25, 32, 16>}, {pipeline_mode = #tpu.pipeline_mode<synchronous>, transform_indices = @transform_2, window_bounds = array<i64: 32, 1>}, {transform_indices = @transform_3, window_bounds = array<i64: 1, 32, 24>}]} {
    %cst = arith.constant 0.000000e+00 : f32
    %0 = vector.broadcast %cst : f32 to vector<32x24xf32>
    %c0 = arith.constant 0 : index
    %c0_0 = arith.constant 0 : index
    %c0_1 = arith.constant 0 : index
    %1 = vector.load %arg1[%c0, %c0_0, %c0_1] : memref<1x64x42xbf16, #tpu.memory_space<vmem>>, vector<1x16x24xbf16>
    %2 = vector.shape_cast %1 : vector<1x16x24xbf16> to vector<16x24xbf16>
    %c0_2 = arith.constant 0 : index
    %c0_3 = arith.constant 0 : index
    %c0_4 = arith.constant 0 : index
    %3 = vector.load %arg2[%c0_2, %c0_3, %c0_4] : memref<25x32x16xbf16, #tpu.memory_space<vmem>>, vector<1x32x16xbf16>
    %4 = vector.shape_cast %3 : vector<1x32x16xbf16> to vector<32x16xbf16>
    %cst_5 = arith.constant dense<0.000000e+00> : vector<32x24xf32>
    %5 = tpu.matmul %4, %2, %cst_5 {dimension_numbers = #tpu.dot_dimension_numbers<[1], [0], [0], [1], [0, 0, 1, 1], [], []>} : vector<32x16xbf16>, vector<16x24xbf16>, vector<32x24xf32> -> vector<32x24xf32>
    %6 = arith.addf %0, %5 : vector<32x24xf32>
    %c0_6 = arith.constant 0 : index
    %c16 = arith.constant 16 : index
    %c0_7 = arith.constant 0 : index
    %7 = vector.load %arg1[%c0_6, %c16, %c0_7] : memref<1x64x42xbf16, #tpu.memory_space<vmem>>, vector<1x16x24xbf16>
    %8 = vector.shape_cast %7 : vector<1x16x24xbf16> to vector<16x24xbf16>
    %c1 = arith.constant 1 : index
    %c0_8 = arith.constant 0 : index
    %c0_9 = arith.constant 0 : index
    %9 = vector.load %arg2[%c1, %c0_8, %c0_9] : memref<25x32x16xbf16, #tpu.memory_space<vmem>>, vector<1x32x16xbf16>
    %10 = vector.shape_cast %9 : vector<1x32x16xbf16> to vector<32x16xbf16>
    %cst_10 = arith.constant dense<0.000000e+00> : vector<32x24xf32>
    %11 = tpu.matmul %10, %8, %cst_10 {dimension_numbers = #tpu.dot_dimension_numbers<[1], [0], [0], [1], [0, 0, 1, 1], [], []>} : vector<32x16xbf16>, vector<16x24xbf16>, vector<32x24xf32> -> vector<32x24xf32>
    %12 = arith.addf %6, %11 : vector<32x24xf32>
    %c0_11 = arith.constant 0 : index
    %c0_12 = arith.constant 0 : index
    %c1_13 = arith.constant 1 : index
    %13 = vector.load %arg1[%c0_11, %c0_12, %c1_13] : memref<1x64x42xbf16, #tpu.memory_space<vmem>>, vector<1x16x24xbf16>
    %14 = vector.shape_cast %13 : vector<1x16x24xbf16> to vector<16x24xbf16>
    %c2 = arith.constant 2 : index
    %c0_14 = arith.constant 0 : index
    %c0_15 = arith.constant 0 : index
    %15 = vector.load %arg2[%c2, %c0_14, %c0_15] : memref<25x32x16xbf16, #tpu.memory_space<vmem>>, vector<1x32x16xbf16>
    %16 = vector.shape_cast %15 : vector<1x32x16xbf16> to vector<32x16xbf16>
    %cst_16 = arith.constant dense<0.000000e+00> : vector<32x24xf32>
    %17 = tpu.matmul %16, %14, %cst_16 {dimension_numbers = #tpu.dot_dimension_numbers<[1], [0], [0], [1], [0, 0, 1, 1], [], []>} : vector<32x16xbf16>, vector<16x24xbf16>, vector<32x24xf32> -> vector<32x24xf32>
    %18 = arith.addf %12, %17 : vector<32x24xf32>
    %c0_17 = arith.constant 0 : index
    %c16_18 = arith.constant 16 : index
    %c1_19 = arith.constant 1 : index
    %19 = vector.load %arg1[%c0_17, %c16_18, %c1_19] : memref<1x64x42xbf16, #tpu.memory_space<vmem>>, vector<1x16x24xbf16>
    %20 = vector.shape_cast %19 : vector<1x16x24xbf16> to vector<16x24xbf16>
    %c3 = arith.constant 3 : index
    %c0_20 = arith.constant 0 : index
    %c0_21 = arith.constant 0 : index
    %21 = vector.load %arg2[%c3, %c0_20, %c0_21] : memref<25x32x16xbf16, #tpu.memory_space<vmem>>, vector<1x32x16xbf16>
    %22 = vector.shape_cast %21 : vector<1x32x16xbf16> to vector<32x16xbf16>
    %cst_22 = arith.constant dense<0.000000e+00> : vector<32x24xf32>
    %23 = tpu.matmul %22, %20, %cst_22 {dimension_numbers = #tpu.dot_dimension_numbers<[1], [0], [0], [1], [0, 0, 1, 1], [], []>} : vector<32x16xbf16>, vector<16x24xbf16>, vector<32x24xf32> -> vector<32x24xf32>
    %24 = arith.addf %18, %23 : vector<32x24xf32>
    %c0_23 = arith.constant 0 : index
    %c0_24 = arith.constant 0 : index
    %c2_25 = arith.constant 2 : index
    %25 = vector.load %arg1[%c0_23, %c0_24, %c2_25] : memref<1x64x42xbf16, #tpu.memory_space<vmem>>, vector<1x16x24xbf16>
    %26 = vector.shape_cast %25 : vector<1x16x24xbf16> to vector<16x24xbf16>
    %c4 = arith.constant 4 : index
    %c0_26 = arith.constant 0 : index
    %c0_27 = arith.constant 0 : index
    %27 = vector.load %arg2[%c4, %c0_26, %c0_27] : memref<25x32x16xbf16, #tpu.memory_space<vmem>>, vector<1x32x16xbf16>
    %28 = vector.shape_cast %27 : vector<1x32x16xbf16> to vector<32x16xbf16>
    %cst_28 = arith.constant dense<0.000000e+00> : vector<32x24xf32>
    %29 = tpu.matmul %28, %26, %cst_28 {dimension_numbers = #tpu.dot_dimension_numbers<[1], [0], [0], [1], [0, 0, 1, 1], [], []>} : vector<32x16xbf16>, vector<16x24xbf16>, vector<32x24xf32> -> vector<32x24xf32>
    %30 = arith.addf %24, %29 : vector<32x24xf32>
    %c0_29 = arith.constant 0 : index
    %c32 = arith.constant 32 : index
    %c0_30 = arith.constant 0 : index
    %31 = vector.load %arg1[%c0_29, %c32, %c0_30] : memref<1x64x42xbf16, #tpu.memory_space<vmem>>, vector<1x16x24xbf16>
    %32 = vector.shape_cast %31 : vector<1x16x24xbf16> to vector<16x24xbf16>
    %c5 = arith.constant 5 : index
    %c0_31 = arith.constant 0 : index
    %c0_32 = arith.constant 0 : index
    %33 = vector.load %arg2[%c5, %c0_31, %c0_32] : memref<25x32x16xbf16, #tpu.memory_space<vmem>>, vector<1x32x16xbf16>
    %34 = vector.shape_cast %33 : vector<1x32x16xbf16> to vector<32x16xbf16>
    %cst_33 = arith.constant dense<0.000000e+00> : vector<32x24xf32>
    %35 = tpu.matmul %34, %32, %cst_33 {dimension_numbers = #tpu.dot_dimension_numbers<[1], [0], [0], [1], [0, 0, 1, 1], [], []>} : vector<32x16xbf16>, vector<16x24xbf16>, vector<32x24xf32> -> vector<32x24xf32>
    %36 = arith.addf %30, %35 : vector<32x24xf32>
    %c0_34 = arith.constant 0 : index
    %c48 = arith.constant 48 : index
    %c0_35 = arith.constant 0 : index
    %37 = vector.load %arg1[%c0_34, %c48, %c0_35] : memref<1x64x42xbf16, #tpu.memory_space<vmem>>, vector<1x16x24xbf16>
    %38 = vector.shape_cast %37 : vector<1x16x24xbf16> to vector<16x24xbf16>
    %c6 = arith.constant 6 : index
    %c0_36 = arith.constant 0 : index
    %c0_37 = arith.constant 0 : index
    %39 = vector.load %arg2[%c6, %c0_36, %c0_37] : memref<25x32x16xbf16, #tpu.memory_space<vmem>>, vector<1x32x16xbf16>
    %40 = vector.shape_cast %39 : vector<1x32x16xbf16> to vector<32x16xbf16>
    %cst_38 = arith.constant dense<0.000000e+00> : vector<32x24xf32>
    %41 = tpu.matmul %40, %38, %cst_38 {dimension_numbers = #tpu.dot_dimension_numbers<[1], [0], [0], [1], [0, 0, 1, 1], [], []>} : vector<32x16xbf16>, vector<16x24xbf16>, vector<32x24xf32> -> vector<32x24xf32>
    %42 = arith.addf %36, %41 : vector<32x24xf32>
    %c0_39 = arith.constant 0 : index
    %c32_40 = arith.constant 32 : index
    %c1_41 = arith.constant 1 : index
    %43 = vector.load %arg1[%c0_39, %c32_40, %c1_41] : memref<1x64x42xbf16, #tpu.memory_space<vmem>>, vector<1x16x24xbf16>
    %44 = vector.shape_cast %43 : vector<1x16x24xbf16> to vector<16x24xbf16>
    %c7 = arith.constant 7 : index
    %c0_42 = arith.constant 0 : index
    %c0_43 = arith.constant 0 : index
    %45 = vector.load %arg2[%c7, %c0_42, %c0_43] : memref<25x32x16xbf16, #tpu.memory_space<vmem>>, vector<1x32x16xbf16>
    %46 = vector.shape_cast %45 : vector<1x32x16xbf16> to vector<32x16xbf16>
    %cst_44 = arith.constant dense<0.000000e+00> : vector<32x24xf32>
    %47 = tpu.matmul %46, %44, %cst_44 {dimension_numbers = #tpu.dot_dimension_numbers<[1], [0], [0], [1], [0, 0, 1, 1], [], []>} : vector<32x16xbf16>, vector<16x24xbf16>, vector<32x24xf32> -> vector<32x24xf32>
    %48 = arith.addf %42, %47 : vector<32x24xf32>
    %c0_45 = arith.constant 0 : index
    %c48_46 = arith.constant 48 : index
    %c1_47 = arith.constant 1 : index
    %49 = vector.load %arg1[%c0_45, %c48_46, %c1_47] : memref<1x64x42xbf16, #tpu.memory_space<vmem>>, vector<1x16x24xbf16>
    %50 = vector.shape_cast %49 : vector<1x16x24xbf16> to vector<16x24xbf16>
    %c8 = arith.constant 8 : index
    %c0_48 = arith.constant 0 : index
    %c0_49 = arith.constant 0 : index
    %51 = vector.load %arg2[%c8, %c0_48, %c0_49] : memref<25x32x16xbf16, #tpu.memory_space<vmem>>, vector<1x32x16xbf16>
    %52 = vector.shape_cast %51 : vector<1x32x16xbf16> to vector<32x16xbf16>
    %cst_50 = arith.constant dense<0.000000e+00> : vector<32x24xf32>
    %53 = tpu.matmul %52, %50, %cst_50 {dimension_numbers = #tpu.dot_dimension_numbers<[1], [0], [0], [1], [0, 0, 1, 1], [], []>} : vector<32x16xbf16>, vector<16x24xbf16>, vector<32x24xf32> -> vector<32x24xf32>
    %54 = arith.addf %48, %53 : vector<32x24xf32>
    %c0_51 = arith.constant 0 : index
    %c32_52 = arith.constant 32 : index
    %c2_53 = arith.constant 2 : index
    %55 = vector.load %arg1[%c0_51, %c32_52, %c2_53] : memref<1x64x42xbf16, #tpu.memory_space<vmem>>, vector<1x16x24xbf16>
    %56 = vector.shape_cast %55 : vector<1x16x24xbf16> to vector<16x24xbf16>
    %c9 = arith.constant 9 : index
    %c0_54 = arith.constant 0 : index
    %c0_55 = arith.constant 0 : index
    %57 = vector.load %arg2[%c9, %c0_54, %c0_55] : memref<25x32x16xbf16, #tpu.memory_space<vmem>>, vector<1x32x16xbf16>
    %58 = vector.shape_cast %57 : vector<1x32x16xbf16> to vector<32x16xbf16>
    %cst_56 = arith.constant dense<0.000000e+00> : vector<32x24xf32>
    %59 = tpu.matmul %58, %56, %cst_56 {dimension_numbers = #tpu.dot_dimension_numbers<[1], [0], [0], [1], [0, 0, 1, 1], [], []>} : vector<32x16xbf16>, vector<16x24xbf16>, vector<32x24xf32> -> vector<32x24xf32>
    %60 = arith.addf %54, %59 : vector<32x24xf32>
    %c0_57 = arith.constant 0 : index
    %c0_58 = arith.constant 0 : index
    %c6_59 = arith.constant 6 : index
    %61 = vector.load %arg1[%c0_57, %c0_58, %c6_59] : memref<1x64x42xbf16, #tpu.memory_space<vmem>>, vector<1x16x24xbf16>
    %62 = vector.shape_cast %61 : vector<1x16x24xbf16> to vector<16x24xbf16>
    %c10 = arith.constant 10 : index
    %c0_60 = arith.constant 0 : index
    %c0_61 = arith.constant 0 : index
    %63 = vector.load %arg2[%c10, %c0_60, %c0_61] : memref<25x32x16xbf16, #tpu.memory_space<vmem>>, vector<1x32x16xbf16>
    %64 = vector.shape_cast %63 : vector<1x32x16xbf16> to vector<32x16xbf16>
    %cst_62 = arith.constant dense<0.000000e+00> : vector<32x24xf32>
    %65 = tpu.matmul %64, %62, %cst_62 {dimension_numbers = #tpu.dot_dimension_numbers<[1], [0], [0], [1], [0, 0, 1, 1], [], []>} : vector<32x16xbf16>, vector<16x24xbf16>, vector<32x24xf32> -> vector<32x24xf32>
    %66 = arith.addf %60, %65 : vector<32x24xf32>
    %c0_63 = arith.constant 0 : index
    %c16_64 = arith.constant 16 : index
    %c6_65 = arith.constant 6 : index
    %67 = vector.load %arg1[%c0_63, %c16_64, %c6_65] : memref<1x64x42xbf16, #tpu.memory_space<vmem>>, vector<1x16x24xbf16>
    %68 = vector.shape_cast %67 : vector<1x16x24xbf16> to vector<16x24xbf16>
    %c11 = arith.constant 11 : index
    %c0_66 = arith.constant 0 : index
    %c0_67 = arith.constant 0 : index
    %69 = vector.load %arg2[%c11, %c0_66, %c0_67] : memref<25x32x16xbf16, #tpu.memory_space<vmem>>, vector<1x32x16xbf16>
    %70 = vector.shape_cast %69 : vector<1x32x16xbf16> to vector<32x16xbf16>
    %cst_68 = arith.constant dense<0.000000e+00> : vector<32x24xf32>
    %71 = tpu.matmul %70, %68, %cst_68 {dimension_numbers = #tpu.dot_dimension_numbers<[1], [0], [0], [1], [0, 0, 1, 1], [], []>} : vector<32x16xbf16>, vector<16x24xbf16>, vector<32x24xf32> -> vector<32x24xf32>
    %72 = arith.addf %66, %71 : vector<32x24xf32>
    %c0_69 = arith.constant 0 : index
    %c0_70 = arith.constant 0 : index
    %c7_71 = arith.constant 7 : index
    %73 = vector.load %arg1[%c0_69, %c0_70, %c7_71] : memref<1x64x42xbf16, #tpu.memory_space<vmem>>, vector<1x16x24xbf16>
    %74 = vector.shape_cast %73 : vector<1x16x24xbf16> to vector<16x24xbf16>
    %c12 = arith.constant 12 : index
    %c0_72 = arith.constant 0 : index
    %c0_73 = arith.constant 0 : index
    %75 = vector.load %arg2[%c12, %c0_72, %c0_73] : memref<25x32x16xbf16, #tpu.memory_space<vmem>>, vector<1x32x16xbf16>
    %76 = vector.shape_cast %75 : vector<1x32x16xbf16> to vector<32x16xbf16>
    %cst_74 = arith.constant dense<0.000000e+00> : vector<32x24xf32>
    %77 = tpu.matmul %76, %74, %cst_74 {dimension_numbers = #tpu.dot_dimension_numbers<[1], [0], [0], [1], [0, 0, 1, 1], [], []>} : vector<32x16xbf16>, vector<16x24xbf16>, vector<32x24xf32> -> vector<32x24xf32>
    %78 = arith.addf %72, %77 : vector<32x24xf32>
    %c0_75 = arith.constant 0 : index
    %c16_76 = arith.constant 16 : index
    %c7_77 = arith.constant 7 : index
    %79 = vector.load %arg1[%c0_75, %c16_76, %c7_77] : memref<1x64x42xbf16, #tpu.memory_space<vmem>>, vector<1x16x24xbf16>
    %80 = vector.shape_cast %79 : vector<1x16x24xbf16> to vector<16x24xbf16>
    %c13 = arith.constant 13 : index
    %c0_78 = arith.constant 0 : index
    %c0_79 = arith.constant 0 : index
    %81 = vector.load %arg2[%c13, %c0_78, %c0_79] : memref<25x32x16xbf16, #tpu.memory_space<vmem>>, vector<1x32x16xbf16>
    %82 = vector.shape_cast %81 : vector<1x32x16xbf16> to vector<32x16xbf16>
    %cst_80 = arith.constant dense<0.000000e+00> : vector<32x24xf32>
    %83 = tpu.matmul %82, %80, %cst_80 {dimension_numbers = #tpu.dot_dimension_numbers<[1], [0], [0], [1], [0, 0, 1, 1], [], []>} : vector<32x16xbf16>, vector<16x24xbf16>, vector<32x24xf32> -> vector<32x24xf32>
    %84 = arith.addf %78, %83 : vector<32x24xf32>
    %c0_81 = arith.constant 0 : index
    %c0_82 = arith.constant 0 : index
    %c8_83 = arith.constant 8 : index
    %85 = vector.load %arg1[%c0_81, %c0_82, %c8_83] : memref<1x64x42xbf16, #tpu.memory_space<vmem>>, vector<1x16x24xbf16>
    %86 = vector.shape_cast %85 : vector<1x16x24xbf16> to vector<16x24xbf16>
    %c14 = arith.constant 14 : index
    %c0_84 = arith.constant 0 : index
    %c0_85 = arith.constant 0 : index
    %87 = vector.load %arg2[%c14, %c0_84, %c0_85] : memref<25x32x16xbf16, #tpu.memory_space<vmem>>, vector<1x32x16xbf16>
    %88 = vector.shape_cast %87 : vector<1x32x16xbf16> to vector<32x16xbf16>
    %cst_86 = arith.constant dense<0.000000e+00> : vector<32x24xf32>
    %89 = tpu.matmul %88, %86, %cst_86 {dimension_numbers = #tpu.dot_dimension_numbers<[1], [0], [0], [1], [0, 0, 1, 1], [], []>} : vector<32x16xbf16>, vector<16x24xbf16>, vector<32x24xf32> -> vector<32x24xf32>
    %90 = arith.addf %84, %89 : vector<32x24xf32>
    %c0_87 = arith.constant 0 : index
    %c32_88 = arith.constant 32 : index
    %c6_89 = arith.constant 6 : index
    %91 = vector.load %arg1[%c0_87, %c32_88, %c6_89] : memref<1x64x42xbf16, #tpu.memory_space<vmem>>, vector<1x16x24xbf16>
    %92 = vector.shape_cast %91 : vector<1x16x24xbf16> to vector<16x24xbf16>
    %c15 = arith.constant 15 : index
    %c0_90 = arith.constant 0 : index
    %c0_91 = arith.constant 0 : index
    %93 = vector.load %arg2[%c15, %c0_90, %c0_91] : memref<25x32x16xbf16, #tpu.memory_space<vmem>>, vector<1x32x16xbf16>
    %94 = vector.shape_cast %93 : vector<1x32x16xbf16> to vector<32x16xbf16>
    %cst_92 = arith.constant dense<0.000000e+00> : vector<32x24xf32>
    %95 = tpu.matmul %94, %92, %cst_92 {dimension_numbers = #tpu.dot_dimension_numbers<[1], [0], [0], [1], [0, 0, 1, 1], [], []>} : vector<32x16xbf16>, vector<16x24xbf16>, vector<32x24xf32> -> vector<32x24xf32>
    %96 = arith.addf %90, %95 : vector<32x24xf32>
    %c0_93 = arith.constant 0 : index
    %c48_94 = arith.constant 48 : index
    %c6_95 = arith.constant 6 : index
    %97 = vector.load %arg1[%c0_93, %c48_94, %c6_95] : memref<1x64x42xbf16, #tpu.memory_space<vmem>>, vector<1x16x24xbf16>
    %98 = vector.shape_cast %97 : vector<1x16x24xbf16> to vector<16x24xbf16>
    %c16_96 = arith.constant 16 : index
    %c0_97 = arith.constant 0 : index
    %c0_98 = arith.constant 0 : index
    %99 = vector.load %arg2[%c16_96, %c0_97, %c0_98] : memref<25x32x16xbf16, #tpu.memory_space<vmem>>, vector<1x32x16xbf16>
    %100 = vector.shape_cast %99 : vector<1x32x16xbf16> to vector<32x16xbf16>
    %cst_99 = arith.constant dense<0.000000e+00> : vector<32x24xf32>
    %101 = tpu.matmul %100, %98, %cst_99 {dimension_numbers = #tpu.dot_dimension_numbers<[1], [0], [0], [1], [0, 0, 1, 1], [], []>} : vector<32x16xbf16>, vector<16x24xbf16>, vector<32x24xf32> -> vector<32x24xf32>
    %102 = arith.addf %96, %101 : vector<32x24xf32>
    %c0_100 = arith.constant 0 : index
    %c32_101 = arith.constant 32 : index
    %c7_102 = arith.constant 7 : index
    %103 = vector.load %arg1[%c0_100, %c32_101, %c7_102] : memref<1x64x42xbf16, #tpu.memory_space<vmem>>, vector<1x16x24xbf16>
    %104 = vector.shape_cast %103 : vector<1x16x24xbf16> to vector<16x24xbf16>
    %c17 = arith.constant 17 : index
    %c0_103 = arith.constant 0 : index
    %c0_104 = arith.constant 0 : index
    %105 = vector.load %arg2[%c17, %c0_103, %c0_104] : memref<25x32x16xbf16, #tpu.memory_space<vmem>>, vector<1x32x16xbf16>
    %106 = vector.shape_cast %105 : vector<1x32x16xbf16> to vector<32x16xbf16>
    %cst_105 = arith.constant dense<0.000000e+00> : vector<32x24xf32>
    %107 = tpu.matmul %106, %104, %cst_105 {dimension_numbers = #tpu.dot_dimension_numbers<[1], [0], [0], [1], [0, 0, 1, 1], [], []>} : vector<32x16xbf16>, vector<16x24xbf16>, vector<32x24xf32> -> vector<32x24xf32>
    %108 = arith.addf %102, %107 : vector<32x24xf32>
    %c0_106 = arith.constant 0 : index
    %c48_107 = arith.constant 48 : index
    %c7_108 = arith.constant 7 : index
    %109 = vector.load %arg1[%c0_106, %c48_107, %c7_108] : memref<1x64x42xbf16, #tpu.memory_space<vmem>>, vector<1x16x24xbf16>
    %110 = vector.shape_cast %109 : vector<1x16x24xbf16> to vector<16x24xbf16>
    %c18 = arith.constant 18 : index
    %c0_109 = arith.constant 0 : index
    %c0_110 = arith.constant 0 : index
    %111 = vector.load %arg2[%c18, %c0_109, %c0_110] : memref<25x32x16xbf16, #tpu.memory_space<vmem>>, vector<1x32x16xbf16>
    %112 = vector.shape_cast %111 : vector<1x32x16xbf16> to vector<32x16xbf16>
    %cst_111 = arith.constant dense<0.000000e+00> : vector<32x24xf32>
    %113 = tpu.matmul %112, %110, %cst_111 {dimension_numbers = #tpu.dot_dimension_numbers<[1], [0], [0], [1], [0, 0, 1, 1], [], []>} : vector<32x16xbf16>, vector<16x24xbf16>, vector<32x24xf32> -> vector<32x24xf32>
    %114 = arith.addf %108, %113 : vector<32x24xf32>
    %c0_112 = arith.constant 0 : index
    %c32_113 = arith.constant 32 : index
    %c8_114 = arith.constant 8 : index
    %115 = vector.load %arg1[%c0_112, %c32_113, %c8_114] : memref<1x64x42xbf16, #tpu.memory_space<vmem>>, vector<1x16x24xbf16>
    %116 = vector.shape_cast %115 : vector<1x16x24xbf16> to vector<16x24xbf16>
    %c19 = arith.constant 19 : index
    %c0_115 = arith.constant 0 : index
    %c0_116 = arith.constant 0 : index
    %117 = vector.load %arg2[%c19, %c0_115, %c0_116] : memref<25x32x16xbf16, #tpu.memory_space<vmem>>, vector<1x32x16xbf16>
    %118 = vector.shape_cast %117 : vector<1x32x16xbf16> to vector<32x16xbf16>
    %cst_117 = arith.constant dense<0.000000e+00> : vector<32x24xf32>
    %119 = tpu.matmul %118, %116, %cst_117 {dimension_numbers = #tpu.dot_dimension_numbers<[1], [0], [0], [1], [0, 0, 1, 1], [], []>} : vector<32x16xbf16>, vector<16x24xbf16>, vector<32x24xf32> -> vector<32x24xf32>
    %120 = arith.addf %114, %119 : vector<32x24xf32>
    %c0_118 = arith.constant 0 : index
    %c0_119 = arith.constant 0 : index
    %c12_120 = arith.constant 12 : index
    %121 = vector.load %arg1[%c0_118, %c0_119, %c12_120] : memref<1x64x42xbf16, #tpu.memory_space<vmem>>, vector<1x16x24xbf16>
    %122 = vector.shape_cast %121 : vector<1x16x24xbf16> to vector<16x24xbf16>
    %c20 = arith.constant 20 : index
    %c0_121 = arith.constant 0 : index
    %c0_122 = arith.constant 0 : index
    %123 = vector.load %arg2[%c20, %c0_121, %c0_122] : memref<25x32x16xbf16, #tpu.memory_space<vmem>>, vector<1x32x16xbf16>
    %124 = vector.shape_cast %123 : vector<1x32x16xbf16> to vector<32x16xbf16>
    %cst_123 = arith.constant dense<0.000000e+00> : vector<32x24xf32>
    %125 = tpu.matmul %124, %122, %cst_123 {dimension_numbers = #tpu.dot_dimension_numbers<[1], [0], [0], [1], [0, 0, 1, 1], [], []>} : vector<32x16xbf16>, vector<16x24xbf16>, vector<32x24xf32> -> vector<32x24xf32>
    %126 = arith.addf %120, %125 : vector<32x24xf32>
    %c0_124 = arith.constant 0 : index
    %c16_125 = arith.constant 16 : index
    %c12_126 = arith.constant 12 : index
    %127 = vector.load %arg1[%c0_124, %c16_125, %c12_126] : memref<1x64x42xbf16, #tpu.memory_space<vmem>>, vector<1x16x24xbf16>
    %128 = vector.shape_cast %127 : vector<1x16x24xbf16> to vector<16x24xbf16>
    %c21 = arith.constant 21 : index
    %c0_127 = arith.constant 0 : index
    %c0_128 = arith.constant 0 : index
    %129 = vector.load %arg2[%c21, %c0_127, %c0_128] : memref<25x32x16xbf16, #tpu.memory_space<vmem>>, vector<1x32x16xbf16>
    %130 = vector.shape_cast %129 : vector<1x32x16xbf16> to vector<32x16xbf16>
    %cst_129 = arith.constant dense<0.000000e+00> : vector<32x24xf32>
    %131 = tpu.matmul %130, %128, %cst_129 {dimension_numbers = #tpu.dot_dimension_numbers<[1], [0], [0], [1], [0, 0, 1, 1], [], []>} : vector<32x16xbf16>, vector<16x24xbf16>, vector<32x24xf32> -> vector<32x24xf32>
    %132 = arith.addf %126, %131 : vector<32x24xf32>
    %c0_130 = arith.constant 0 : index
    %c0_131 = arith.constant 0 : index
    %c13_132 = arith.constant 13 : index
    %133 = vector.load %arg1[%c0_130, %c0_131, %c13_132] : memref<1x64x42xbf16, #tpu.memory_space<vmem>>, vector<1x16x24xbf16>
    %134 = vector.shape_cast %133 : vector<1x16x24xbf16> to vector<16x24xbf16>
    %c22 = arith.constant 22 : index
    %c0_133 = arith.constant 0 : index
    %c0_134 = arith.constant 0 : index
    %135 = vector.load %arg2[%c22, %c0_133, %c0_134] : memref<25x32x16xbf16, #tpu.memory_space<vmem>>, vector<1x32x16xbf16>
    %136 = vector.shape_cast %135 : vector<1x32x16xbf16> to vector<32x16xbf16>
    %cst_135 = arith.constant dense<0.000000e+00> : vector<32x24xf32>
    %137 = tpu.matmul %136, %134, %cst_135 {dimension_numbers = #tpu.dot_dimension_numbers<[1], [0], [0], [1], [0, 0, 1, 1], [], []>} : vector<32x16xbf16>, vector<16x24xbf16>, vector<32x24xf32> -> vector<32x24xf32>
    %138 = arith.addf %132, %137 : vector<32x24xf32>
    %c0_136 = arith.constant 0 : index
    %c16_137 = arith.constant 16 : index
    %c13_138 = arith.constant 13 : index
    %139 = vector.load %arg1[%c0_136, %c16_137, %c13_138] : memref<1x64x42xbf16, #tpu.memory_space<vmem>>, vector<1x16x24xbf16>
    %140 = vector.shape_cast %139 : vector<1x16x24xbf16> to vector<16x24xbf16>
    %c23 = arith.constant 23 : index
    %c0_139 = arith.constant 0 : index
    %c0_140 = arith.constant 0 : index
    %141 = vector.load %arg2[%c23, %c0_139, %c0_140] : memref<25x32x16xbf16, #tpu.memory_space<vmem>>, vector<1x32x16xbf16>
    %142 = vector.shape_cast %141 : vector<1x32x16xbf16> to vector<32x16xbf16>
    %cst_141 = arith.constant dense<0.000000e+00> : vector<32x24xf32>
    %143 = tpu.matmul %142, %140, %cst_141 {dimension_numbers = #tpu.dot_dimension_numbers<[1], [0], [0], [1], [0, 0, 1, 1], [], []>} : vector<32x16xbf16>, vector<16x24xbf16>, vector<32x24xf32> -> vector<32x24xf32>
    %144 = arith.addf %138, %143 : vector<32x24xf32>
    %c0_142 = arith.constant 0 : index
    %c0_143 = arith.constant 0 : index
    %c14_144 = arith.constant 14 : index
    %145 = vector.load %arg1[%c0_142, %c0_143, %c14_144] : memref<1x64x42xbf16, #tpu.memory_space<vmem>>, vector<1x16x24xbf16>
    %146 = vector.shape_cast %145 : vector<1x16x24xbf16> to vector<16x24xbf16>
    %c24 = arith.constant 24 : index
    %c0_145 = arith.constant 0 : index
    %c0_146 = arith.constant 0 : index
    %147 = vector.load %arg2[%c24, %c0_145, %c0_146] : memref<25x32x16xbf16, #tpu.memory_space<vmem>>, vector<1x32x16xbf16>
    %148 = vector.shape_cast %147 : vector<1x32x16xbf16> to vector<32x16xbf16>
    %cst_147 = arith.constant dense<0.000000e+00> : vector<32x24xf32>
    %149 = tpu.matmul %148, %146, %cst_147 {dimension_numbers = #tpu.dot_dimension_numbers<[1], [0], [0], [1], [0, 0, 1, 1], [], []>} : vector<32x16xbf16>, vector<16x24xbf16>, vector<32x24xf32> -> vector<32x24xf32>
    %150 = arith.addf %144, %149 : vector<32x24xf32>
    %c0_148 = arith.constant 0 : index
    %c0_149 = arith.constant 0 : index
    %151 = vector.load %arg3[%c0_148, %c0_149] : memref<32x1xf32, #tpu.memory_space<vmem>>, vector<32x1xf32>
    %152 = vector.broadcast %151 : vector<32x1xf32> to vector<32x24xf32>
    %153 = arith.addf %150, %152 : vector<32x24xf32>
    %cst_150 = arith.constant 0.000000e+00 : f32
    %154 = vector.broadcast %cst_150 : f32 to vector<32x24xf32>
    %155 = arith.maximumf %153, %154 : vector<32x24xf32>
    %156 = arith.truncf %155 : vector<32x24xf32> to vector<32x24xbf16>
    %c0_151 = arith.constant 0 : index
    %c0_152 = arith.constant 0 : index
    %c0_153 = arith.constant 0 : index
    %157 = vector.load %arg4[%c0_151, %c0_152, %c0_153] : memref<1x32x24xbf16, #tpu.memory_space<vmem>>, vector<1x32x24xbf16>
    %158 = vector.shape_cast %157 : vector<1x32x24xbf16> to vector<32x24xbf16>
    %159 = vector.shape_cast %156 : vector<32x24xbf16> to vector<1x32x24xbf16>
    tpu.vector_store %arg4[%c0_151, %c0_152, %c0_153], %159 {strides = array<i32>} : memref<1x32x24xbf16, #tpu.memory_space<vmem>>, vector<1x32x24xbf16>,
    return
  }
  func.func @transform_0(%arg0: i32) -> (i32, i32, i32) {
    %c0_i32 = arith.constant 0 : i32
    %c0_i32_0 = arith.constant 0 : i32
    %c0_i32_1 = arith.constant 0 : i32
    return %arg0, %c0_i32, %c0_i32_0 : i32, i32, i32
  }
  func.func @transform_1(%arg0: i32) -> (i32, i32, i32) {
    %c0_i32 = arith.constant 0 : i32
    %c0_i32_0 = arith.constant 0 : i32
    %c0_i32_1 = arith.constant 0 : i32
    %c0_i32_2 = arith.constant 0 : i32
    return %c0_i32, %c0_i32_0, %c0_i32_1 : i32, i32, i32
  }
  func.func @transform_2(%arg0: i32) -> (i32, i32) {
    %c0_i32 = arith.constant 0 : i32
    %c0_i32_0 = arith.constant 0 : i32
    %c0_i32_1 = arith.constant 0 : i32
    return %c0_i32, %c0_i32_0 : i32, i32
  }
  func.func @transform_3(%arg0: i32) -> (i32, i32, i32) {
    %c0_i32 = arith.constant 0 : i32
    %c0_i32_0 = arith.constant 0 : i32
    %c0_i32_1 = arith.constant 0 : i32
    return %arg0, %c0_i32, %c0_i32_0 : i32, i32, i32
  }
}

module attributes {stable_mosaic.version = 11 : i64} {
  func.func @_conv_kernel(%arg0: i32, %arg1: memref<1x32x42xbf16, #tpu.memory_space<vmem>>, %arg2: memref<9x32x32xbf16, #tpu.memory_space<vmem>>, %arg3: memref<32x1xf32, #tpu.memory_space<vmem>>, %arg4: memref<1x32x24xbf16, #tpu.memory_space<vmem>>) attributes {dimension_semantics = [#tpu.dimension_semantics<parallel>], iteration_bounds = array<i64: 2>, scalar_prefetch = 0 : i64, scratch_operands = 0 : i64, tpu.core_type = #tpu.core_type<tc>, window_params = [{transform_indices = @transform_0, window_bounds = array<i64: 1, 32, 42>}, {pipeline_mode = #tpu.pipeline_mode<synchronous>, transform_indices = @transform_1, window_bounds = array<i64: 9, 32, 32>}, {pipeline_mode = #tpu.pipeline_mode<synchronous>, transform_indices = @transform_2, window_bounds = array<i64: 32, 1>}, {transform_indices = @transform_3, window_bounds = array<i64: 1, 32, 24>}]} {
    %cst = arith.constant 0.000000e+00 : f32
    %0 = vector.broadcast %cst : f32 to vector<32x24xf32>
    %c0 = arith.constant 0 : index
    %c0_0 = arith.constant 0 : index
    %c0_1 = arith.constant 0 : index
    %1 = vector.load %arg1[%c0, %c0_0, %c0_1] : memref<1x32x42xbf16, #tpu.memory_space<vmem>>, vector<1x32x24xbf16>
    %2 = vector.shape_cast %1 : vector<1x32x24xbf16> to vector<32x24xbf16>
    %c0_2 = arith.constant 0 : index
    %c0_3 = arith.constant 0 : index
    %c0_4 = arith.constant 0 : index
    %3 = vector.load %arg2[%c0_2, %c0_3, %c0_4] : memref<9x32x32xbf16, #tpu.memory_space<vmem>>, vector<1x32x32xbf16>
    %4 = vector.shape_cast %3 : vector<1x32x32xbf16> to vector<32x32xbf16>
    %cst_5 = arith.constant dense<0.000000e+00> : vector<32x24xf32>
    %5 = tpu.matmul %4, %2, %cst_5 {dimension_numbers = #tpu.dot_dimension_numbers<[1], [0], [0], [1], [0, 0, 1, 1], [], []>} : vector<32x32xbf16>, vector<32x24xbf16>, vector<32x24xf32> -> vector<32x24xf32>
    %6 = arith.addf %0, %5 : vector<32x24xf32>
    %c0_6 = arith.constant 0 : index
    %c0_7 = arith.constant 0 : index
    %c1 = arith.constant 1 : index
    %7 = vector.load %arg1[%c0_6, %c0_7, %c1] : memref<1x32x42xbf16, #tpu.memory_space<vmem>>, vector<1x32x24xbf16>
    %8 = vector.shape_cast %7 : vector<1x32x24xbf16> to vector<32x24xbf16>
    %c1_8 = arith.constant 1 : index
    %c0_9 = arith.constant 0 : index
    %c0_10 = arith.constant 0 : index
    %9 = vector.load %arg2[%c1_8, %c0_9, %c0_10] : memref<9x32x32xbf16, #tpu.memory_space<vmem>>, vector<1x32x32xbf16>
    %10 = vector.shape_cast %9 : vector<1x32x32xbf16> to vector<32x32xbf16>
    %cst_11 = arith.constant dense<0.000000e+00> : vector<32x24xf32>
    %11 = tpu.matmul %10, %8, %cst_11 {dimension_numbers = #tpu.dot_dimension_numbers<[1], [0], [0], [1], [0, 0, 1, 1], [], []>} : vector<32x32xbf16>, vector<32x24xbf16>, vector<32x24xf32> -> vector<32x24xf32>
    %12 = arith.addf %6, %11 : vector<32x24xf32>
    %c0_12 = arith.constant 0 : index
    %c0_13 = arith.constant 0 : index
    %c2 = arith.constant 2 : index
    %13 = vector.load %arg1[%c0_12, %c0_13, %c2] : memref<1x32x42xbf16, #tpu.memory_space<vmem>>, vector<1x32x24xbf16>
    %14 = vector.shape_cast %13 : vector<1x32x24xbf16> to vector<32x24xbf16>
    %c2_14 = arith.constant 2 : index
    %c0_15 = arith.constant 0 : index
    %c0_16 = arith.constant 0 : index
    %15 = vector.load %arg2[%c2_14, %c0_15, %c0_16] : memref<9x32x32xbf16, #tpu.memory_space<vmem>>, vector<1x32x32xbf16>
    %16 = vector.shape_cast %15 : vector<1x32x32xbf16> to vector<32x32xbf16>
    %cst_17 = arith.constant dense<0.000000e+00> : vector<32x24xf32>
    %17 = tpu.matmul %16, %14, %cst_17 {dimension_numbers = #tpu.dot_dimension_numbers<[1], [0], [0], [1], [0, 0, 1, 1], [], []>} : vector<32x32xbf16>, vector<32x24xbf16>, vector<32x24xf32> -> vector<32x24xf32>
    %18 = arith.addf %12, %17 : vector<32x24xf32>
    %c0_18 = arith.constant 0 : index
    %c0_19 = arith.constant 0 : index
    %c6 = arith.constant 6 : index
    %19 = vector.load %arg1[%c0_18, %c0_19, %c6] : memref<1x32x42xbf16, #tpu.memory_space<vmem>>, vector<1x32x24xbf16>
    %20 = vector.shape_cast %19 : vector<1x32x24xbf16> to vector<32x24xbf16>
    %c3 = arith.constant 3 : index
    %c0_20 = arith.constant 0 : index
    %c0_21 = arith.constant 0 : index
    %21 = vector.load %arg2[%c3, %c0_20, %c0_21] : memref<9x32x32xbf16, #tpu.memory_space<vmem>>, vector<1x32x32xbf16>
    %22 = vector.shape_cast %21 : vector<1x32x32xbf16> to vector<32x32xbf16>
    %cst_22 = arith.constant dense<0.000000e+00> : vector<32x24xf32>
    %23 = tpu.matmul %22, %20, %cst_22 {dimension_numbers = #tpu.dot_dimension_numbers<[1], [0], [0], [1], [0, 0, 1, 1], [], []>} : vector<32x32xbf16>, vector<32x24xbf16>, vector<32x24xf32> -> vector<32x24xf32>
    %24 = arith.addf %18, %23 : vector<32x24xf32>
    %c0_23 = arith.constant 0 : index
    %c0_24 = arith.constant 0 : index
    %c7 = arith.constant 7 : index
    %25 = vector.load %arg1[%c0_23, %c0_24, %c7] : memref<1x32x42xbf16, #tpu.memory_space<vmem>>, vector<1x32x24xbf16>
    %26 = vector.shape_cast %25 : vector<1x32x24xbf16> to vector<32x24xbf16>
    %c4 = arith.constant 4 : index
    %c0_25 = arith.constant 0 : index
    %c0_26 = arith.constant 0 : index
    %27 = vector.load %arg2[%c4, %c0_25, %c0_26] : memref<9x32x32xbf16, #tpu.memory_space<vmem>>, vector<1x32x32xbf16>
    %28 = vector.shape_cast %27 : vector<1x32x32xbf16> to vector<32x32xbf16>
    %cst_27 = arith.constant dense<0.000000e+00> : vector<32x24xf32>
    %29 = tpu.matmul %28, %26, %cst_27 {dimension_numbers = #tpu.dot_dimension_numbers<[1], [0], [0], [1], [0, 0, 1, 1], [], []>} : vector<32x32xbf16>, vector<32x24xbf16>, vector<32x24xf32> -> vector<32x24xf32>
    %30 = arith.addf %24, %29 : vector<32x24xf32>
    %c0_28 = arith.constant 0 : index
    %c0_29 = arith.constant 0 : index
    %c8 = arith.constant 8 : index
    %31 = vector.load %arg1[%c0_28, %c0_29, %c8] : memref<1x32x42xbf16, #tpu.memory_space<vmem>>, vector<1x32x24xbf16>
    %32 = vector.shape_cast %31 : vector<1x32x24xbf16> to vector<32x24xbf16>
    %c5 = arith.constant 5 : index
    %c0_30 = arith.constant 0 : index
    %c0_31 = arith.constant 0 : index
    %33 = vector.load %arg2[%c5, %c0_30, %c0_31] : memref<9x32x32xbf16, #tpu.memory_space<vmem>>, vector<1x32x32xbf16>
    %34 = vector.shape_cast %33 : vector<1x32x32xbf16> to vector<32x32xbf16>
    %cst_32 = arith.constant dense<0.000000e+00> : vector<32x24xf32>
    %35 = tpu.matmul %34, %32, %cst_32 {dimension_numbers = #tpu.dot_dimension_numbers<[1], [0], [0], [1], [0, 0, 1, 1], [], []>} : vector<32x32xbf16>, vector<32x24xbf16>, vector<32x24xf32> -> vector<32x24xf32>
    %36 = arith.addf %30, %35 : vector<32x24xf32>
    %c0_33 = arith.constant 0 : index
    %c0_34 = arith.constant 0 : index
    %c12 = arith.constant 12 : index
    %37 = vector.load %arg1[%c0_33, %c0_34, %c12] : memref<1x32x42xbf16, #tpu.memory_space<vmem>>, vector<1x32x24xbf16>
    %38 = vector.shape_cast %37 : vector<1x32x24xbf16> to vector<32x24xbf16>
    %c6_35 = arith.constant 6 : index
    %c0_36 = arith.constant 0 : index
    %c0_37 = arith.constant 0 : index
    %39 = vector.load %arg2[%c6_35, %c0_36, %c0_37] : memref<9x32x32xbf16, #tpu.memory_space<vmem>>, vector<1x32x32xbf16>
    %40 = vector.shape_cast %39 : vector<1x32x32xbf16> to vector<32x32xbf16>
    %cst_38 = arith.constant dense<0.000000e+00> : vector<32x24xf32>
    %41 = tpu.matmul %40, %38, %cst_38 {dimension_numbers = #tpu.dot_dimension_numbers<[1], [0], [0], [1], [0, 0, 1, 1], [], []>} : vector<32x32xbf16>, vector<32x24xbf16>, vector<32x24xf32> -> vector<32x24xf32>
    %42 = arith.addf %36, %41 : vector<32x24xf32>
    %c0_39 = arith.constant 0 : index
    %c0_40 = arith.constant 0 : index
    %c13 = arith.constant 13 : index
    %43 = vector.load %arg1[%c0_39, %c0_40, %c13] : memref<1x32x42xbf16, #tpu.memory_space<vmem>>, vector<1x32x24xbf16>
    %44 = vector.shape_cast %43 : vector<1x32x24xbf16> to vector<32x24xbf16>
    %c7_41 = arith.constant 7 : index
    %c0_42 = arith.constant 0 : index
    %c0_43 = arith.constant 0 : index
    %45 = vector.load %arg2[%c7_41, %c0_42, %c0_43] : memref<9x32x32xbf16, #tpu.memory_space<vmem>>, vector<1x32x32xbf16>
    %46 = vector.shape_cast %45 : vector<1x32x32xbf16> to vector<32x32xbf16>
    %cst_44 = arith.constant dense<0.000000e+00> : vector<32x24xf32>
    %47 = tpu.matmul %46, %44, %cst_44 {dimension_numbers = #tpu.dot_dimension_numbers<[1], [0], [0], [1], [0, 0, 1, 1], [], []>} : vector<32x32xbf16>, vector<32x24xbf16>, vector<32x24xf32> -> vector<32x24xf32>
    %48 = arith.addf %42, %47 : vector<32x24xf32>
    %c0_45 = arith.constant 0 : index
    %c0_46 = arith.constant 0 : index
    %c14 = arith.constant 14 : index
    %49 = vector.load %arg1[%c0_45, %c0_46, %c14] : memref<1x32x42xbf16, #tpu.memory_space<vmem>>, vector<1x32x24xbf16>
    %50 = vector.shape_cast %49 : vector<1x32x24xbf16> to vector<32x24xbf16>
    %c8_47 = arith.constant 8 : index
    %c0_48 = arith.constant 0 : index
    %c0_49 = arith.constant 0 : index
    %51 = vector.load %arg2[%c8_47, %c0_48, %c0_49] : memref<9x32x32xbf16, #tpu.memory_space<vmem>>, vector<1x32x32xbf16>
    %52 = vector.shape_cast %51 : vector<1x32x32xbf16> to vector<32x32xbf16>
    %cst_50 = arith.constant dense<0.000000e+00> : vector<32x24xf32>
    %53 = tpu.matmul %52, %50, %cst_50 {dimension_numbers = #tpu.dot_dimension_numbers<[1], [0], [0], [1], [0, 0, 1, 1], [], []>} : vector<32x32xbf16>, vector<32x24xbf16>, vector<32x24xf32> -> vector<32x24xf32>
    %54 = arith.addf %48, %53 : vector<32x24xf32>
    %c0_51 = arith.constant 0 : index
    %c0_52 = arith.constant 0 : index
    %55 = vector.load %arg3[%c0_51, %c0_52] : memref<32x1xf32, #tpu.memory_space<vmem>>, vector<32x1xf32>
    %56 = vector.broadcast %55 : vector<32x1xf32> to vector<32x24xf32>
    %57 = arith.addf %54, %56 : vector<32x24xf32>
    %58 = arith.truncf %57 : vector<32x24xf32> to vector<32x24xbf16>
    %c0_53 = arith.constant 0 : index
    %c0_54 = arith.constant 0 : index
    %c0_55 = arith.constant 0 : index
    %59 = vector.load %arg4[%c0_53, %c0_54, %c0_55] : memref<1x32x24xbf16, #tpu.memory_space<vmem>>, vector<1x32x24xbf16>
    %60 = vector.shape_cast %59 : vector<1x32x24xbf16> to vector<32x24xbf16>
    %61 = vector.shape_cast %58 : vector<32x24xbf16> to vector<1x32x24xbf16>
    tpu.vector_store %arg4[%c0_53, %c0_54, %c0_55], %61 {strides = array<i32>} : memref<1x32x24xbf16, #tpu.memory_space<vmem>>, vector<1x32x24xbf16>,
    return
  }
  func.func @transform_0(%arg0: i32) -> (i32, i32, i32) {
    %c0_i32 = arith.constant 0 : i32
    %c0_i32_0 = arith.constant 0 : i32
    %c0_i32_1 = arith.constant 0 : i32
    return %arg0, %c0_i32, %c0_i32_0 : i32, i32, i32
  }
  func.func @transform_1(%arg0: i32) -> (i32, i32, i32) {
    %c0_i32 = arith.constant 0 : i32
    %c0_i32_0 = arith.constant 0 : i32
    %c0_i32_1 = arith.constant 0 : i32
    %c0_i32_2 = arith.constant 0 : i32
    return %c0_i32, %c0_i32_0, %c0_i32_1 : i32, i32, i32
  }
  func.func @transform_2(%arg0: i32) -> (i32, i32) {
    %c0_i32 = arith.constant 0 : i32
    %c0_i32_0 = arith.constant 0 : i32
    %c0_i32_1 = arith.constant 0 : i32
    return %c0_i32, %c0_i32_0 : i32, i32
  }
  func.func @transform_3(%arg0: i32) -> (i32, i32, i32) {
    %c0_i32 = arith.constant 0 : i32
    %c0_i32_0 = arith.constant 0 : i32
    %c0_i32_1 = arith.constant 0 : i32
    return %arg0, %c0_i32, %c0_i32_0 : i32, i32, i32
  }
}

module attributes {stable_mosaic.version = 11 : i64} {
  func.func @_conv_kernel(%arg0: i32, %arg1: memref<1x32x42xbf16, #tpu.memory_space<vmem>>, %arg2: memref<9x32x32xbf16, #tpu.memory_space<vmem>>, %arg3: memref<32x1xf32, #tpu.memory_space<vmem>>, %arg4: memref<1x32x24xbf16, #tpu.memory_space<vmem>>) attributes {dimension_semantics = [#tpu.dimension_semantics<parallel>], iteration_bounds = array<i64: 2>, scalar_prefetch = 0 : i64, scratch_operands = 0 : i64, tpu.core_type = #tpu.core_type<tc>, window_params = [{transform_indices = @transform_0, window_bounds = array<i64: 1, 32, 42>}, {pipeline_mode = #tpu.pipeline_mode<synchronous>, transform_indices = @transform_1, window_bounds = array<i64: 9, 32, 32>}, {pipeline_mode = #tpu.pipeline_mode<synchronous>, transform_indices = @transform_2, window_bounds = array<i64: 32, 1>}, {transform_indices = @transform_3, window_bounds = array<i64: 1, 32, 24>}]} {
    %cst = arith.constant 0.000000e+00 : f32
    %0 = vector.broadcast %cst : f32 to vector<32x24xf32>
    %c0 = arith.constant 0 : index
    %c0_0 = arith.constant 0 : index
    %c0_1 = arith.constant 0 : index
    %1 = vector.load %arg1[%c0, %c0_0, %c0_1] : memref<1x32x42xbf16, #tpu.memory_space<vmem>>, vector<1x32x24xbf16>
    %2 = vector.shape_cast %1 : vector<1x32x24xbf16> to vector<32x24xbf16>
    %c0_2 = arith.constant 0 : index
    %c0_3 = arith.constant 0 : index
    %c0_4 = arith.constant 0 : index
    %3 = vector.load %arg2[%c0_2, %c0_3, %c0_4] : memref<9x32x32xbf16, #tpu.memory_space<vmem>>, vector<1x32x32xbf16>
    %4 = vector.shape_cast %3 : vector<1x32x32xbf16> to vector<32x32xbf16>
    %cst_5 = arith.constant dense<0.000000e+00> : vector<32x24xf32>
    %5 = tpu.matmul %4, %2, %cst_5 {dimension_numbers = #tpu.dot_dimension_numbers<[1], [0], [0], [1], [0, 0, 1, 1], [], []>} : vector<32x32xbf16>, vector<32x24xbf16>, vector<32x24xf32> -> vector<32x24xf32>
    %6 = arith.addf %0, %5 : vector<32x24xf32>
    %c0_6 = arith.constant 0 : index
    %c0_7 = arith.constant 0 : index
    %c1 = arith.constant 1 : index
    %7 = vector.load %arg1[%c0_6, %c0_7, %c1] : memref<1x32x42xbf16, #tpu.memory_space<vmem>>, vector<1x32x24xbf16>
    %8 = vector.shape_cast %7 : vector<1x32x24xbf16> to vector<32x24xbf16>
    %c1_8 = arith.constant 1 : index
    %c0_9 = arith.constant 0 : index
    %c0_10 = arith.constant 0 : index
    %9 = vector.load %arg2[%c1_8, %c0_9, %c0_10] : memref<9x32x32xbf16, #tpu.memory_space<vmem>>, vector<1x32x32xbf16>
    %10 = vector.shape_cast %9 : vector<1x32x32xbf16> to vector<32x32xbf16>
    %cst_11 = arith.constant dense<0.000000e+00> : vector<32x24xf32>
    %11 = tpu.matmul %10, %8, %cst_11 {dimension_numbers = #tpu.dot_dimension_numbers<[1], [0], [0], [1], [0, 0, 1, 1], [], []>} : vector<32x32xbf16>, vector<32x24xbf16>, vector<32x24xf32> -> vector<32x24xf32>
    %12 = arith.addf %6, %11 : vector<32x24xf32>
    %c0_12 = arith.constant 0 : index
    %c0_13 = arith.constant 0 : index
    %c2 = arith.constant 2 : index
    %13 = vector.load %arg1[%c0_12, %c0_13, %c2] : memref<1x32x42xbf16, #tpu.memory_space<vmem>>, vector<1x32x24xbf16>
    %14 = vector.shape_cast %13 : vector<1x32x24xbf16> to vector<32x24xbf16>
    %c2_14 = arith.constant 2 : index
    %c0_15 = arith.constant 0 : index
    %c0_16 = arith.constant 0 : index
    %15 = vector.load %arg2[%c2_14, %c0_15, %c0_16] : memref<9x32x32xbf16, #tpu.memory_space<vmem>>, vector<1x32x32xbf16>
    %16 = vector.shape_cast %15 : vector<1x32x32xbf16> to vector<32x32xbf16>
    %cst_17 = arith.constant dense<0.000000e+00> : vector<32x24xf32>
    %17 = tpu.matmul %16, %14, %cst_17 {dimension_numbers = #tpu.dot_dimension_numbers<[1], [0], [0], [1], [0, 0, 1, 1], [], []>} : vector<32x32xbf16>, vector<32x24xbf16>, vector<32x24xf32> -> vector<32x24xf32>
    %18 = arith.addf %12, %17 : vector<32x24xf32>
    %c0_18 = arith.constant 0 : index
    %c0_19 = arith.constant 0 : index
    %c6 = arith.constant 6 : index
    %19 = vector.load %arg1[%c0_18, %c0_19, %c6] : memref<1x32x42xbf16, #tpu.memory_space<vmem>>, vector<1x32x24xbf16>
    %20 = vector.shape_cast %19 : vector<1x32x24xbf16> to vector<32x24xbf16>
    %c3 = arith.constant 3 : index
    %c0_20 = arith.constant 0 : index
    %c0_21 = arith.constant 0 : index
    %21 = vector.load %arg2[%c3, %c0_20, %c0_21] : memref<9x32x32xbf16, #tpu.memory_space<vmem>>, vector<1x32x32xbf16>
    %22 = vector.shape_cast %21 : vector<1x32x32xbf16> to vector<32x32xbf16>
    %cst_22 = arith.constant dense<0.000000e+00> : vector<32x24xf32>
    %23 = tpu.matmul %22, %20, %cst_22 {dimension_numbers = #tpu.dot_dimension_numbers<[1], [0], [0], [1], [0, 0, 1, 1], [], []>} : vector<32x32xbf16>, vector<32x24xbf16>, vector<32x24xf32> -> vector<32x24xf32>
    %24 = arith.addf %18, %23 : vector<32x24xf32>
    %c0_23 = arith.constant 0 : index
    %c0_24 = arith.constant 0 : index
    %c7 = arith.constant 7 : index
    %25 = vector.load %arg1[%c0_23, %c0_24, %c7] : memref<1x32x42xbf16, #tpu.memory_space<vmem>>, vector<1x32x24xbf16>
    %26 = vector.shape_cast %25 : vector<1x32x24xbf16> to vector<32x24xbf16>
    %c4 = arith.constant 4 : index
    %c0_25 = arith.constant 0 : index
    %c0_26 = arith.constant 0 : index
    %27 = vector.load %arg2[%c4, %c0_25, %c0_26] : memref<9x32x32xbf16, #tpu.memory_space<vmem>>, vector<1x32x32xbf16>
    %28 = vector.shape_cast %27 : vector<1x32x32xbf16> to vector<32x32xbf16>
    %cst_27 = arith.constant dense<0.000000e+00> : vector<32x24xf32>
    %29 = tpu.matmul %28, %26, %cst_27 {dimension_numbers = #tpu.dot_dimension_numbers<[1], [0], [0], [1], [0, 0, 1, 1], [], []>} : vector<32x32xbf16>, vector<32x24xbf16>, vector<32x24xf32> -> vector<32x24xf32>
    %30 = arith.addf %24, %29 : vector<32x24xf32>
    %c0_28 = arith.constant 0 : index
    %c0_29 = arith.constant 0 : index
    %c8 = arith.constant 8 : index
    %31 = vector.load %arg1[%c0_28, %c0_29, %c8] : memref<1x32x42xbf16, #tpu.memory_space<vmem>>, vector<1x32x24xbf16>
    %32 = vector.shape_cast %31 : vector<1x32x24xbf16> to vector<32x24xbf16>
    %c5 = arith.constant 5 : index
    %c0_30 = arith.constant 0 : index
    %c0_31 = arith.constant 0 : index
    %33 = vector.load %arg2[%c5, %c0_30, %c0_31] : memref<9x32x32xbf16, #tpu.memory_space<vmem>>, vector<1x32x32xbf16>
    %34 = vector.shape_cast %33 : vector<1x32x32xbf16> to vector<32x32xbf16>
    %cst_32 = arith.constant dense<0.000000e+00> : vector<32x24xf32>
    %35 = tpu.matmul %34, %32, %cst_32 {dimension_numbers = #tpu.dot_dimension_numbers<[1], [0], [0], [1], [0, 0, 1, 1], [], []>} : vector<32x32xbf16>, vector<32x24xbf16>, vector<32x24xf32> -> vector<32x24xf32>
    %36 = arith.addf %30, %35 : vector<32x24xf32>
    %c0_33 = arith.constant 0 : index
    %c0_34 = arith.constant 0 : index
    %c12 = arith.constant 12 : index
    %37 = vector.load %arg1[%c0_33, %c0_34, %c12] : memref<1x32x42xbf16, #tpu.memory_space<vmem>>, vector<1x32x24xbf16>
    %38 = vector.shape_cast %37 : vector<1x32x24xbf16> to vector<32x24xbf16>
    %c6_35 = arith.constant 6 : index
    %c0_36 = arith.constant 0 : index
    %c0_37 = arith.constant 0 : index
    %39 = vector.load %arg2[%c6_35, %c0_36, %c0_37] : memref<9x32x32xbf16, #tpu.memory_space<vmem>>, vector<1x32x32xbf16>
    %40 = vector.shape_cast %39 : vector<1x32x32xbf16> to vector<32x32xbf16>
    %cst_38 = arith.constant dense<0.000000e+00> : vector<32x24xf32>
    %41 = tpu.matmul %40, %38, %cst_38 {dimension_numbers = #tpu.dot_dimension_numbers<[1], [0], [0], [1], [0, 0, 1, 1], [], []>} : vector<32x32xbf16>, vector<32x24xbf16>, vector<32x24xf32> -> vector<32x24xf32>
    %42 = arith.addf %36, %41 : vector<32x24xf32>
    %c0_39 = arith.constant 0 : index
    %c0_40 = arith.constant 0 : index
    %c13 = arith.constant 13 : index
    %43 = vector.load %arg1[%c0_39, %c0_40, %c13] : memref<1x32x42xbf16, #tpu.memory_space<vmem>>, vector<1x32x24xbf16>
    %44 = vector.shape_cast %43 : vector<1x32x24xbf16> to vector<32x24xbf16>
    %c7_41 = arith.constant 7 : index
    %c0_42 = arith.constant 0 : index
    %c0_43 = arith.constant 0 : index
    %45 = vector.load %arg2[%c7_41, %c0_42, %c0_43] : memref<9x32x32xbf16, #tpu.memory_space<vmem>>, vector<1x32x32xbf16>
    %46 = vector.shape_cast %45 : vector<1x32x32xbf16> to vector<32x32xbf16>
    %cst_44 = arith.constant dense<0.000000e+00> : vector<32x24xf32>
    %47 = tpu.matmul %46, %44, %cst_44 {dimension_numbers = #tpu.dot_dimension_numbers<[1], [0], [0], [1], [0, 0, 1, 1], [], []>} : vector<32x32xbf16>, vector<32x24xbf16>, vector<32x24xf32> -> vector<32x24xf32>
    %48 = arith.addf %42, %47 : vector<32x24xf32>
    %c0_45 = arith.constant 0 : index
    %c0_46 = arith.constant 0 : index
    %c14 = arith.constant 14 : index
    %49 = vector.load %arg1[%c0_45, %c0_46, %c14] : memref<1x32x42xbf16, #tpu.memory_space<vmem>>, vector<1x32x24xbf16>
    %50 = vector.shape_cast %49 : vector<1x32x24xbf16> to vector<32x24xbf16>
    %c8_47 = arith.constant 8 : index
    %c0_48 = arith.constant 0 : index
    %c0_49 = arith.constant 0 : index
    %51 = vector.load %arg2[%c8_47, %c0_48, %c0_49] : memref<9x32x32xbf16, #tpu.memory_space<vmem>>, vector<1x32x32xbf16>
    %52 = vector.shape_cast %51 : vector<1x32x32xbf16> to vector<32x32xbf16>
    %cst_50 = arith.constant dense<0.000000e+00> : vector<32x24xf32>
    %53 = tpu.matmul %52, %50, %cst_50 {dimension_numbers = #tpu.dot_dimension_numbers<[1], [0], [0], [1], [0, 0, 1, 1], [], []>} : vector<32x32xbf16>, vector<32x24xbf16>, vector<32x24xf32> -> vector<32x24xf32>
    %54 = arith.addf %48, %53 : vector<32x24xf32>
    %c0_51 = arith.constant 0 : index
    %c0_52 = arith.constant 0 : index
    %55 = vector.load %arg3[%c0_51, %c0_52] : memref<32x1xf32, #tpu.memory_space<vmem>>, vector<32x1xf32>
    %56 = vector.broadcast %55 : vector<32x1xf32> to vector<32x24xf32>
    %57 = arith.addf %54, %56 : vector<32x24xf32>
    %cst_53 = arith.constant 0.000000e+00 : f32
    %58 = vector.broadcast %cst_53 : f32 to vector<32x24xf32>
    %59 = arith.maximumf %57, %58 : vector<32x24xf32>
    %60 = arith.truncf %59 : vector<32x24xf32> to vector<32x24xbf16>
    %c0_54 = arith.constant 0 : index
    %c0_55 = arith.constant 0 : index
    %c0_56 = arith.constant 0 : index
    %61 = vector.load %arg4[%c0_54, %c0_55, %c0_56] : memref<1x32x24xbf16, #tpu.memory_space<vmem>>, vector<1x32x24xbf16>
    %62 = vector.shape_cast %61 : vector<1x32x24xbf16> to vector<32x24xbf16>
    %63 = vector.shape_cast %60 : vector<32x24xbf16> to vector<1x32x24xbf16>
    tpu.vector_store %arg4[%c0_54, %c0_55, %c0_56], %63 {strides = array<i32>} : memref<1x32x24xbf16, #tpu.memory_space<vmem>>, vector<1x32x24xbf16>,
    return
  }
  func.func @transform_0(%arg0: i32) -> (i32, i32, i32) {
    %c0_i32 = arith.constant 0 : i32
    %c0_i32_0 = arith.constant 0 : i32
    %c0_i32_1 = arith.constant 0 : i32
    return %arg0, %c0_i32, %c0_i32_0 : i32, i32, i32
  }
  func.func @transform_1(%arg0: i32) -> (i32, i32, i32) {
    %c0_i32 = arith.constant 0 : i32
    %c0_i32_0 = arith.constant 0 : i32
    %c0_i32_1 = arith.constant 0 : i32
    %c0_i32_2 = arith.constant 0 : i32
    return %c0_i32, %c0_i32_0, %c0_i32_1 : i32, i32, i32
  }
  func.func @transform_2(%arg0: i32) -> (i32, i32) {
    %c0_i32 = arith.constant 0 : i32
    %c0_i32_0 = arith.constant 0 : i32
    %c0_i32_1 = arith.constant 0 : i32
    return %c0_i32, %c0_i32_0 : i32, i32
  }
  func.func @transform_3(%arg0: i32) -> (i32, i32, i32) {
    %c0_i32 = arith.constant 0 : i32
    %c0_i32_0 = arith.constant 0 : i32
    %c0_i32_1 = arith.constant 0 : i32
    return %arg0, %c0_i32, %c0_i32_0 : i32, i32, i32
  }
}

</mosaic_0001>

<bundles_post_ra>
// kernel: feature_net_forward.8
= control target key start
LH: loop header
LB: loop body
LE: loop exit
PB: predicated region body
PF: predicated region fallthrough
CT: control target
= control target key end

     0   :  { %s994_s12 = smov 0   ;;  %s1124_s0 = inlined_call_operand.vmem [shape: bf16[2,3,342], index: 0, kind: input, shape index: {}]   ;;  %s1125_s1 = inlined_call_operand.vmem [shape: bf16[9,8,3], index: 1, kind: input, shape index: {}]   ;;  %s1126_s2 = inlined_call_operand.vmem [shape: f32[8,1], index: 2, kind: input, shape index: {}]   ;;  %s1127_s3 = inlined_call_operand.vmem [shape: bf16[2,8,288], index: 3, kind: output, shape index: {}]  }
   0x1 LB: > { %s891_s13 = sadd.s32 4294967295, %s962_s12   ;;  %p895_p0 = scmp.ge.s32.totalorder %s962_s12, 1  ;;  %s962_s12 = sphi %s994_s12, %s13_s12  }
   0x2   : > { %p137_p1 = scmp.lt.s32.totalorder %s962_s12, 3 }
   0x4   : > { %p138_p2 = pnand %p895_p0, %p137_p1 }
   0x5   : > { %p161_p3 = scmp.lt.s32.totalorder (!%p138_p2), %s891_s13, 1  ;;  %s964_s18 = smov (!%p138_p2), 127  }
   0x6   : > { %141 = sbr.rel (%p138_p2) target bundleno = 385 (0x181), region = 32  ;;  %s965_s19 = smov (!%p138_p2), 126  }
   0x7   : > { %s966_s20 = smov (!%p138_p2), 110   ;;  %s967_s21 = smov (!%p138_p2), 109  }
   0x8   : > { %s968_s22 = smov (!%p138_p2), 108   ;;  %s969_s23 = smov (!%p138_p2), 92  }
   0x9   : > { %s970_s24 = smov (!%p138_p2), 91   ;;  %s971_s25 = smov (!%p138_p2), 90  }
   0xb   : > { %s1129_s13 = smov (!%p161_p3, %s891_s13), 1  ;;  %vm197_vm0 = vcmask 1040384   ;;  %vm198_vm1 = vcmask 1041408   ;;  %v972_v34 = vmov 65535   ;;  %v173_v39 = vld [vmem:[%s1125_s1] sm:$0xf] }
   0xc   : > { %s935_s14 = smul.u32 6, %s1129_s13  ;;  %v199_v35 = vsel %vm197_vm0, 4294967295, %v972_v34  ;;  %vm193_vm2 = vcmask 23552   ;;  %vm190_vm3 = vcmask 1039360   ;;  %vm318_vm4 = vcmask 1031168  }
   0xd   : > { %v1024_v37 = vsel %vm198_vm1, %v199_v35, 0  ;;  %v898_v48 = vld [vmem:[%s1125_s1 + $0x4] sm:$0xf]  ;;  %v905_v52 = vld [vmem:[%s1125_s1 + $0x8] sm:$0xf]  ;;  %vm392_vm5 = vcmask 900096  }
   0xe   : > { %s1008_s17 = scalar_lea.vmem %s1124_s0, %s935_s14  ;;  %vm466_vm6 = vcmask 891904   ;;  %vm540_vm7 = vcmask 883712   ;;  %vm614_vm8 = vcmask 752640   ;;  %vm688_vm9 = vcmask 744448  }
   0xf   : > { %v172_v0 = vld [vmem:[%s1008_s17] sm:$0x3f]  ;;  %vm762_vm10 = vcmask 736256   ;;  %vm834_vm11 = vcmask 257024  }
  0x10   : > { %177 = vst [vmem:[#allocation1] ss:$4 sm:$0xff] %v172_v0  ;;  %v301_v4 = vld [vmem:[%s1008_s17] sm:$0x3f] }
  0x11   : > { %v375_v8 = vld [vmem:[%s1008_s17] sm:$0x3f] }
  0x12   : > { %v449_v12 = vld [vmem:[%s1008_s17] sm:$0x3f] }
  0x13   : > { %v523_v16 = vld [vmem:[%s1008_s17] sm:$0x3f] }
  0x14   : > { %v597_v20 = vld [vmem:[%s1008_s17] sm:$0x3f] }
  0x15   : > { %v671_v24 = vld [vmem:[%s1008_s17] sm:$0x3f] }
  0x16   : > { %v745_v28 = vld [vmem:[%s1008_s17] sm:$0x3f] }
  0x17   : > { %v182_v1 = vld.sshfl [vmem:[#allocation1 + $0x10] sm:$0xff pattern:$0x73625140]  ;;  %v180_v2 = vld.sshfl [vmem:[#allocation1 + $0x8] sm:$0xff pattern:$0x73625140] }
  0x18   : > { %188 = vrot.lane.b32.xlu0 %v182_v1, %s964_s18  ;;  %186 = vrot.lane.b32.xlu1 %v180_v2, %s964_s18  ;;  %v178_v3 = vld.sshfl [vmem:[#allocation1] sm:$0xff pattern:$0x73625140] }
  0x19   : > { %249 = vst [vmem:[#allocation1] ss:$4 sm:$0xff] %v172_v0 }
  0x20   : > { %184 = vrot.lane.b32.xlu0 %v178_v3, %s964_s18  ;;  %v1012_v5 = vld.sshfl [vmem:[#allocation1] sm:$0xff pattern:$0x73625140]  ;;  %v1014_v6 = vld.sshfl [vmem:[#allocation1 + $0x8] sm:$0xff pattern:$0x73625140] }
  0x21   : > { %v1016_v7 = vld.sshfl [vmem:[#allocation1 + $0x10] sm:$0xff pattern:$0x73625140]  ;;  %v256_v38 = vand.u32 %v1012_v5, %v1024_v37  ;;  %v258_v54 = vand.u32 %v1014_v6, %v1024_v37 }
  0x22   : > { %305 = vst [vmem:[#allocation1] ss:$4 sm:$0xff] %v301_v4  ;;  %v260_v45 = vand.u32 %v1016_v7, %v1024_v37  ;;  %v909_v4 = vld [vmem:[%s1125_s1 + $0xc] sm:$0xf] }
  0x23   : > { %269 = vmatpush.bf16.msra.mxu3 %v256_v38 }
  0x26   : > { %902 = vmatmul.msk.bf16.vlgmr.msra.gmra.mxu3 %vm193_vm2, %v173_v39 }
  0x29   : > { %v306_v9 = vld.sshfl [vmem:[#allocation1] sm:$0xff pattern:$0x73625140]  ;;  %v308_v10 = vld.sshfl [vmem:[#allocation1 + $0x8] sm:$0xff pattern:$0x73625140] }
  0x2a   : > { %312 = vrot.lane.b32.xlu1 %v306_v9, %s965_s19  ;;  %314 = vrot.lane.b32.xlu2 %v308_v10, %s965_s19  ;;  %v310_v11 = vld.sshfl [vmem:[#allocation1 + $0x10] sm:$0xff pattern:$0x73625140] }
  0x2b   : > { %379 = vst [vmem:[#allocation1] ss:$4 sm:$0xff] %v375_v8 }
  0x32   : > { %v384_v13 = vld.sshfl [vmem:[#allocation1 + $0x10] sm:$0xff pattern:$0x73625140]  ;;  %v380_v14 = vld.sshfl [vmem:[#allocation1] sm:$0xff pattern:$0x73625140]  ;;  %316 = vrot.lane.b32.xlu2 %v310_v11, %s965_s19 }
  0x33   : > { %390 = vrot.lane.b32.xlu1 %v384_v13, %s966_s20  ;;  %v382_v15 = vld.sshfl [vmem:[#allocation1 + $0x8] sm:$0xff pattern:$0x73625140] }
  0x34   : > { %388 = vrot.lane.b32.xlu0 %v382_v15, %s966_s20  ;;  %453 = vst [vmem:[#allocation1] ss:$4 sm:$0xff] %v449_v12 }
  0x3a   : > { %386 = vrot.lane.b32.xlu2 %v380_v14, %s966_s20 }
  0x3b   : > { %v458_v17 = vld.sshfl [vmem:[#allocation1 + $0x10] sm:$0xff pattern:$0x73625140]  ;;  %v456_v18 = vld.sshfl [vmem:[#allocation1 + $0x8] sm:$0xff pattern:$0x73625140] }
  0x3c   : > { %464 = vrot.lane.b32.xlu0 %v458_v17, %s967_s21  ;;  %v454_v19 = vld.sshfl [vmem:[#allocation1] sm:$0xff pattern:$0x73625140] }
  0x3d   : > { %460 = vrot.lane.b32.xlu1 %v454_v19, %s967_s21  ;;  %527 = vst [vmem:[#allocation1] ss:$4 sm:$0xff] %v523_v16  ;;  %v913_v19 = vld [vmem:[%s1125_s1 + $0x10] sm:$0xf] }
  0x42   : > { %462 = vrot.lane.b32.xlu2 %v456_v18, %s967_s21  ;;  %v917_v18 = vld [vmem:[%s1125_s1 + $0x14] sm:$0xf]  ;;  %s936_s21 = smul.u32 12, %s1129_s13 }
  0x44   : > { %v530_v21 = vld.sshfl [vmem:[#allocation1 + $0x8] sm:$0xff pattern:$0x73625140]  ;;  %v528_v22 = vld.sshfl [vmem:[#allocation1] sm:$0xff pattern:$0x73625140] }
  0x45   : > { %536 = vrot.lane.b32.xlu1 %v530_v21, %s968_s22  ;;  %534 = vrot.lane.b32.xlu0 %v528_v22, %s968_s22  ;;  %v532_v23 = vld.sshfl [vmem:[#allocation1 + $0x10] sm:$0xff pattern:$0x73625140] }
  0x46   : > { %601 = vst [vmem:[#allocation1] ss:$4 sm:$0xff] %v597_v20 }
  0x4d   : > { %538 = vrot.lane.b32.xlu1 %v532_v23, %s968_s22  ;;  %v606_v25 = vld.sshfl [vmem:[#allocation1 + $0x10] sm:$0xff pattern:$0x73625140]  ;;  %v604_v26 = vld.sshfl [vmem:[#allocation1 + $0x8] sm:$0xff pattern:$0x73625140] }
  0x4e   : > { %610 = vrot.lane.b32.xlu0 %v604_v26, %s969_s23  ;;  %v602_v27 = vld.sshfl [vmem:[#allocation1] sm:$0xff pattern:$0x73625140] }
  0x4f   : > { %608 = vrot.lane.b32.xlu2 %v602_v27, %s969_s23  ;;  %675 = vst [vmem:[#allocation1] ss:$4 sm:$0xff] %v671_v24 }
  0x56   : > { %v676_v29 = vld.sshfl [vmem:[#allocation1] sm:$0xff pattern:$0x73625140]  ;;  %v680_v30 = vld.sshfl [vmem:[#allocation1 + $0x10] sm:$0xff pattern:$0x73625140] }
  0x57   : > { %686 = vrot.lane.b32.xlu1 %v680_v30, %s970_s24  ;;  %v678_v31 = vld.sshfl [vmem:[#allocation1 + $0x8] sm:$0xff pattern:$0x73625140]  ;;  %612 = vrot.lane.b32.xlu2 %v606_v25, %s969_s23 }
  0x58   : > { %684 = vrot.lane.b32.xlu0 %v678_v31, %s970_s24  ;;  %749 = vst [vmem:[#allocation1] ss:$4 sm:$0xff] %v745_v28 }
  0x5f   : > { %v754_v32 = vld.sshfl [vmem:[#allocation1 + $0x10] sm:$0xff pattern:$0x73625140]  ;;  %v750_v33 = vld.sshfl [vmem:[#allocation1] sm:$0xff pattern:$0x73625140]  ;;  %682 = vrot.lane.b32.xlu2 %v676_v29, %s970_s24  ;;  %s170_s24 = scalar_lea.vmem %s1127_s3, %s936_s21 }
  0x60   : > { %760 = vrot.lane.b32.xlu0 %v754_v32, %s971_s25  ;;  %756 = vrot.lane.b32.xlu1 %v750_v33, %s971_s25  ;;  %v752_v36 = vld.sshfl [vmem:[#allocation1 + $0x8] sm:$0xff pattern:$0x73625140] }
  0x67   : > { %758 = vrot.lane.b32.xlu2 %v752_v36, %s971_s25 }
  0x84   : > { %v315_v40 = vpop.permute.xlu2 %314 }
  0x8a   : > { %v189_v41 = vpop.permute.xlu0 %188  ;;  %v187_v42 = vpop.permute.xlu1 %186 }
  0x8b   : > { %v192_v43 = vsel %vm190_vm3, %v187_v42, %v189_v41  ;;  %v208_v44 = vand.u32 %v1024_v37, %v189_v41 }
  0x8c   : > { %v205_v46 = vand.u32 %v1024_v37, %v192_v43  ;;  %v317_v47 = vpop.permute.xlu2 %316 }
  0x8d   : > { %243 = vmatpush.bf16.msra.mxu2 %v208_v44  ;;  %v320_v49 = vsel %vm318_vm4, %v315_v40, %v317_v47  ;;  %v331_v56 = vand.u32 %v317_v47, %v1024_v37 }
  0x8e   : > { %230 = vmatpush.bf16.msra.mxu1 %v205_v46  ;;  %v328_v50 = vand.u32 %v320_v49, %v1024_v37  ;;  %v819_v49 = vld [vmem:[%s1126_s2] sm:$0xff] }
  0x90   : > { %901 = vmatmul.msk.bf16.vlgmr.msra.gmra.mxu2 %vm193_vm2, %v898_v48  ;;  %353 = vmatpush.bf16.msrb.mxu3 %v328_v50  ;;  %v973_v50 = vmov 0  }
  0x91   : > { %900 = vmatmul.msk.bf16.vlgmr.msra.gmra.mxu1 %vm193_vm2, %v898_v48  ;;  %955 = vset.pattern.permute.xlu0 %v973_v50 }
  0x92   : > { %295 = vmatpush.bf16.msrb.mxu1 %v260_v45  ;;  %v185_v51 = vpop.permute.xlu0 %184  ;;  %822 = vperm.xlu0 %955, %v819_v49  }
  0x93   : > { %v191_v53 = vsel %vm190_vm3, %v185_v51, %v187_v42  ;;  %907 = vmatmul.msk.bf16.vlgmr.msrb.gmra.mxu3 %vm193_vm2, %v905_v52  ;;  %v925_v51 = vld [vmem:[%s1125_s1 + $0x1c] sm:$0xf] }
  0x94   : > { %v202_v55 = vand.u32 %v1024_v37, %v191_v53  ;;  %v387_v60 = vpop.permute.xlu2 %386 }
  0x96   : > { %217 = vmatpush.bf16.msra.mxu0 %v202_v55 }
  0x99   : > { %899 = vmatmul.msk.bf16.vlgmr.msra.gmra.mxu0 %vm193_vm2, %v898_v48 }
  0x9a   : > { %282 = vmatpush.bf16.msrb.mxu0 %v258_v54 }
  0x9c   : > { %v313_v57 = vpop.permute.xlu1 %312  ;;  %v463_v5 = vpop.permute.xlu2 %462 }
  0x9d   : > { %v319_v58 = vsel %vm318_vm4, %v313_v57, %v315_v40  ;;  %v921_v40 = vld [vmem:[%s1125_s1 + $0x18] sm:$0xf] }
  0x9e   : > { %366 = vmatpush.bf16.msra.mxu0 %v331_v56  ;;  %v325_v59 = vand.u32 %v319_v58, %v1024_v37 }
  0xa0   : > { %340 = vmatpush.bf16.msrb.mxu2 %v325_v59 }
  0xa1   : > { %904 = vmatmul.msk.bf16.vlgmr.msrb.gmra.mxu1 %vm193_vm2, %v173_v39 }
  0xa3   : > { %906 = vmatmul.msk.bf16.vlgmr.msrb.gmra.mxu2 %vm193_vm2, %v905_v52 }
  0xa5   : > { %v391_v61 = vpop.permute.xlu1 %390 }
  0xa6   : > { %v405_v62 = vand.u32 %v391_v61, %v1024_v37  ;;  %v389_v63 = vpop.permute.xlu0 %388 }
  0xa7   : > { %v394_v0 = vsel %vm392_vm5, %v389_v63, %v391_v61  ;;  %v393_v1 = vsel %vm392_vm5, %v387_v60, %v389_v63 }
  0xa8   : > { %v402_v2 = vand.u32 %v394_v0, %v1024_v37  ;;  %v399_v3 = vand.u32 %v393_v1, %v1024_v37  ;;  %440 = vmatpush.bf16.msra.mxu3 %v405_v62 }
  0xa9   : > { %903 = vmatmul.msk.bf16.vlgmr.msrb.gmra.mxu0 %vm193_vm2, %v173_v39  ;;  %v609_v13 = vpop.permute.xlu2 %608 }
  0xaa   : > { %414 = vmatpush.bf16.msra.mxu1 %v399_v3  ;;  %427 = vmatpush.bf16.msra.mxu2 %v402_v2 }
  0xab   : > { %912 = vmatmul.msk.bf16.vlgmr.msra.gmra.mxu3 %vm193_vm2, %v909_v4 }
  0xae   : > { %v465_v6 = vpop.permute.xlu0 %464 }
  0xaf   : > { %v479_v7 = vand.u32 %v465_v6, %v1024_v37  ;;  %v461_v8 = vpop.permute.xlu1 %460  ;;  %v468_v9 = vsel %vm466_vm6, %v463_v5, %v465_v6 }
  0xb0   : > { %v467_v10 = vsel %vm466_vm6, %v461_v8, %v463_v5  ;;  %v476_v11 = vand.u32 %v468_v9, %v1024_v37 }
  0xb1   : > { %910 = vmatmul.msk.bf16.vlgmr.msra.gmra.mxu1 %vm193_vm2, %v909_v4  ;;  %v473_v12 = vand.u32 %v467_v10, %v1024_v37  ;;  %514 = vmatpush.bf16.msrb.mxu2 %v479_v7  ;;  %v613_v20 = vpop.permute.xlu2 %612 }
  0xb2   : > { %501 = vmatpush.bf16.msrb.mxu1 %v476_v11  ;;  %v627_v30 = vand.u32 %v613_v20, %v1024_v37 }
  0xb3   : > { %911 = vmatmul.msk.bf16.vlgmr.msra.gmra.mxu2 %vm193_vm2, %v909_v4  ;;  %488 = vmatpush.bf16.msrb.mxu0 %v473_v12 }
  0xb7   : > { %v537_v14 = vpop.permute.xlu1 %536  ;;  %v535_v15 = vpop.permute.xlu0 %534 }
  0xb8   : > { %v541_v16 = vsel %vm540_vm7, %v535_v15, %v537_v14 }
  0xb9   : > { %908 = vmatmul.msk.bf16.vlgmr.msra.gmra.mxu0 %vm193_vm2, %v905_v52  ;;  %v547_v17 = vand.u32 %v541_v16, %v1024_v37  ;;  %v683_v31 = vpop.permute.xlu2 %682  ;;  %v271_v52 = vpop.f32.mrf.mxu3 }
  0xbb   : > { %562 = vmatpush.bf16.msrb.mxu3 %v547_v17 }
  0xbe   : > { %918 = vmatmul.msk.bf16.vlgmr.msrb.gmra.mxu3 %vm193_vm2, %v917_v18 }
  0xbf   : > { %v539_v21 = vpop.permute.xlu1 %538 }
  0xc0   : > { %v542_v22 = vsel %vm540_vm7, %v537_v14, %v539_v21  ;;  %v553_v23 = vand.u32 %v539_v21, %v1024_v37  ;;  %v611_v24 = vpop.permute.xlu0 %610 }
  0xc1   : > { %915 = vmatmul.msk.bf16.vlgmr.msrb.gmra.mxu1 %vm193_vm2, %v913_v19  ;;  %v550_v25 = vand.u32 %v542_v22, %v1024_v37  ;;  %v615_v26 = vsel %vm614_vm8, %v609_v13, %v611_v24  ;;  %v616_v27 = vsel %vm614_vm8, %v611_v24, %v613_v20  ;;  %v759_v41 = vpop.permute.xlu2 %758  ;;  %v273_v53 = vpop.f32.mrf.mxu3 }
  0xc2   : > { %v621_v28 = vand.u32 %v615_v26, %v1024_v37  ;;  %v624_v29 = vand.u32 %v616_v27, %v1024_v37  ;;  %588 = vmatpush.bf16.msra.mxu1 %v553_v23 }
  0xc3   : > { %916 = vmatmul.msk.bf16.vlgmr.msrb.gmra.mxu2 %vm193_vm2, %v913_v19  ;;  %575 = vmatpush.bf16.msra.mxu0 %v550_v25 }
  0xc4   : > { %636 = vmatpush.bf16.msra.mxu2 %v621_v28  ;;  %649 = vmatpush.bf16.msra.mxu3 %v624_v29 }
  0xc9   : > { %914 = vmatmul.msk.bf16.vlgmr.msrb.gmra.mxu0 %vm193_vm2, %v913_v19  ;;  %v687_v32 = vpop.permute.xlu1 %686 }
  0xca   : > { %v701_v33 = vand.u32 %v687_v32, %v1024_v37  ;;  %v685_v34 = vpop.permute.xlu0 %684  ;;  %662 = vmatpush.bf16.msrb.mxu0 %v627_v30 }
  0xcb   : > { %v690_v35 = vsel %vm688_vm9, %v685_v34, %v687_v32  ;;  %v689_v36 = vsel %vm688_vm9, %v683_v31, %v685_v34 }
  0xcc   : > { %v698_v38 = vand.u32 %v690_v35, %v1024_v37  ;;  %v695_v39 = vand.u32 %v689_v36, %v1024_v37  ;;  %736 = vmatpush.bf16.msrb.mxu3 %v701_v33 }
  0xce   : > { %923 = vmatmul.msk.bf16.vlgmr.msra.gmra.mxu3 %vm193_vm2, %v921_v40  ;;  %710 = vmatpush.bf16.msrb.mxu1 %v695_v39 }
  0xcf   : > { %723 = vmatpush.bf16.msrb.mxu2 %v698_v38 }
  0xd1   : > { %920 = vmatmul.msk.bf16.vlgmr.msra.gmra.mxu1 %vm193_vm2, %v917_v18 }
  0xd2   : > { %v761_v42 = vpop.permute.xlu0 %760  ;;  %v757_v43 = vpop.permute.xlu1 %756 }
  0xd3   : > { %922 = vmatmul.msk.bf16.vlgmr.msra.gmra.mxu2 %vm193_vm2, %v921_v40  ;;  %v775_v44 = vand.u32 %v761_v42, %v1024_v37  ;;  %v764_v45 = vsel %vm762_vm10, %v759_v41, %v761_v42  ;;  %v763_v46 = vsel %vm762_vm10, %v757_v43, %v759_v41 }
  0xd4   : > { %v772_v47 = vand.u32 %v764_v45, %v1024_v37  ;;  %v769_v48 = vand.u32 %v763_v46, %v1024_v37  ;;  %v929_v37 = vld [vmem:[%s1125_s1 + $0x20] sm:$0xf] }
  0xd5   : > { %810 = vmatpush.bf16.msra.mxu2 %v775_v44 }
  0xd6   : > { %797 = vmatpush.bf16.msra.mxu1 %v772_v47 }
  0xd9   : > { %919 = vmatmul.msk.bf16.vlgmr.msra.gmra.mxu0 %vm193_vm2, %v917_v18 }
  0xda   : > { %784 = vmatpush.bf16.msra.mxu0 %v769_v48 }
  0xde   : > { %928 = vmatmul.msk.bf16.vlgmr.msrb.gmra.mxu3 %vm193_vm2, %v925_v51 }
  0xe1   : > { %926 = vmatmul.msk.bf16.vlgmr.msrb.gmra.mxu1 %vm193_vm2, %v925_v51 }
  0xe3   : > { %927 = vmatmul.msk.bf16.vlgmr.msrb.gmra.mxu2 %vm193_vm2, %v925_v51 }
  0xe9   : > { %924 = vmatmul.msk.bf16.vlgmr.msrb.gmra.mxu0 %vm193_vm2, %v921_v40 }
  0xf1   : > { %931 = vmatmul.msk.bf16.vlgmr.msra.gmra.mxu1 %vm193_vm2, %v929_v37 }
  0xf3   : > { %932 = vmatmul.msk.bf16.vlgmr.msra.gmra.mxu2 %vm193_vm2, %v929_v37 }
  0xf9   : > { %930 = vmatmul.msk.bf16.vlgmr.msra.gmra.mxu0 %vm193_vm2, %v929_v37 }
 0x10e   : > { %v232_v54 = vpop.f32.mrf.mxu1 }
 0x113   : > { %v245_v55 = vpop.f32.mrf.mxu2 }
 0x116   : > { %v219_v56 = vpop.f32.mrf.mxu0  ;;  %v234_v57 = vpop.f32.mrf.mxu1 }
 0x117   : > { %v272_v58 = vadd.f32 %v271_v52, %v219_v56  ;;  %v355_v59 = vpop.f32.mrf.mxu3  ;;  %v823_v57 = vpop.permute.xlu0 %822 }
 0x11b   : > { %v247_v60 = vpop.f32.mrf.mxu2 }
 0x11e   : > { %v221_v61 = vpop.f32.mrf.mxu0  ;;  %v297_v62 = vpop.f32.mrf.mxu1 }
 0x11f   : > { %v298_v63 = vadd.f32 %v297_v62, %v245_v55  ;;  %v357_v0 = vpop.f32.mrf.mxu3 }
 0x126   : > { %v342_v1 = vpop.f32.mrf.mxu2  ;;  %v284_v2 = vpop.f32.mrf.mxu0 }
 0x127   : > { %v372_v3 = vadd.f32 %v342_v1, %v272_v58  ;;  %v285_v4 = vadd.f32 %v284_v2, %v232_v54  ;;  %v299_v5 = vpop.f32.mrf.mxu1 }
 0x129   : > { %v373_v6 = vadd.f32 %v355_v59, %v285_v4 }
 0x12e   : > { %v344_v7 = vpop.f32.mrf.mxu2  ;;  %v286_v8 = vpop.f32.mrf.mxu0 }
 0x12f   : > { %v416_v9 = vpop.f32.mrf.mxu1  ;;  %v442_v10 = vpop.f32.mrf.mxu3 }
 0x130   : > { %v446_v43 = vadd.f32 %v416_v9, %v372_v3 }
 0x136   : > { %v429_v11 = vpop.f32.mrf.mxu2  ;;  %v368_v12 = vpop.f32.mrf.mxu0 }
 0x137   : > { %v418_v13 = vpop.f32.mrf.mxu1  ;;  %v444_v14 = vpop.f32.mrf.mxu3  ;;  %v447_v38 = vadd.f32 %v429_v11, %v373_v6  ;;  %v374_v39 = vadd.f32 %v368_v12, %v298_v63 }
 0x139   : > { %v448_v44 = vadd.f32 %v442_v10, %v374_v39 }
 0x13e   : > { %v431_v15 = vpop.f32.mrf.mxu2  ;;  %v370_v16 = vpop.f32.mrf.mxu0 }
 0x13f   : > { %v503_v17 = vpop.f32.mrf.mxu1 }
 0x140   : > { %v521_v41 = vadd.f32 %v503_v17, %v447_v38 }
 0x141   : > { %v564_v18 = vpop.f32.mrf.mxu3 }
 0x146   : > { %v516_v19 = vpop.f32.mrf.mxu2  ;;  %v490_v20 = vpop.f32.mrf.mxu0 }
 0x147   : > { %v505_v21 = vpop.f32.mrf.mxu1  ;;  %v522_v46 = vadd.f32 %v516_v19, %v448_v44  ;;  %v520_v47 = vadd.f32 %v490_v20, %v446_v43 }
 0x149   : > { %v566_v22 = vpop.f32.mrf.mxu3  ;;  %v594_v52 = vadd.f32 %v564_v18, %v520_v47 }
 0x14e   : > { %v518_v23 = vpop.f32.mrf.mxu2  ;;  %v492_v24 = vpop.f32.mrf.mxu0 }
 0x14f   : > { %v590_v25 = vpop.f32.mrf.mxu1 }
 0x150   : > { %v596_v50 = vadd.f32 %v590_v25, %v522_v46 }
 0x151   : > { %v651_v26 = vpop.f32.mrf.mxu3 }
 0x156   : > { %v638_v27 = vpop.f32.mrf.mxu2  ;;  %v577_v28 = vpop.f32.mrf.mxu0 }
 0x157   : > { %v592_v29 = vpop.f32.mrf.mxu1  ;;  %v595_v45 = vadd.f32 %v577_v28, %v521_v41  ;;  %v668_v55 = vadd.f32 %v638_v27, %v594_v52 }
 0x159   : > { %v653_v30 = vpop.f32.mrf.mxu3  ;;  %v669_v51 = vadd.f32 %v651_v26, %v595_v45 }
 0x15e   : > { %v640_v31 = vpop.f32.mrf.mxu2  ;;  %v579_v32 = vpop.f32.mrf.mxu0 }
 0x15f   : > { %v712_v33 = vpop.f32.mrf.mxu1 }
 0x160   : > { %v742_v58 = vadd.f32 %v712_v33, %v668_v55 }
 0x161   : > { %v738_v34 = vpop.f32.mrf.mxu3 }
 0x166   : > { %v725_v35 = vpop.f32.mrf.mxu2  ;;  %v664_v36 = vpop.f32.mrf.mxu0 }
 0x167   : > { %v714_v40 = vpop.f32.mrf.mxu1  ;;  %v743_v53 = vadd.f32 %v725_v35, %v669_v51  ;;  %v670_v54 = vadd.f32 %v664_v36, %v596_v50 }
 0x169   : > { %v740_v42 = vpop.f32.mrf.mxu3  ;;  %v744_v59 = vadd.f32 %v738_v34, %v670_v54 }
 0x16e   : > { %v727_v48 = vpop.f32.mrf.mxu2  ;;  %v666_v49 = vpop.f32.mrf.mxu0 }
 0x16f   : > { %v799_v37 = vpop.f32.mrf.mxu1 }
 0x170   : > { %v817_v56 = vadd.f32 %v799_v37, %v743_v53 }
 0x172   : > { %v826_v62 = vadd.f32 %v823_v57, %v817_v56 }
 0x174   : > { %v829_v4 = vmax.f32 %v826_v62, 0.0 }
 0x176   : > { %v812_v60 = vpop.f32.mrf.mxu2  ;;  %v786_v61 = vpop.f32.mrf.mxu0 }
 0x177   : > { %v818_v63 = vadd.f32 %v812_v60, %v744_v59  ;;  %v816_v0 = vadd.f32 %v786_v61, %v742_v58  ;;  %v801_v1 = vpop.f32.mrf.mxu1 }
 0x179   : > { %v827_v2 = vadd.f32 %v823_v57, %v818_v63  ;;  %v825_v3 = vadd.f32 %v823_v57, %v816_v0 }
 0x17b   : > { %v830_v5 = vmax.f32 %v827_v2, 0.0  ;;  %v828_v6 = vmax.f32 %v825_v3, 0.0 }
 0x17d   : > { %v832_v7 = vpack.c.bf16 %v830_v5, %v830_v5  ;;  %v831_v8 = vpack.c.bf16 %v829_v4, %v828_v6 }
 0x17e   : > { %v788_v9 = vpop.f32.mrf.mxu0  ;;  %v814_v10 = vpop.f32.mrf.mxu2 }
 0x17f   : > { %835 = vst.msk [vmem:[%s170_s24 + $0x8] sm:$0xf] %vm834_vm11, %v832_v7 }
 0x180   : > { %833 = vst [vmem:[%s170_s24] sm:$0xff] %v831_v8 }
 0x181 PF: > { %s13_s12 = sadd.s32 1, %s962_s12  }
 0x182   : > { %p10_p4 = scmp.ge.s32.totalorder %s13_s12, 4  }
 0x184   :  { %12 = sbr.rel (!%p10_p4) target bundleno = 1 (0x1), region = 70 }

// kernel: feature_net_forward.9
= control target key start
LH: loop header
LB: loop body
LE: loop exit
PB: predicated region body
PF: predicated region fallthrough
CT: control target
= control target key end

     0   :  { %s925_s12 = smov 0   ;;  %s1056_s0 = inlined_call_operand.vmem [shape: bf16[2,8,342], index: 0, kind: input, shape index: {}]   ;;  %s1057_s1 = inlined_call_operand.vmem [shape: bf16[9,8,8], index: 1, kind: input, shape index: {}]   ;;  %s1058_s2 = inlined_call_operand.vmem [shape: f32[8,1], index: 2, kind: input, shape index: {}]   ;;  %s1059_s3 = inlined_call_operand.vmem [shape: bf16[2,8,288], index: 3, kind: output, shape index: {}]  }
   0x1 LB: > { %s825_s13 = sadd.s32 4294967295, %s894_s12   ;;  %p829_p0 = scmp.ge.s32.totalorder %s894_s12, 1  ;;  %s894_s12 = sphi %s925_s12, %s13_s12  }
   0x2   : > { %p137_p1 = scmp.lt.s32.totalorder %s894_s12, 3 }
   0x4   : > { %p138_p2 = pnand %p829_p0, %p137_p1 }
   0x5   : > { %p161_p3 = scmp.lt.s32.totalorder (!%p138_p2), %s825_s13, 1  ;;  %s896_s18 = smov (!%p138_p2), 127  }
   0x6   : > { %141 = sbr.rel (%p138_p2) target bundleno = 379 (0x17b), region = 32  ;;  %s897_s19 = smov (!%p138_p2), 126  }
   0x7   : > { %s898_s20 = smov (!%p138_p2), 110   ;;  %s899_s21 = smov (!%p138_p2), 109  }
   0x8   : > { %s900_s22 = smov (!%p138_p2), 108   ;;  %s901_s23 = smov (!%p138_p2), 92  }
   0x9   : > { %s902_s24 = smov (!%p138_p2), 91   ;;  %s903_s25 = smov (!%p138_p2), 90  }
   0xb   : > { %s1061_s13 = smov (!%p161_p3, %s825_s13), 1  ;;  %vm198_vm0 = vcmask 1043456   ;;  %vm194_vm1 = vcmask 64512   ;;  %v955_v9 = vld [vmem:[%s1057_s1] sm:$0xf]  ;;  %vm306_vm2 = vcmask 1031168  }
   0xc   : > { %s869_s14 = smul.u32 12, %s1061_s13  ;;  %v964_v14 = vld [vmem:[%s1057_s1 + $0x8] sm:$0xf]  ;;  %vm191_vm3 = vcmask 1039360   ;;  %v832_v21 = vld [vmem:[%s1057_s1 + $0x4] sm:$0xf] }
   0xd   : > { %vm371_vm4 = vcmask 900096   ;;  %v843_v38 = vld [vmem:[%s1057_s1 + $0xc] sm:$0xf]  ;;  %vm436_vm5 = vcmask 891904   ;;  %vm501_vm6 = vcmask 883712   ;;  %vm566_vm7 = vcmask 752640  }
   0xe   : > { %s165_s17 = scalar_lea.vmem %s1056_s0, %s869_s14  ;;  %v851_v52 = vld [vmem:[%s1057_s1 + $0x14] sm:$0xf]  ;;  %vm631_vm8 = vcmask 744448   ;;  %vm696_vm9 = vcmask 736256   ;;  %vm768_vm10 = vcmask 257024  }
   0xf   : > { %v173_v0 = vld [vmem:[%s165_s17 + $0x8] sm:$0xf]  ;;  %v172_v1 = vld [vmem:[%s165_s17] sm:$0xff] }
  0x10   : > { %v181_v2 = vunpack.c.l.b16 %v173_v0  ;;  %v180_v3 = vunpack.c.h.b16 %v172_v1  ;;  %v179_v6 = vunpack.c.l.b16 %v172_v1 }
  0x12   : > { %v184_v4 = vpack.c.b16 %v181_v2, %v181_v2  ;;  %v941_v5 = vpack.c.b16 %v180_v3, %v180_v3  ;;  %v182_v7 = vpack.c.b16 %v179_v6, %v179_v6 }
  0x14   : > { %189 = vrot.lane.b32.xlu0 %v184_v4, %s896_s18  ;;  %187 = vrot.lane.b32.xlu1 %v941_v5, %s896_s18  ;;  %v251_v8 = vsel %vm198_vm0, %v182_v7, 0  ;;  %v257_v19 = vsel %vm198_vm0, %v184_v4, 0  ;;  %v254_v26 = vsel %vm198_vm0, %v941_v5, 0 }
  0x15   : > { %302 = vrot.lane.b32.xlu2 %v941_v5, %s897_s19  ;;  %266 = vmatpush.bf16.msra.mxu3 %v251_v8  ;;  %v855_v8 = vld [vmem:[%s1057_s1 + $0x18] sm:$0xf] }
  0x18   : > { %836 = vmatmul.msk.bf16.vlgmr.msra.gmra.mxu3 %vm194_vm1, %v955_v9 }
  0x1c   : > { %300 = vrot.lane.b32.xlu1 %v182_v7, %s897_s19  ;;  %185 = vrot.lane.b32.xlu0 %v182_v7, %s896_s18 }
  0x1d   : > { %304 = vrot.lane.b32.xlu2 %v184_v4, %s897_s19 }
  0x24   : > { %369 = vrot.lane.b32.xlu1 %v184_v4, %s898_s20  ;;  %367 = vrot.lane.b32.xlu0 %v941_v5, %s898_s20 }
  0x25   : > { %365 = vrot.lane.b32.xlu2 %v182_v7, %s898_s20 }
  0x2c   : > { %430 = vrot.lane.b32.xlu1 %v182_v7, %s899_s21  ;;  %434 = vrot.lane.b32.xlu0 %v184_v4, %s899_s21 }
  0x2d   : > { %432 = vrot.lane.b32.xlu2 %v941_v5, %s899_s21 }
  0x34   : > { %497 = vrot.lane.b32.xlu1 %v941_v5, %s900_s22  ;;  %495 = vrot.lane.b32.xlu0 %v182_v7, %s900_s22 }
  0x35   : > { %560 = vrot.lane.b32.xlu2 %v182_v7, %s901_s23 }
  0x3c   : > { %499 = vrot.lane.b32.xlu1 %v184_v4, %s900_s22  ;;  %562 = vrot.lane.b32.xlu0 %v941_v5, %s901_s23 }
  0x3d   : > { %564 = vrot.lane.b32.xlu2 %v184_v4, %s901_s23 }
  0x44   : > { %629 = vrot.lane.b32.xlu1 %v184_v4, %s902_s24  ;;  %627 = vrot.lane.b32.xlu0 %v941_v5, %s902_s24 }
  0x45   : > { %625 = vrot.lane.b32.xlu2 %v182_v7, %s902_s24  ;;  %s170_s24 = scalar_lea.vmem %s1059_s3, %s869_s14 }
  0x4c   : > { %694 = vrot.lane.b32.xlu0 %v184_v4, %s903_s25  ;;  %690 = vrot.lane.b32.xlu1 %v182_v7, %s903_s25 }
  0x4d   : > { %692 = vrot.lane.b32.xlu2 %v941_v5, %s903_s25  ;;  %v847_v5 = vld [vmem:[%s1057_s1 + $0x10] sm:$0xf] }
  0x6f   : > { %v303_v10 = vpop.permute.xlu2 %302 }
  0x77   : > { %v305_v11 = vpop.permute.xlu2 %304 }
  0x78   : > { %v308_v12 = vsel %vm306_vm2, %v303_v10, %v305_v11  ;;  %v319_v29 = vsel %vm198_vm0, %v305_v11, 0 }
  0x79   : > { %v316_v13 = vsel %vm198_vm0, %v308_v12, 0 }
  0x7a   : > { %341 = vmatpush.bf16.msrb.mxu3 %v316_v13 }
  0x7d   : > { %841 = vmatmul.msk.bf16.vlgmr.msrb.gmra.mxu3 %vm194_vm1, %v964_v14 }
  0x7f   : > { %v366_v30 = vpop.permute.xlu2 %365 }
  0x86   : > { %v190_v15 = vpop.permute.xlu0 %189  ;;  %v188_v16 = vpop.permute.xlu1 %187 }
  0x87   : > { %v206_v17 = vsel %vm198_vm0, %v190_v15, 0  ;;  %v193_v18 = vsel %vm191_vm3, %v188_v16, %v190_v15  ;;  %v433_v39 = vpop.permute.xlu2 %432  ;;  %v859_v15 = vld [vmem:[%s1057_s1 + $0x1c] sm:$0xf] }
  0x88   : > { %241 = vmatpush.bf16.msra.mxu2 %v206_v17  ;;  %v203_v20 = vsel %vm198_vm0, %v193_v18, 0 }
  0x89   : > { %228 = vmatpush.bf16.msra.mxu1 %v203_v20  ;;  %v904_v20 = vmov 0  }
  0x8a   : > { %887 = vset.pattern.permute.xlu0 %v904_v20 }
  0x8b   : > { %835 = vmatmul.msk.bf16.vlgmr.msra.gmra.mxu2 %vm194_vm1, %v832_v21 }
  0x8c   : > { %834 = vmatmul.msk.bf16.vlgmr.msra.gmra.mxu1 %vm194_vm1, %v832_v21 }
  0x8d   : > { %292 = vmatpush.bf16.msrb.mxu1 %v257_v19  ;;  %v753_v19 = vld [vmem:[%s1058_s2] sm:$0xff] }
  0x8e   : > { %v301_v22 = vpop.permute.xlu1 %300  ;;  %v186_v23 = vpop.permute.xlu0 %185  ;;  %756 = vperm.xlu0 %887, %v753_v19  }
  0x8f   : > { %v192_v24 = vsel %vm191_vm3, %v186_v23, %v188_v16  ;;  %v307_v25 = vsel %vm306_vm2, %v301_v22, %v303_v10  ;;  %v561_v47 = vpop.permute.xlu2 %560 }
  0x90   : > { %v200_v27 = vsel %vm198_vm0, %v192_v24, 0  ;;  %v313_v28 = vsel %vm198_vm0, %v307_v25, 0 }
  0x91   : > { %215 = vmatpush.bf16.msra.mxu0 %v200_v27  ;;  %328 = vmatpush.bf16.msrb.mxu2 %v313_v28 }
  0x94   : > { %833 = vmatmul.msk.bf16.vlgmr.msra.gmra.mxu0 %vm194_vm1, %v832_v21  ;;  %v863_v21 = vld [vmem:[%s1057_s1 + $0x20] sm:$0xf] }
  0x95   : > { %279 = vmatpush.bf16.msrb.mxu0 %v254_v26 }
  0x96   : > { %v370_v31 = vpop.permute.xlu1 %369  ;;  %v368_v32 = vpop.permute.xlu0 %367 }
  0x97   : > { %v384_v33 = vsel %vm198_vm0, %v370_v31, 0  ;;  %v372_v34 = vsel %vm371_vm4, %v366_v30, %v368_v32  ;;  %v373_v35 = vsel %vm371_vm4, %v368_v32, %v370_v31  ;;  %v565_v53 = vpop.permute.xlu2 %564 }
  0x98   : > { %v378_v36 = vsel %vm198_vm0, %v372_v34, 0  ;;  %v381_v37 = vsel %vm198_vm0, %v373_v35, 0  ;;  %419 = vmatpush.bf16.msra.mxu3 %v384_v33 }
  0x99   : > { %354 = vmatpush.bf16.msra.mxu0 %v319_v29  ;;  %393 = vmatpush.bf16.msra.mxu1 %v378_v36 }
  0x9a   : > { %406 = vmatpush.bf16.msra.mxu2 %v381_v37 }
  0x9b   : > { %840 = vmatmul.msk.bf16.vlgmr.msrb.gmra.mxu2 %vm194_vm1, %v964_v14  ;;  %846 = vmatmul.msk.bf16.vlgmr.msra.gmra.mxu3 %vm194_vm1, %v843_v38  ;;  %v268_v22 = vpop.f32.mrf.mxu3 }
  0x9c   : > { %838 = vmatmul.msk.bf16.vlgmr.msrb.gmra.mxu1 %vm194_vm1, %v955_v9 }
  0x9e   : > { %v431_v40 = vpop.permute.xlu1 %430  ;;  %v435_v41 = vpop.permute.xlu0 %434 }
  0x9f   : > { %v437_v42 = vsel %vm436_vm5, %v431_v40, %v433_v39  ;;  %v438_v43 = vsel %vm436_vm5, %v433_v39, %v435_v41  ;;  %v449_v44 = vsel %vm198_vm0, %v435_v41, 0  ;;  %v626_v63 = vpop.permute.xlu2 %625 }
  0xa0   : > { %v446_v45 = vsel %vm198_vm0, %v438_v43, 0  ;;  %484 = vmatpush.bf16.msrb.mxu2 %v449_v44  ;;  %v443_v46 = vsel %vm198_vm0, %v437_v42, 0 }
  0xa1   : > { %471 = vmatpush.bf16.msrb.mxu1 %v446_v45 }
  0xa3   : > { %v270_v23 = vpop.f32.mrf.mxu3 }
  0xa4   : > { %837 = vmatmul.msk.bf16.vlgmr.msrb.gmra.mxu0 %vm194_vm1, %v955_v9  ;;  %v579_v9 = vsel %vm198_vm0, %v565_v53, 0 }
  0xa5   : > { %458 = vmatpush.bf16.msrb.mxu0 %v443_v46 }
  0xa6   : > { %v498_v48 = vpop.permute.xlu1 %497  ;;  %v496_v49 = vpop.permute.xlu0 %495 }
  0xa7   : > { %v502_v50 = vsel %vm501_vm6, %v496_v49, %v498_v48  ;;  %v693_v10 = vpop.permute.xlu2 %692 }
  0xa8   : > { %v508_v51 = vsel %vm198_vm0, %v502_v50, 0 }
  0xa9   : > { %523 = vmatpush.bf16.msrb.mxu3 %v508_v51 }
  0xab   : > { %845 = vmatmul.msk.bf16.vlgmr.msra.gmra.mxu2 %vm194_vm1, %v843_v38 }
  0xac   : > { %844 = vmatmul.msk.bf16.vlgmr.msra.gmra.mxu1 %vm194_vm1, %v843_v38  ;;  %852 = vmatmul.msk.bf16.vlgmr.msrb.gmra.mxu3 %vm194_vm1, %v851_v52 }
  0xae   : > { %v500_v54 = vpop.permute.xlu1 %499  ;;  %v563_v55 = vpop.permute.xlu0 %562 }
  0xaf   : > { %v503_v56 = vsel %vm501_vm6, %v498_v48, %v500_v54  ;;  %v514_v57 = vsel %vm198_vm0, %v500_v54, 0  ;;  %v567_v58 = vsel %vm566_vm7, %v561_v47, %v563_v55  ;;  %v568_v59 = vsel %vm566_vm7, %v563_v55, %v565_v53 }
  0xb0   : > { %v573_v60 = vsel %vm198_vm0, %v567_v58, 0  ;;  %v576_v61 = vsel %vm198_vm0, %v568_v59, 0  ;;  %549 = vmatpush.bf16.msra.mxu1 %v514_v57  ;;  %v511_v62 = vsel %vm198_vm0, %v503_v56, 0 }
  0xb1   : > { %588 = vmatpush.bf16.msra.mxu2 %v573_v60  ;;  %601 = vmatpush.bf16.msra.mxu3 %v576_v61 }
  0xb4   : > { %842 = vmatmul.msk.bf16.vlgmr.msra.gmra.mxu0 %vm194_vm1, %v964_v14 }
  0xb5   : > { %536 = vmatpush.bf16.msra.mxu0 %v511_v62 }
  0xb6   : > { %v630_v0 = vpop.permute.xlu1 %629  ;;  %v628_v1 = vpop.permute.xlu0 %627 }
  0xb7   : > { %v644_v2 = vsel %vm198_vm0, %v630_v0, 0  ;;  %v632_v3 = vsel %vm631_vm8, %v626_v63, %v628_v1  ;;  %v633_v4 = vsel %vm631_vm8, %v628_v1, %v630_v0 }
  0xb8   : > { %679 = vmatpush.bf16.msrb.mxu3 %v644_v2  ;;  %v638_v6 = vsel %vm198_vm0, %v632_v3, 0  ;;  %v641_v7 = vsel %vm198_vm0, %v633_v4, 0 }
  0xbb   : > { %850 = vmatmul.msk.bf16.vlgmr.msrb.gmra.mxu2 %vm194_vm1, %v847_v5 }
  0xbc   : > { %849 = vmatmul.msk.bf16.vlgmr.msrb.gmra.mxu1 %vm194_vm1, %v847_v5  ;;  %857 = vmatmul.msk.bf16.vlgmr.msra.gmra.mxu3 %vm194_vm1, %v855_v8 }
  0xbd   : > { %653 = vmatpush.bf16.msrb.mxu1 %v638_v6  ;;  %666 = vmatpush.bf16.msrb.mxu2 %v641_v7 }
  0xbe   : > { %v695_v11 = vpop.permute.xlu0 %694  ;;  %v691_v16 = vpop.permute.xlu1 %690 }
  0xbf   : > { %v698_v12 = vsel %vm696_vm9, %v693_v10, %v695_v11  ;;  %v709_v14 = vsel %vm198_vm0, %v695_v11, 0  ;;  %v697_v17 = vsel %vm696_vm9, %v691_v16, %v693_v10 }
  0xc0   : > { %v706_v13 = vsel %vm198_vm0, %v698_v12, 0  ;;  %v703_v18 = vsel %vm198_vm0, %v697_v17, 0 }
  0xc4   : > { %848 = vmatmul.msk.bf16.vlgmr.msrb.gmra.mxu0 %vm194_vm1, %v847_v5 }
  0xc5   : > { %614 = vmatpush.bf16.msrb.mxu0 %v579_v9 }
  0xcb   : > { %856 = vmatmul.msk.bf16.vlgmr.msra.gmra.mxu2 %vm194_vm1, %v855_v8 }
  0xcc   : > { %854 = vmatmul.msk.bf16.vlgmr.msra.gmra.mxu1 %vm194_vm1, %v851_v52  ;;  %862 = vmatmul.msk.bf16.vlgmr.msrb.gmra.mxu3 %vm194_vm1, %v859_v15 }
  0xcd   : > { %744 = vmatpush.bf16.msra.mxu2 %v709_v14  ;;  %731 = vmatpush.bf16.msra.mxu1 %v706_v13 }
  0xd4   : > { %853 = vmatmul.msk.bf16.vlgmr.msra.gmra.mxu0 %vm194_vm1, %v851_v52 }
  0xd5   : > { %718 = vmatpush.bf16.msra.mxu0 %v703_v18 }
  0xdb   : > { %861 = vmatmul.msk.bf16.vlgmr.msrb.gmra.mxu2 %vm194_vm1, %v859_v15 }
  0xdc   : > { %860 = vmatmul.msk.bf16.vlgmr.msrb.gmra.mxu1 %vm194_vm1, %v859_v15 }
  0xe4   : > { %858 = vmatmul.msk.bf16.vlgmr.msrb.gmra.mxu0 %vm194_vm1, %v855_v8 }
  0xeb   : > { %866 = vmatmul.msk.bf16.vlgmr.msra.gmra.mxu2 %vm194_vm1, %v863_v21 }
  0xec   : > { %865 = vmatmul.msk.bf16.vlgmr.msra.gmra.mxu1 %vm194_vm1, %v863_v21 }
  0xf4   : > { %864 = vmatmul.msk.bf16.vlgmr.msra.gmra.mxu0 %vm194_vm1, %v863_v21 }
 0x100   : > { %v343_v24 = vpop.f32.mrf.mxu3 }
 0x108   : > { %v345_v26 = vpop.f32.mrf.mxu3 }
 0x109   : > { %v230_v25 = vpop.f32.mrf.mxu1 }
 0x10e   : > { %v243_v27 = vpop.f32.mrf.mxu2 }
 0x111   : > { %v217_v28 = vpop.f32.mrf.mxu0  ;;  %v232_v29 = vpop.f32.mrf.mxu1 }
 0x112   : > { %v269_v30 = vadd.f32 %v268_v22, %v217_v28  ;;  %v757_v29 = vpop.permute.xlu0 %756 }
 0x116   : > { %v245_v31 = vpop.f32.mrf.mxu2 }
 0x119   : > { %v219_v32 = vpop.f32.mrf.mxu0  ;;  %v294_v33 = vpop.f32.mrf.mxu1 }
 0x11a   : > { %v295_v34 = vadd.f32 %v294_v33, %v243_v27 }
 0x11e   : > { %v330_v35 = vpop.f32.mrf.mxu2  ;;  %v421_v36 = vpop.f32.mrf.mxu3 }
 0x11f   : > { %v360_v37 = vadd.f32 %v330_v35, %v269_v30 }
 0x121   : > { %v281_v38 = vpop.f32.mrf.mxu0  ;;  %v296_v39 = vpop.f32.mrf.mxu1 }
 0x122   : > { %v282_v40 = vadd.f32 %v281_v38, %v230_v25 }
 0x124   : > { %v361_v41 = vadd.f32 %v343_v24, %v282_v40 }
 0x126   : > { %v332_v42 = vpop.f32.mrf.mxu2  ;;  %v423_v43 = vpop.f32.mrf.mxu3 }
 0x129   : > { %v283_v44 = vpop.f32.mrf.mxu0  ;;  %v395_v45 = vpop.f32.mrf.mxu1 }
 0x12a   : > { %v425_v14 = vadd.f32 %v395_v45, %v360_v37 }
 0x12e   : > { %v408_v46 = vpop.f32.mrf.mxu2 }
 0x12f   : > { %v525_v47 = vpop.f32.mrf.mxu3  ;;  %v426_v11 = vadd.f32 %v408_v46, %v361_v41 }
 0x131   : > { %v356_v48 = vpop.f32.mrf.mxu0  ;;  %v397_v49 = vpop.f32.mrf.mxu1 }
 0x132   : > { %v362_v50 = vadd.f32 %v356_v48, %v295_v34 }
 0x134   : > { %v427_v51 = vadd.f32 %v421_v36, %v362_v50 }
 0x136   : > { %v410_v52 = vpop.f32.mrf.mxu2 }
 0x137   : > { %v527_v53 = vpop.f32.mrf.mxu3 }
 0x139   : > { %v358_v54 = vpop.f32.mrf.mxu0  ;;  %v473_v55 = vpop.f32.mrf.mxu1 }
 0x13a   : > { %v491_v12 = vadd.f32 %v473_v55, %v426_v11 }
 0x13e   : > { %v486_v56 = vpop.f32.mrf.mxu2 }
 0x13f   : > { %v603_v57 = vpop.f32.mrf.mxu3  ;;  %v492_v13 = vadd.f32 %v486_v56, %v427_v51 }
 0x141   : > { %v460_v58 = vpop.f32.mrf.mxu0  ;;  %v475_v59 = vpop.f32.mrf.mxu1 }
 0x142   : > { %v490_v18 = vadd.f32 %v460_v58, %v425_v14 }
 0x144   : > { %v555_v23 = vadd.f32 %v525_v47, %v490_v18 }
 0x146   : > { %v488_v60 = vpop.f32.mrf.mxu2 }
 0x147   : > { %v605_v61 = vpop.f32.mrf.mxu3 }
 0x149   : > { %v462_v62 = vpop.f32.mrf.mxu0  ;;  %v551_v63 = vpop.f32.mrf.mxu1 }
 0x14a   : > { %v557_v17 = vadd.f32 %v551_v63, %v492_v13 }
 0x14e   : > { %v590_v0 = vpop.f32.mrf.mxu2 }
 0x14f   : > { %v681_v1 = vpop.f32.mrf.mxu3  ;;  %v620_v26 = vadd.f32 %v590_v0, %v555_v23 }
 0x151   : > { %v538_v2 = vpop.f32.mrf.mxu0  ;;  %v553_v3 = vpop.f32.mrf.mxu1 }
 0x152   : > { %v556_v15 = vadd.f32 %v538_v2, %v491_v12 }
 0x154   : > { %v621_v22 = vadd.f32 %v603_v57, %v556_v15 }
 0x156   : > { %v592_v4 = vpop.f32.mrf.mxu2 }
 0x157   : > { %v683_v5 = vpop.f32.mrf.mxu3 }
 0x159   : > { %v540_v6 = vpop.f32.mrf.mxu0  ;;  %v655_v7 = vpop.f32.mrf.mxu1 }
 0x15a   : > { %v685_v31 = vadd.f32 %v655_v7, %v620_v26 }
 0x15e   : > { %v668_v8 = vpop.f32.mrf.mxu2 }
 0x15f   : > { %v686_v24 = vadd.f32 %v668_v8, %v621_v22 }
 0x161   : > { %v616_v9 = vpop.f32.mrf.mxu0  ;;  %v657_v10 = vpop.f32.mrf.mxu1 }
 0x162   : > { %v622_v19 = vadd.f32 %v616_v9, %v557_v17 }
 0x164   : > { %v687_v25 = vadd.f32 %v681_v1, %v622_v19 }
 0x166   : > { %v670_v16 = vpop.f32.mrf.mxu2 }
 0x169   : > { %v618_v20 = vpop.f32.mrf.mxu0  ;;  %v733_v21 = vpop.f32.mrf.mxu1 }
 0x16a   : > { %v751_v27 = vadd.f32 %v733_v21, %v686_v24 }
 0x16c   : > { %v760_v35 = vadd.f32 %v757_v29, %v751_v27 }
 0x16e   : > { %v746_v28 = vpop.f32.mrf.mxu2  ;;  %v763_v40 = vmax.f32 %v760_v35, 0.0 }
 0x16f   : > { %v752_v30 = vadd.f32 %v746_v28, %v687_v25 }
 0x171   : > { %v761_v32 = vadd.f32 %v757_v29, %v752_v30  ;;  %v720_v33 = vpop.f32.mrf.mxu0  ;;  %v735_v34 = vpop.f32.mrf.mxu1 }
 0x172   : > { %v750_v36 = vadd.f32 %v720_v33, %v685_v31 }
 0x173   : > { %v764_v37 = vmax.f32 %v761_v32, 0.0 }
 0x174   : > { %v759_v38 = vadd.f32 %v757_v29, %v750_v36 }
 0x175   : > { %v766_v39 = vpack.c.bf16 %v764_v37, %v764_v37 }
 0x176   : > { %v762_v41 = vmax.f32 %v759_v38, 0.0  ;;  %v748_v42 = vpop.f32.mrf.mxu2 }
 0x177   : > { %769 = vst.msk [vmem:[%s170_s24 + $0x8] sm:$0xf] %vm768_vm10, %v766_v39 }
 0x178   : > { %v765_v43 = vpack.c.bf16 %v763_v40, %v762_v41 }
 0x179   : > { %v722_v44 = vpop.f32.mrf.mxu0 }
 0x17a   : > { %767 = vst [vmem:[%s170_s24] sm:$0xff] %v765_v43 }
 0x17b PF: > { %s13_s12 = sadd.s32 1, %s894_s12  }
 0x17c   : > { %p10_p4 = scmp.ge.s32.totalorder %s13_s12, 4  }
 0x17e   :  { %12 = sbr.rel (!%p10_p4) target bundleno = 1 (0x1), region = 70 }

// kernel: feature_net_forward.10
= control target key start
LH: loop header
LB: loop body
LE: loop exit
PB: predicated region body
PF: predicated region fallthrough
CT: control target
= control target key end

     0   :  { %s1320_s12 = smov 0   ;;  %s1472_s0 = inlined_call_operand.vmem [shape: bf16[2,32,110], index: 0, kind: input, shape index: {}]   ;;  %s1473_s1 = inlined_call_operand.vmem [shape: bf16[25,16,8], index: 1, kind: input, shape index: {}]   ;;  %s1474_s2 = inlined_call_operand.vmem [shape: f32[16,1], index: 2, kind: input, shape index: {}]   ;;  %s1475_s3 = inlined_call_operand.vmem [shape: bf16[2,16,80], index: 3, kind: output, shape index: {}]  }
   0x1 LB: > { %s1053_s13 = sadd.s32 4294967295, %s1289_s12   ;;  %p1057_p0 = scmp.ge.s32.totalorder %s1289_s12, 1  ;;  %s1289_s12 = sphi %s1320_s12, %s13_s12  }
   0x2   : > { %p137_p1 = scmp.lt.s32.totalorder %s1289_s12, 3 }
   0x4   : > { %p138_p2 = pnand %p1057_p0, %p137_p1 }
   0x5   : > { %p161_p3 = scmp.lt.s32.totalorder (!%p138_p2), %s1053_s13, 1  ;;  %s1291_s18 = smov (!%p138_p2), 127  }
   0x6   : > { %141 = sbr.rel (%p138_p2) target bundleno = 378 (0x17a), region = 32  ;;  %s1292_s19 = smov (!%p138_p2), 126  }
   0x7   : > { %s1293_s20 = smov (!%p138_p2), 118   ;;  %s1294_s21 = smov (!%p138_p2), 117  }
   0x8   : > { %s1295_s26 = smov (!%p138_p2), 116   ;;  %s1296_s27 = smov (!%p138_p2), 108  }
   0x9   : > { %s1297_s28 = smov (!%p138_p2), 107   ;;  %s1298_s29 = smov (!%p138_p2), 106  }
   0xb   : > { %s1477_s13 = smov (!%p161_p3, %s1053_s13), 1  ;;  %vm188_vm0 = vcmask 1043456   ;;  %v1240_v14 = vld [vmem:[%s1473_s1 + $0x8] sm:$0xff]  ;;  %v1239_v15 = vld [vmem:[%s1473_s1] sm:$0xff]  ;;  %vm184_vm1 = vcmask 64512   ;;  %v1241_v26 = vld [vmem:[%s1473_s1 + $0x10] sm:$0xff] }
   0xc   : > { %s1237_s14 = sshll.u32 %s1477_s13, 4  ;;  %v1244_v18 = vld [vmem:[%s1473_s1 + $0x28] sm:$0xff]  ;;  %v1243_v28 = vld [vmem:[%s1473_s1 + $0x20] sm:$0xff]  ;;  %v1242_v34 = vld [vmem:[%s1473_s1 + $0x18] sm:$0xff]  ;;  %s1238_s30 = sshll.u32 %s1477_s13, 3  ;;  %vm995_vm2 = vcmask 650240  }
   0xd   : > { %s165_s17 = scalar_lea.vmem %s1472_s0, %s1237_s14  ;;  %v1245_v40 = vld [vmem:[%s1473_s1 + $0x30] sm:$0xff]  ;;  %v1247_v42 = vld [vmem:[%s1473_s1 + $0x40] sm:$0xff]  ;;  %v1248_v44 = vld [vmem:[%s1473_s1 + $0x48] sm:$0xff]  ;;  %s170_s6 = scalar_lea.vmem %s1475_s3, %s1238_s30 }
   0xe   : > { %v172_v0 = vld [vmem:[%s165_s17] sm:$0xf]  ;;  %v364_v2 = vld [vmem:[%s165_s17 + $0xc] sm:$0xf]  ;;  %v175_v3 = vld [vmem:[%s165_s17 + $0x4] sm:$0xf] }
   0xf   : > { %v240_v1 = vunpack.c.l.b16 %v172_v0  ;;  %v333_v4 = vld [vmem:[%s165_s17 + $0x8] sm:$0xf]  ;;  %v439_v5 = vunpack.c.l.b16 %v364_v2  ;;  %v275_v8 = vunpack.c.l.b16 %v175_v3  ;;  %v190_v12 = vsel %vm188_vm0, %v175_v3, 0  ;;  %v1246_v47 = vld [vmem:[%s1473_s1 + $0x38] sm:$0xff]  ;;  %v1249_v53 = vld [vmem:[%s1473_s1 + $0x50] sm:$0xff] }
  0x10   : > { %v404_v9 = vunpack.c.l.b16 %v333_v4  ;;  %v215_v13 = vsel %vm188_vm0, %v172_v0, 0  ;;  %199 = vmatpush.bf16.msra.mxu0 %v190_v12  ;;  %v346_v16 = vsel %vm188_vm0, %v333_v4, 0  ;;  %v377_v23 = vsel %vm188_vm0, %v364_v2, 0  ;;  %v1251_v54 = vld [vmem:[%s1473_s1 + $0x60] sm:$0xff]  ;;  %v1252_v56 = vld [vmem:[%s1473_s1 + $0x68] sm:$0xff]  ;;  %v1250_v61 = vld [vmem:[%s1473_s1 + $0x58] sm:$0xff] }
  0x11   : > { %v241_v6 = vpack.c.b16 %v240_v1, %v240_v1  ;;  %v440_v7 = vpack.c.b16 %v439_v5, %v439_v5  ;;  %v276_v10 = vpack.c.b16 %v275_v8, %v275_v8  ;;  %224 = vmatpush.bf16.msra.mxu1 %v215_v13  ;;  %v1253_v2 = vld [vmem:[%s1473_s1 + $0x70] sm:$0xff]  ;;  %v1255_v3 = vld [vmem:[%s1473_s1 + $0x80] sm:$0xff]  ;;  %v978_v13 = vld [vmem:[%s1474_s2 + $0x8] sm:$0xff] }
  0x12   : > { %v405_v11 = vpack.c.b16 %v404_v9, %v404_v9  ;;  %v977_v12 = vld [vmem:[%s1474_s2] sm:$0xff] }
  0x13   : > { %242 = vrot.lane.b32.xlu0 %v241_v6, %s1291_s18  ;;  %309 = vrot.lane.b32.xlu1 %v241_v6, %s1292_s19 }
  0x14   : > { %441 = vrot.lane.b32.xlu2 %v440_v7, %s1291_s18  ;;  %1068 = vmatmul.msk.bf16.vlgmr.msra.gmra.mxu0 %vm184_vm1, %v1240_v14  ;;  %v1299_v14 = vmov 0  }
  0x15   : > { %1073 = vmatmul.msk.bf16.vlgmr.msra.gmra.mxu1 %vm184_vm1, %v1239_v15  ;;  %1281 = vset.pattern.permute.xlu0 %v1299_v14  ;;  %v1257_v15 = vld [vmem:[%s1473_s1 + $0x90] sm:$0xff] }
  0x16   : > { %355 = vmatpush.bf16.msrb.mxu1 %v346_v16  ;;  %1282 = vset.pattern.permute.xlu1 %v1299_v14  ;;  %v1259_v16 = vld [vmem:[%s1473_s1 + $0xa0] sm:$0xff] }
  0x1b   : > { %277 = vrot.lane.b32.xlu0 %v276_v10, %s1291_s18  ;;  %406 = vrot.lane.b32.xlu1 %v405_v11, %s1291_s18 }
  0x1c   : > { %505 = vrot.lane.b32.xlu2 %v241_v6, %s1293_s20 }
  0x23   : > { %537 = vrot.lane.b32.xlu0 %v276_v10, %s1293_s20  ;;  %473 = vrot.lane.b32.xlu1 %v405_v11, %s1292_s19 }
  0x24   : > { %569 = vrot.lane.b32.xlu2 %v241_v6, %s1294_s21 }
  0x25   : > { %1101 = vmatmul.msk.bf16.vlgmr.msrb.gmra.mxu1 %vm184_vm1, %v1244_v18  ;;  %v1258_v18 = vld [vmem:[%s1473_s1 + $0x98] sm:$0xff] }
  0x2b   : > { %633 = vrot.lane.b32.xlu0 %v241_v6, %s1295_s26  ;;  %665 = vrot.lane.b32.xlu1 %v405_v11, %s1293_s20 }
  0x2c   : > { %601 = vrot.lane.b32.xlu2 %v276_v10, %s1294_s21 }
  0x33   : > { %697 = vrot.lane.b32.xlu0 %v440_v7, %s1293_s20  ;;  %761 = vrot.lane.b32.xlu1 %v440_v7, %s1294_s21 }
  0x34   : > { %793 = vrot.lane.b32.xlu2 %v405_v11, %s1295_s26 }
  0x3b   : > { %729 = vrot.lane.b32.xlu0 %v405_v11, %s1294_s21  ;;  %825 = vrot.lane.b32.xlu1 %v241_v6, %s1296_s27 }
  0x3c   : > { %889 = vrot.lane.b32.xlu2 %v241_v6, %s1297_s28 }
  0x43   : > { %921 = vrot.lane.b32.xlu0 %v276_v10, %s1297_s28  ;;  %857 = vrot.lane.b32.xlu1 %v276_v10, %s1296_s27  ;;  %v1254_v10 = vld [vmem:[%s1473_s1 + $0x78] sm:$0xff] }
  0x44   : > { %953 = vrot.lane.b32.xlu2 %v241_v6, %s1298_s29  ;;  %v1256_v6 = vld [vmem:[%s1473_s1 + $0x88] sm:$0xff] }
  0x4b   : > { %981 = vperm.xlu0 %1281, %v977_v12   ;;  %986 = vperm.xlu1 %1282, %v978_v13  }
  0x6e   : > { %v442_v17 = vpop.permute.xlu2 %441 }
  0x6f   : > { %v447_v24 = vsel %vm188_vm0, %v442_v17, 0  ;;  %v1260_v17 = vld [vmem:[%s1473_s1 + $0xa8] sm:$0xff] }
  0x76   : > { %v506_v19 = vpop.permute.xlu2 %505 }
  0x77   : > { %v511_v29 = vsel %vm188_vm0, %v506_v19, 0  ;;  %v1261_v19 = vld [vmem:[%s1473_s1 + $0xb0] sm:$0xff] }
  0x7e   : > { %v570_v20 = vpop.permute.xlu2 %569 }
  0x7f   : > { %v575_v30 = vsel %vm188_vm0, %v570_v20, 0  ;;  %v1263_v20 = vld [vmem:[%s1473_s1 + $0xc0] sm:$0xff] }
  0x85   : > { %v243_v21 = vpop.permute.xlu0 %242  ;;  %v310_v22 = vpop.permute.xlu1 %309 }
  0x86   : > { %v248_v25 = vsel %vm188_vm0, %v243_v21, 0  ;;  %v315_v27 = vsel %vm188_vm0, %v310_v22, 0  ;;  %v602_v36 = vpop.permute.xlu2 %601  ;;  %v1262_v21 = vld [vmem:[%s1473_s1 + $0xb8] sm:$0xff] }
  0x87   : > { %257 = vmatpush.bf16.msra.mxu2 %v248_v25  ;;  %324 = vmatpush.bf16.msrb.mxu0 %v315_v27  ;;  %v607_v39 = vsel %vm188_vm0, %v602_v36, 0 }
  0x8a   : > { %1080 = vmatmul.msk.bf16.vlgmr.msra.gmra.mxu2 %vm184_vm1, %v1241_v26  ;;  %1094 = vmatmul.msk.bf16.vlgmr.msrb.gmra.mxu0 %vm184_vm1, %v1243_v28 }
  0x8b   : > { %386 = vmatpush.bf16.msrb.mxu2 %v377_v23  ;;  %456 = vmatpush.bf16.msra.mxu0 %v447_v24 }
  0x8d   : > { %v278_v31 = vpop.permute.xlu0 %277  ;;  %v407_v32 = vpop.permute.xlu1 %406 }
  0x8e   : > { %v283_v33 = vsel %vm188_vm0, %v278_v31, 0  ;;  %v412_v35 = vsel %vm188_vm0, %v407_v32, 0  ;;  %v794_v50 = vpop.permute.xlu2 %793 }
  0x8f   : > { %520 = vmatpush.bf16.msra.mxu2 %v511_v29  ;;  %584 = vmatpush.bf16.msrb.mxu0 %v575_v30  ;;  %v799_v0 = vsel %vm188_vm0, %v794_v50, 0 }
  0x90   : > { %292 = vmatpush.bf16.msra.mxu3 %v283_v33 }
  0x91   : > { %v201_v22 = vpop.f32.mrf.mxu0 }
  0x92   : > { %v226_v23 = vpop.f32.mrf.mxu1 }
  0x93   : > { %1087 = vmatmul.msk.bf16.vlgmr.msra.gmra.mxu3 %vm184_vm1, %v1242_v34 }
  0x94   : > { %421 = vmatpush.bf16.msrb.mxu3 %v412_v35 }
  0x95   : > { %v538_v37 = vpop.permute.xlu0 %537  ;;  %v474_v38 = vpop.permute.xlu1 %473 }
  0x96   : > { %v543_v41 = vsel %vm188_vm0, %v538_v37, 0  ;;  %v479_v43 = vsel %vm188_vm0, %v474_v38, 0  ;;  %v890_v58 = vpop.permute.xlu2 %889 }
  0x97   : > { %488 = vmatpush.bf16.msra.mxu1 %v479_v43  ;;  %v895_v7 = vsel %vm188_vm0, %v890_v58, 0 }
  0x98   : > { %552 = vmatpush.bf16.msra.mxu3 %v543_v41 }
  0x99   : > { %v203_v24 = vpop.f32.mrf.mxu0 }
  0x9a   : > { %1108 = vmatmul.msk.bf16.vlgmr.msrb.gmra.mxu2 %vm184_vm1, %v1245_v40  ;;  %1122 = vmatmul.msk.bf16.vlgmr.msra.gmra.mxu0 %vm184_vm1, %v1247_v42  ;;  %v228_v25 = vpop.f32.mrf.mxu1  ;;  %v227_v40 = vadd.f32 %v226_v23, %v201_v22 }
  0x9b   : > { %616 = vmatpush.bf16.msrb.mxu1 %v607_v39 }
  0x9c   : > { %1129 = vmatmul.msk.bf16.vlgmr.msra.gmra.mxu1 %vm184_vm1, %v1248_v44 }
  0x9d   : > { %v634_v45 = vpop.permute.xlu0 %633  ;;  %v666_v46 = vpop.permute.xlu1 %665 }
  0x9e   : > { %v639_v48 = vsel %vm188_vm0, %v634_v45, 0  ;;  %v671_v49 = vsel %vm188_vm0, %v666_v46, 0  ;;  %v954_v5 = vpop.permute.xlu2 %953 }
  0x9f   : > { %648 = vmatpush.bf16.msrb.mxu2 %v639_v48  ;;  %v959_v8 = vsel %vm188_vm0, %v954_v5, 0 }
  0xa2   : > { %v357_v27 = vpop.f32.mrf.mxu1 }
  0xa3   : > { %1115 = vmatmul.msk.bf16.vlgmr.msrb.gmra.mxu3 %vm184_vm1, %v1246_v47  ;;  %v229_v47 = vadd.f32 %v228_v25, %v203_v24 }
  0xa4   : > { %680 = vmatpush.bf16.msrb.mxu3 %v671_v49 }
  0xa5   : > { %v698_v51 = vpop.permute.xlu0 %697  ;;  %v762_v52 = vpop.permute.xlu1 %761 }
  0xa6   : > { %v703_v55 = vsel %vm188_vm0, %v698_v51, 0  ;;  %v767_v57 = vsel %vm188_vm0, %v762_v52, 0 }
  0xa7   : > { %712 = vmatpush.bf16.msra.mxu0 %v703_v55 }
  0xaa   : > { %1136 = vmatmul.msk.bf16.vlgmr.msra.gmra.mxu2 %vm184_vm1, %v1249_v53  ;;  %1150 = vmatmul.msk.bf16.vlgmr.msrb.gmra.mxu0 %vm184_vm1, %v1251_v54  ;;  %v359_v32 = vpop.f32.mrf.mxu1 }
  0xab   : > { %776 = vmatpush.bf16.msra.mxu2 %v767_v57 }
  0xac   : > { %1157 = vmatmul.msk.bf16.vlgmr.msrb.gmra.mxu1 %vm184_vm1, %v1252_v56 }
  0xad   : > { %v730_v59 = vpop.permute.xlu0 %729  ;;  %v826_v60 = vpop.permute.xlu1 %825 }
  0xae   : > { %v735_v62 = vsel %vm188_vm0, %v730_v59, 0  ;;  %v831_v63 = vsel %vm188_vm0, %v826_v60, 0 }
  0xaf   : > { %744 = vmatpush.bf16.msra.mxu1 %v735_v62  ;;  %840 = vmatpush.bf16.msrb.mxu0 %v831_v63 }
  0xb3   : > { %1143 = vmatmul.msk.bf16.vlgmr.msra.gmra.mxu3 %vm184_vm1, %v1250_v61 }
  0xb4   : > { %808 = vmatpush.bf16.msra.mxu3 %v799_v0 }
  0xb5   : > { %v858_v1 = vpop.permute.xlu1 %857  ;;  %v922_v9 = vpop.permute.xlu0 %921 }
  0xb6   : > { %v863_v4 = vsel %vm188_vm0, %v858_v1, 0  ;;  %v927_v11 = vsel %vm188_vm0, %v922_v9, 0 }
  0xb7   : > { %872 = vmatpush.bf16.msrb.mxu1 %v863_v4 }
  0xba   : > { %1164 = vmatmul.msk.bf16.vlgmr.msrb.gmra.mxu2 %vm184_vm1, %v1253_v2  ;;  %1178 = vmatmul.msk.bf16.vlgmr.msra.gmra.mxu0 %vm184_vm1, %v1255_v3 }
  0xbb   : > { %904 = vmatpush.bf16.msrb.mxu2 %v895_v7  ;;  %968 = vmatpush.bf16.msra.mxu0 %v959_v8 }
  0xbc   : > { %1185 = vmatmul.msk.bf16.vlgmr.msra.gmra.mxu1 %vm184_vm1, %v1256_v6 }
  0xc3   : > { %1171 = vmatmul.msk.bf16.vlgmr.msrb.gmra.mxu3 %vm184_vm1, %v1254_v10 }
  0xc4   : > { %936 = vmatpush.bf16.msrb.mxu3 %v927_v11 }
  0xca   : > { %1192 = vmatmul.msk.bf16.vlgmr.msra.gmra.mxu2 %vm184_vm1, %v1257_v15  ;;  %1206 = vmatmul.msk.bf16.vlgmr.msrb.gmra.mxu0 %vm184_vm1, %v1259_v16 }
  0xcc   : > { %1213 = vmatmul.msk.bf16.vlgmr.msrb.gmra.mxu1 %vm184_vm1, %v1260_v17 }
  0xd3   : > { %1199 = vmatmul.msk.bf16.vlgmr.msra.gmra.mxu3 %vm184_vm1, %v1258_v18 }
  0xda   : > { %1220 = vmatmul.msk.bf16.vlgmr.msrb.gmra.mxu2 %vm184_vm1, %v1261_v19  ;;  %1234 = vmatmul.msk.bf16.vlgmr.msra.gmra.mxu0 %vm184_vm1, %v1263_v20 }
  0xe3   : > { %1227 = vmatmul.msk.bf16.vlgmr.msrb.gmra.mxu3 %vm184_vm1, %v1262_v21 }
 0x107   : > { %v326_v26 = vpop.f32.mrf.mxu0 }
 0x10d   : > { %v259_v28 = vpop.f32.mrf.mxu2 }
 0x10e   : > { %v264_v41 = vadd.f32 %v259_v28, %v227_v40 }
 0x10f   : > { %v328_v29 = vpop.f32.mrf.mxu0 }
 0x115   : > { %v261_v30 = vpop.f32.mrf.mxu2 }
 0x116   : > { %v294_v31 = vpop.f32.mrf.mxu3  ;;  %v265_v49 = vadd.f32 %v261_v30, %v229_v47 }
 0x117   : > { %v458_v33 = vpop.f32.mrf.mxu0  ;;  %v299_v43 = vadd.f32 %v294_v31, %v264_v41 }
 0x119   : > { %v490_v37 = vpop.f32.mrf.mxu1  ;;  %v331_v48 = vadd.f32 %v326_v26, %v299_v43 }
 0x11b   : > { %v362_v50 = vadd.f32 %v357_v27, %v331_v48  ;;  %v982_v48 = vpop.permute.xlu0 %981 }
 0x11d   : > { %v388_v35 = vpop.f32.mrf.mxu2 }
 0x11e   : > { %v296_v34 = vpop.f32.mrf.mxu3  ;;  %v393_v53 = vadd.f32 %v388_v35, %v362_v50 }
 0x11f   : > { %v460_v36 = vpop.f32.mrf.mxu0  ;;  %v300_v51 = vadd.f32 %v296_v34, %v265_v49 }
 0x121   : > { %v492_v44 = vpop.f32.mrf.mxu1  ;;  %v332_v57 = vadd.f32 %v328_v29, %v300_v51 }
 0x123   : > { %v363_v59 = vadd.f32 %v359_v32, %v332_v57 }
 0x125   : > { %v390_v38 = vpop.f32.mrf.mxu2 }
 0x126   : > { %v423_v39 = vpop.f32.mrf.mxu3  ;;  %v394_v61 = vadd.f32 %v390_v38, %v363_v59  ;;  %v987_v59 = vpop.permute.xlu1 %986 }
 0x127   : > { %v586_v42 = vpop.f32.mrf.mxu0  ;;  %v428_v58 = vadd.f32 %v423_v39, %v393_v53 }
 0x129   : > { %v618_v54 = vpop.f32.mrf.mxu1  ;;  %v463_v60 = vadd.f32 %v458_v33, %v428_v58 }
 0x12b   : > { %v495_v1 = vadd.f32 %v490_v37, %v463_v60 }
 0x12d   : > { %v522_v46 = vpop.f32.mrf.mxu2 }
 0x12e   : > { %v425_v45 = vpop.f32.mrf.mxu3  ;;  %v527_v4 = vadd.f32 %v522_v46, %v495_v1 }
 0x12f   : > { %v588_v52 = vpop.f32.mrf.mxu0  ;;  %v429_v2 = vadd.f32 %v425_v45, %v394_v61 }
 0x131   : > { %v620_v3 = vpop.f32.mrf.mxu1  ;;  %v464_v5 = vadd.f32 %v460_v36, %v429_v2 }
 0x133   : > { %v496_v9 = vadd.f32 %v492_v44, %v464_v5 }
 0x135   : > { %v524_v55 = vpop.f32.mrf.mxu2 }
 0x136   : > { %v554_v56 = vpop.f32.mrf.mxu3  ;;  %v528_v12 = vadd.f32 %v524_v55, %v496_v9 }
 0x137   : > { %v714_v62 = vpop.f32.mrf.mxu0  ;;  %v559_v6 = vadd.f32 %v554_v56, %v527_v4 }
 0x139   : > { %v591_v10 = vadd.f32 %v586_v42, %v559_v6  ;;  %v746_v13 = vpop.f32.mrf.mxu1 }
 0x13b   : > { %v623_v14 = vadd.f32 %v618_v54, %v591_v10 }
 0x13d   : > { %v650_v0 = vpop.f32.mrf.mxu2 }
 0x13e   : > { %v556_v63 = vpop.f32.mrf.mxu3  ;;  %v655_v16 = vadd.f32 %v650_v0, %v623_v14 }
 0x13f   : > { %v716_v11 = vpop.f32.mrf.mxu0  ;;  %v560_v15 = vadd.f32 %v556_v63, %v528_v12 }
 0x141   : > { %v592_v19 = vadd.f32 %v588_v52, %v560_v15  ;;  %v748_v24 = vpop.f32.mrf.mxu1 }
 0x143   : > { %v624_v22 = vadd.f32 %v620_v3, %v592_v19 }
 0x145   : > { %v652_v7 = vpop.f32.mrf.mxu2 }
 0x146   : > { %v682_v8 = vpop.f32.mrf.mxu3  ;;  %v656_v25 = vadd.f32 %v652_v7, %v624_v22 }
 0x147   : > { %v687_v20 = vadd.f32 %v682_v8, %v655_v16  ;;  %v842_v21 = vpop.f32.mrf.mxu0 }
 0x149   : > { %v719_v23 = vadd.f32 %v714_v62, %v687_v20  ;;  %v874_v34 = vpop.f32.mrf.mxu1 }
 0x14b   : > { %v751_v28 = vadd.f32 %v746_v13, %v719_v23 }
 0x14d   : > { %v778_v18 = vpop.f32.mrf.mxu2 }
 0x14e   : > { %v684_v17 = vpop.f32.mrf.mxu3  ;;  %v783_v30 = vadd.f32 %v778_v18, %v751_v28 }
 0x14f   : > { %v688_v29 = vadd.f32 %v684_v17, %v656_v25  ;;  %v844_v33 = vpop.f32.mrf.mxu0 }
 0x151   : > { %v720_v31 = vadd.f32 %v716_v11, %v688_v29  ;;  %v876_v47 = vpop.f32.mrf.mxu1 }
 0x153   : > { %v752_v36 = vadd.f32 %v748_v24, %v720_v31 }
 0x155   : > { %v780_v26 = vpop.f32.mrf.mxu2 }
 0x156   : > { %v810_v27 = vpop.f32.mrf.mxu3  ;;  %v784_v39 = vadd.f32 %v780_v26, %v752_v36 }
 0x157   : > { %v815_v32 = vadd.f32 %v810_v27, %v783_v30  ;;  %v970_v43 = vpop.f32.mrf.mxu0 }
 0x159   : > { %v847_v37 = vadd.f32 %v842_v21, %v815_v32 }
 0x15b   : > { %v879_v40 = vadd.f32 %v874_v34, %v847_v37 }
 0x15d   : > { %v906_v38 = vpop.f32.mrf.mxu2 }
 0x15e   : > { %v812_v35 = vpop.f32.mrf.mxu3  ;;  %v911_v42 = vadd.f32 %v906_v38, %v879_v40 }
 0x15f   : > { %v816_v41 = vadd.f32 %v812_v35, %v784_v39  ;;  %v972_v58 = vpop.f32.mrf.mxu0 }
 0x161   : > { %v848_v45 = vadd.f32 %v844_v33, %v816_v41 }
 0x163   : > { %v880_v51 = vadd.f32 %v876_v47, %v848_v45 }
 0x165   : > { %v908_v50 = vpop.f32.mrf.mxu2 }
 0x166   : > { %v938_v44 = vpop.f32.mrf.mxu3  ;;  %v912_v53 = vadd.f32 %v908_v50, %v880_v51 }
 0x167   : > { %v943_v46 = vadd.f32 %v938_v44, %v911_v42 }
 0x169   : > { %v975_v49 = vadd.f32 %v970_v43, %v943_v46 }
 0x16b   : > { %v989_v52 = vadd.f32 %v982_v48, %v975_v49 }
 0x16d   : > { %v991_v54 = vmax.f32 %v989_v52, 0.0 }
 0x16e   : > { %v940_v55 = vpop.f32.mrf.mxu3 }
 0x16f   : > { %v993_v56 = vpack.c.bf16 %v991_v54, %v991_v54  ;;  %v944_v57 = vadd.f32 %v940_v55, %v912_v53 }
 0x171   : > { %996 = vst.msk [vmem:[%s170_s6] sm:$0xf] %vm995_vm2, %v993_v56  ;;  %v976_v60 = vadd.f32 %v972_v58, %v944_v57 }
 0x173   : > { %v990_v61 = vadd.f32 %v987_v59, %v976_v60 }
 0x175   : > { %v992_v62 = vmax.f32 %v990_v61, 0.0 }
 0x177   : > { %v994_v63 = vpack.c.bf16 %v992_v62, %v992_v62 }
 0x179   : > { %997 = vst.msk [vmem:[%s170_s6 + $0x4] sm:$0xf] %vm995_vm2, %v994_v63 }
 0x17a PF: > { %s13_s12 = sadd.s32 1, %s1289_s12  }
 0x17b   : > { %p10_p4 = scmp.ge.s32.totalorder %s13_s12, 4  }
 0x17d   :  { %12 = sbr.rel (!%p10_p4) target bundleno = 1 (0x1), region = 86 }

// kernel: feature_net_forward.11
= control target key start
LH: loop header
LB: loop body
LE: loop exit
PB: predicated region body
PF: predicated region fallthrough
CT: control target
= control target key end

     0   :  { %s663_s12 = smov 0   ;;  %s729_s0 = inlined_call_operand.vmem [shape: bf16[2,16,110], index: 0, kind: input, shape index: {}]   ;;  %s730_s1 = inlined_call_operand.vmem [shape: bf16[9,16,16], index: 1, kind: input, shape index: {}]   ;;  %s731_s2 = inlined_call_operand.vmem [shape: f32[16,1], index: 2, kind: input, shape index: {}]   ;;  %s732_s3 = inlined_call_operand.vmem [shape: bf16[2,16,80], index: 3, kind: output, shape index: {}]  }
   0x1 LB: > { %s519_s13 = sadd.s32 4294967295, %s632_s12   ;;  %p523_p0 = scmp.ge.s32.totalorder %s632_s12, 1  ;;  %s632_s12 = sphi %s663_s12, %s13_s12  }
   0x2   : > { %p137_p1 = scmp.lt.s32.totalorder %s632_s12, 3 }
   0x4   : > { %p138_p2 = pnand %p523_p0, %p137_p1 }
   0x5   : > { %p161_p3 = scmp.lt.s32.totalorder (!%p138_p2), %s519_s13, 1  ;;  %s634_s18 = smov (!%p138_p2), 118  }
   0x6   : > { %141 = sbr.rel (%p138_p2) target bundleno = 310 (0x136), region = 32  ;;  %s635_s19 = smov (!%p138_p2), 127  }
   0x7   : > { %s636_s20 = smov (!%p138_p2), 108   ;;  %s637_s21 = smov (!%p138_p2), 117  }
   0x8   : > { %s638_s22 = smov (!%p138_p2), 126   ;;  %s639_s23 = smov (!%p138_p2), 107  }
   0x9   : > { %s640_s24 = smov (!%p138_p2), 116   ;;  %s641_s25 = smov (!%p138_p2), 106  }
   0xb   : > { %s734_s13 = smov (!%p161_p3, %s519_s13), 1  ;;  %vm192_vm0 = vcmask 130048   ;;  %v598_v1 = vld [vmem:[%s730_s1] sm:$0xff]  ;;  %v599_v6 = vld [vmem:[%s730_s1 + $0x8] sm:$0xff]  ;;  %v601_v7 = vld [vmem:[%s730_s1 + $0x18] sm:$0xff]  ;;  %v642_v10 = vmov 0  }
   0xc   : > { %s595_s14 = sshll.u32 %s734_s13, 3  ;;  %v444_v8 = vld [vmem:[%s731_s2 + $0x8] sm:$0xff]  ;;  %v443_v9 = vld [vmem:[%s731_s2] sm:$0xff]  ;;  %625 = vset.pattern.permute.xlu0 %v642_v10  ;;  %624 = vset.pattern.permute.xlu2 %v642_v10  ;;  %v600_v13 = vld [vmem:[%s730_s1 + $0x10] sm:$0xff]  ;;  %vm461_vm1 = vcmask 650240  }
   0xd   : > { %s165_s17 = scalar_lea.vmem %s729_s0, %s595_s14  ;;  %v602_v15 = vld [vmem:[%s730_s1 + $0x20] sm:$0xff]  ;;  %v603_v17 = vld [vmem:[%s730_s1 + $0x28] sm:$0xff]  ;;  %v605_v18 = vld [vmem:[%s730_s1 + $0x38] sm:$0xff]  ;;  %s170_s26 = scalar_lea.vmem %s732_s3, %s595_s14 }
   0xe   : > { %v597_v0 = vld [vmem:[%s165_s17] sm:$0xff]  ;;  %v604_v19 = vld [vmem:[%s730_s1 + $0x30] sm:$0xff] }
   0xf   : > { %271 = vrot.lane.b32.xlu1 %v597_v0, %s634_s18  ;;  %189 = vrot.lane.b32.xlu0 %v597_v0, %s635_s19  ;;  %v606_v20 = vld [vmem:[%s730_s1 + $0x40] sm:$0xff] }
  0x10   : > { %361 = vrot.lane.b32.xlu2 %v597_v0, %s636_s20  ;;  %226 = vmatpush.bf16.msra.mxu1 %v597_v0 }
  0x13   : > { %543 = vmatmul.msk.bf16.vlgmr.msra.gmra.mxu1 %vm192_vm0, %v598_v1 }
  0x17   : > { %301 = vrot.lane.b32.xlu1 %v597_v0, %s637_s21  ;;  %241 = vrot.lane.b32.xlu0 %v597_v0, %s638_s22 }
  0x18   : > { %391 = vrot.lane.b32.xlu2 %v597_v0, %s639_s23 }
  0x1f   : > { %331 = vrot.lane.b32.xlu0 %v597_v0, %s640_s24  ;;  %421 = vrot.lane.b32.xlu1 %v597_v0, %s641_s25 }
  0x20   : > { %447 = vperm.xlu2 %624, %v443_v9  }
  0x27   : > { %452 = vperm.xlu0 %625, %v444_v8  }
  0x6a   : > { %v362_v2 = vpop.permute.xlu2 %361 }
  0x72   : > { %v392_v3 = vpop.permute.xlu2 %391 }
  0x7a   : > { %v448_v47 = vpop.permute.xlu2 %447 }
  0x81   : > { %v272_v4 = vpop.permute.xlu1 %271  ;;  %v190_v5 = vpop.permute.xlu0 %189 }
  0x82   : > { %203 = vmatpush.bf16.msra.mxu0 %v190_v5  ;;  %284 = vmatpush.bf16.msra.mxu3 %v272_v4 }
  0x85   : > { %538 = vmatmul.msk.bf16.vlgmr.msra.gmra.mxu0 %vm192_vm0, %v599_v6  ;;  %557 = vmatmul.msk.bf16.vlgmr.msra.gmra.mxu3 %vm192_vm0, %v601_v7 }
  0x86   : > { %404 = vmatpush.bf16.msrb.mxu3 %v392_v3 }
  0x89   : > { %v302_v11 = vpop.permute.xlu1 %301  ;;  %v242_v12 = vpop.permute.xlu0 %241 }
  0x8a   : > { %254 = vmatpush.bf16.msra.mxu2 %v242_v12  ;;  %314 = vmatpush.bf16.msrb.mxu0 %v302_v11 }
  0x8d   : > { %550 = vmatmul.msk.bf16.vlgmr.msra.gmra.mxu2 %vm192_vm0, %v600_v13 }
  0x8e   : > { %374 = vmatpush.bf16.msrb.mxu2 %v362_v2 }
  0x90   : > { %v228_v22 = vpop.f32.mrf.mxu1 }
  0x91   : > { %v332_v14 = vpop.permute.xlu0 %331  ;;  %v422_v16 = vpop.permute.xlu1 %421 }
  0x92   : > { %344 = vmatpush.bf16.msrb.mxu1 %v332_v14  ;;  %434 = vmatpush.bf16.msra.mxu0 %v422_v16 }
  0x95   : > { %564 = vmatmul.msk.bf16.vlgmr.msrb.gmra.mxu0 %vm192_vm0, %v602_v15  ;;  %571 = vmatmul.msk.bf16.vlgmr.msrb.gmra.mxu1 %vm192_vm0, %v603_v17 }
  0x96   : > { %585 = vmatmul.msk.bf16.vlgmr.msrb.gmra.mxu3 %vm192_vm0, %v605_v18 }
  0x98   : > { %v230_v27 = vpop.f32.mrf.mxu1 }
  0x99   : > { %v453_v58 = vpop.permute.xlu0 %452 }
  0x9d   : > { %578 = vmatmul.msk.bf16.vlgmr.msrb.gmra.mxu2 %vm192_vm0, %v604_v19 }
  0xa5   : > { %592 = vmatmul.msk.bf16.vlgmr.msra.gmra.mxu0 %vm192_vm0, %v606_v20 }
 0x102   : > { %v205_v21 = vpop.f32.mrf.mxu0 }
 0x103   : > { %v229_v26 = vadd.f32 %v228_v22, %v205_v21 }
 0x108   : > { %v286_v24 = vpop.f32.mrf.mxu3 }
 0x10a   : > { %v207_v23 = vpop.f32.mrf.mxu0 }
 0x10b   : > { %v231_v33 = vadd.f32 %v230_v27, %v207_v23 }
 0x110   : > { %v256_v25 = vpop.f32.mrf.mxu2  ;;  %v288_v30 = vpop.f32.mrf.mxu3 }
 0x111   : > { %v261_v29 = vadd.f32 %v256_v25, %v229_v26 }
 0x112   : > { %v316_v28 = vpop.f32.mrf.mxu0  ;;  %v346_v34 = vpop.f32.mrf.mxu1 }
 0x113   : > { %v291_v31 = vadd.f32 %v286_v24, %v261_v29 }
 0x115   : > { %v321_v36 = vadd.f32 %v316_v28, %v291_v31 }
 0x117   : > { %v351_v38 = vadd.f32 %v346_v34, %v321_v36 }
 0x118   : > { %v258_v32 = vpop.f32.mrf.mxu2 }
 0x119   : > { %v262_v37 = vadd.f32 %v258_v32, %v231_v33  ;;  %v406_v40 = vpop.f32.mrf.mxu3 }
 0x11a   : > { %v318_v35 = vpop.f32.mrf.mxu0  ;;  %v348_v46 = vpop.f32.mrf.mxu1 }
 0x11b   : > { %v292_v39 = vadd.f32 %v288_v30, %v262_v37 }
 0x11d   : > { %v322_v44 = vadd.f32 %v318_v35, %v292_v39 }
 0x11f   : > { %v352_v49 = vadd.f32 %v348_v46, %v322_v44 }
 0x120   : > { %v376_v41 = vpop.f32.mrf.mxu2 }
 0x121   : > { %v381_v42 = vadd.f32 %v376_v41, %v351_v38  ;;  %v408_v54 = vpop.f32.mrf.mxu3 }
 0x122   : > { %v436_v43 = vpop.f32.mrf.mxu0 }
 0x123   : > { %v411_v45 = vadd.f32 %v406_v40, %v381_v42 }
 0x125   : > { %v441_v48 = vadd.f32 %v436_v43, %v411_v45 }
 0x127   : > { %v455_v50 = vadd.f32 %v448_v47, %v441_v48 }
 0x128   : > { %v378_v51 = vpop.f32.mrf.mxu2 }
 0x129   : > { %v457_v52 = vmax.f32 %v455_v50, 0.0  ;;  %v382_v53 = vadd.f32 %v378_v51, %v352_v49 }
 0x12a   : > { %v438_v57 = vpop.f32.mrf.mxu0 }
 0x12b   : > { %v459_v55 = vpack.c.bf16 %v457_v52, %v457_v52  ;;  %v412_v56 = vadd.f32 %v408_v54, %v382_v53 }
 0x12d   : > { %462 = vst.msk [vmem:[%s170_s26] sm:$0xf] %vm461_vm1, %v459_v55  ;;  %v442_v59 = vadd.f32 %v438_v57, %v412_v56 }
 0x12f   : > { %v456_v60 = vadd.f32 %v453_v58, %v442_v59 }
 0x131   : > { %v458_v61 = vmax.f32 %v456_v60, 0.0 }
 0x133   : > { %v460_v62 = vpack.c.bf16 %v458_v61, %v458_v61 }
 0x135   : > { %463 = vst.msk [vmem:[%s170_s26 + $0x4] sm:$0xf] %vm461_vm1, %v460_v62 }
 0x136 PF: > { %s13_s12 = sadd.s32 1, %s632_s12  }
 0x137   : > { %p10_p4 = scmp.ge.s32.totalorder %s13_s12, 4  }
 0x139   :  { %12 = sbr.rel (!%p10_p4) target bundleno = 1 (0x1), region = 70 }

// kernel: feature_net_forward.15
= control target key start
LH: loop header
LB: loop body
LE: loop exit
PB: predicated region body
PF: predicated region fallthrough
CT: control target
= control target key end

     0   :  { %s938_s12 = smov 0   ;;  %s1056_s0 = inlined_call_operand.vmem [shape: bf16[2,32,42], index: 0, kind: input, shape index: {}]   ;;  %s1057_s1 = inlined_call_operand.vmem [shape: bf16[9,32,32], index: 1, kind: input, shape index: {}]   ;;  %s1058_s2 = inlined_call_operand.vmem [shape: f32[32,1], index: 2, kind: input, shape index: {}]   ;;  %s1059_s3 = inlined_call_operand.vmem [shape: bf16[2,32,24], index: 3, kind: output, shape index: {}]  }
   0x1 LB: > { %s716_s13 = sadd.s32 4294967295, %s907_s12   ;;  %p720_p0 = scmp.ge.s32.totalorder %s907_s12, 1  ;;  %s907_s12 = sphi %s938_s12, %s13_s12  }
   0x2   : > { %p137_p1 = scmp.lt.s32.totalorder %s907_s12, 3 }
   0x4   : > { %p138_p2 = pnand %p720_p0, %p137_p1 }
   0x5   : > { %p161_p3 = scmp.lt.s32.totalorder (!%p138_p2), %s716_s13, 1  ;;  %s909_s18 = smov (!%p138_p2), 126  }
   0x6   : > { %141 = sbr.rel (%p138_p2) target bundleno = 353 (0x161), region = 32  ;;  %s910_s19 = smov (!%p138_p2), 127  }
   0x7   : > { %s911_s20 = smov (!%p138_p2), 122   ;;  %s912_s21 = smov (!%p138_p2), 121  }
   0x8   : > { %s913_s22 = smov (!%p138_p2), 116   ;;  %s914_s23 = smov (!%p138_p2), 115  }
   0x9   : > { %s915_s24 = smov (!%p138_p2), 120   ;;  %s916_s25 = smov (!%p138_p2), 114  }
   0xb   : > { %s1061_s13 = smov (!%p161_p3, %s716_s13), 1  ;;  %v865_v7 = vld [vmem:[%s1057_s1 + $0x20] sm:$0xff]  ;;  %v863_v11 = vld [vmem:[%s1057_s1 + $0x10] sm:$0xff]  ;;  %vm211_vm0 = vcmask 261120   ;;  %v864_v12 = vld [vmem:[%s1057_s1 + $0x18] sm:$0xff]  ;;  %v917_v32 = vmov 0  }
   0xc   : > { %s857_s14 = sshll.u32 %s1061_s13, 4  ;;  %v867_v13 = vld [vmem:[%s1057_s1 + $0x30] sm:$0xff]  ;;  %v866_v17 = vld [vmem:[%s1057_s1 + $0x28] sm:$0xff]  ;;  %v869_v20 = vld [vmem:[%s1057_s1 + $0x40] sm:$0xff]  ;;  %898 = vset.pattern.permute.xlu1 %v917_v32  ;;  %900 = vset.pattern.permute.xlu0 %v917_v32  ;;  %vm656_vm1 = vcmask 191488  }
   0xd   : > { %s165_s17 = scalar_lea.vmem %s1056_s0, %s857_s14  ;;  %v861_v21 = vld [vmem:[%s1057_s1] sm:$0xff]  ;;  %v868_v22 = vld [vmem:[%s1057_s1 + $0x38] sm:$0xff]  ;;  %v870_v26 = vld [vmem:[%s1057_s1 + $0x48] sm:$0xff]  ;;  %899 = vset.pattern.permute.xlu2 %v917_v32 }
   0xe   : > { %v860_v0 = vld [vmem:[%s165_s17 + $0x8] sm:$0xff]  ;;  %v859_v1 = vld [vmem:[%s165_s17] sm:$0xff]  ;;  %v875_v29 = vld [vmem:[%s1057_s1 + $0x70] sm:$0xff] }
   0xf   : > { %291 = vrot.lane.b32.xlu1 %v860_v0, %s909_s18  ;;  %207 = vrot.lane.b32.xlu0 %v860_v0, %s910_s19  ;;  %v873_v25 = vld [vmem:[%s1057_s1 + $0x60] sm:$0xff]  ;;  %v862_v28 = vld [vmem:[%s1057_s1 + $0x8] sm:$0xff] }
  0x10   : > { %289 = vrot.lane.b32.xlu2 %v859_v1, %s909_s18  ;;  %v624_v30 = vld [vmem:[%s1058_s2] sm:$0xff]  ;;  %v626_v31 = vld [vmem:[%s1058_s2 + $0x10] sm:$0xff]  ;;  %v625_v33 = vld [vmem:[%s1058_s2 + $0x8] sm:$0xff] }
  0x11   : > { %v627_v34 = vld [vmem:[%s1058_s2 + $0x18] sm:$0xff]  ;;  %v874_v35 = vld [vmem:[%s1057_s1 + $0x68] sm:$0xff]  ;;  %v877_v36 = vld [vmem:[%s1057_s1 + $0x80] sm:$0xff] }
  0x12   : > { %v871_v37 = vld [vmem:[%s1057_s1 + $0x50] sm:$0xff]  ;;  %v876_v38 = vld [vmem:[%s1057_s1 + $0x78] sm:$0xff]  ;;  %v878_v39 = vld [vmem:[%s1057_s1 + $0x88] sm:$0xff] }
  0x13   : > { %v872_v40 = vld [vmem:[%s1057_s1 + $0x58] sm:$0xff] }
  0x17   : > { %341 = vrot.lane.b32.xlu1 %v860_v0, %s911_s20  ;;  %205 = vrot.lane.b32.xlu0 %v859_v1, %s910_s19 }
  0x18   : > { %339 = vrot.lane.b32.xlu2 %v859_v1, %s911_s20 }
  0x1f   : > { %391 = vrot.lane.b32.xlu0 %v860_v0, %s912_s21  ;;  %389 = vrot.lane.b32.xlu1 %v859_v1, %s912_s21 }
  0x20   : > { %491 = vrot.lane.b32.xlu2 %v860_v0, %s913_s22 }
  0x27   : > { %541 = vrot.lane.b32.xlu0 %v860_v0, %s914_s23  ;;  %441 = vrot.lane.b32.xlu1 %v860_v0, %s915_s24 }
  0x28   : > { %489 = vrot.lane.b32.xlu2 %v859_v1, %s913_s22 }
  0x2f   : > { %539 = vrot.lane.b32.xlu0 %v859_v1, %s914_s23  ;;  %439 = vrot.lane.b32.xlu1 %v859_v1, %s915_s24  ;;  %s1043_s24 = scalar_lea.vmem %s1059_s3, %s857_s14 }
  0x30   : > { %591 = vrot.lane.b32.xlu2 %v860_v0, %s916_s25 }
  0x37   : > { %589 = vrot.lane.b32.xlu0 %v859_v1, %s916_s25  ;;  %630 = vperm.xlu1 %898, %v624_v30  }
  0x38   : > { %635 = vperm.xlu2 %899, %v625_v33  }
  0x3f   : > { %640 = vperm.xlu0 %900, %v626_v31   ;;  %645 = vperm.xlu1 %898, %v627_v34  }
  0x6a   : > { %v290_v2 = vpop.permute.xlu2 %289 }
  0x72   : > { %v340_v3 = vpop.permute.xlu2 %339 }
  0x7a   : > { %v492_v4 = vpop.permute.xlu2 %491 }
  0x81   : > { %v292_v5 = vpop.permute.xlu1 %291  ;;  %v208_v6 = vpop.permute.xlu0 %207 }
  0x82   : > { %224 = vmatpush.bf16.msra.mxu0 %v208_v6  ;;  %879 = vmatpush.bf16.msra.mxu1 %v208_v6  ;;  %v490_v8 = vpop.permute.xlu2 %489 }
  0x83   : > { %307 = vmatpush.bf16.msra.mxu2 %v292_v5 }
  0x87   : > { %308 = vmatpush.bf16.msra.mxu2 %v290_v2 }
  0x89   : > { %v342_v9 = vpop.permute.xlu1 %341  ;;  %v206_v10 = vpop.permute.xlu0 %205 }
  0x8a   : > { %357 = vmatpush.bf16.msra.mxu3 %v342_v9  ;;  %225 = vmatpush.bf16.msra.mxu0 %v206_v10  ;;  %v592_v16 = vpop.permute.xlu2 %591 }
  0x8b   : > { %507 = vmatpush.bf16.msrb.mxu2 %v492_v4  ;;  %880 = vmatpush.bf16.msra.mxu1 %v206_v10 }
  0x8c   : > { %769 = vmatmul.msk.bf16.vlgmr.msra.gmra.mxu2 %vm211_vm0, %v865_v7 }
  0x8d   : > { %745 = vmatmul.msk.bf16.vlgmr.msra.gmra.mxu0 %vm211_vm0, %v863_v11 }
  0x8e   : > { %746 = vmatmul.msk.bf16.vlgmr.msra.gmra.mxu1 %vm211_vm0, %v864_v12  ;;  %358 = vmatpush.bf16.msra.mxu3 %v340_v3 }
  0x8f   : > { %261 = vmatpush.bf16.msrb.mxu1 %v860_v0  ;;  %508 = vmatpush.bf16.msrb.mxu2 %v490_v8 }
  0x91   : > { %v392_v14 = vpop.permute.xlu0 %391  ;;  %783 = vmatmul.msk.bf16.vlgmr.msra.gmra.mxu3 %vm211_vm0, %v867_v13  ;;  %v390_v15 = vpop.permute.xlu1 %389 }
  0x92   : > { %407 = vmatpush.bf16.msrb.mxu0 %v392_v14 }
  0x93   : > { %262 = vmatpush.bf16.msrb.mxu1 %v859_v1 }
  0x96   : > { %408 = vmatpush.bf16.msrb.mxu0 %v390_v15 }
  0x99   : > { %v542_v18 = vpop.permute.xlu0 %541  ;;  %v442_v19 = vpop.permute.xlu1 %441 }
  0x9a   : > { %607 = vmatpush.bf16.msra.mxu0 %v592_v16  ;;  %557 = vmatpush.bf16.msrb.mxu3 %v542_v18 }
  0x9b   : > { %457 = vmatpush.bf16.msra.mxu1 %v442_v19 }
  0x9c   : > { %770 = vmatmul.msk.bf16.gmra.mxu2 %vm211_vm0, %v866_v17 }
  0x9d   : > { %797 = vmatmul.msk.bf16.vlgmr.msrb.gmra.mxu0 %vm211_vm0, %v869_v20 }
  0x9e   : > { %755 = vmatmul.msk.bf16.vlgmr.msrb.gmra.mxu1 %vm211_vm0, %v861_v21 }
  0xa1   : > { %784 = vmatmul.msk.bf16.gmra.mxu3 %vm211_vm0, %v868_v22  ;;  %v540_v23 = vpop.permute.xlu0 %539  ;;  %v440_v24 = vpop.permute.xlu1 %439 }
  0xa2   : > { %558 = vmatpush.bf16.msrb.mxu3 %v540_v23  ;;  %458 = vmatpush.bf16.msra.mxu1 %v440_v24 }
  0xa9   : > { %v590_v27 = vpop.permute.xlu0 %589  ;;  %v631_v13 = vpop.permute.xlu1 %630 }
  0xaa   : > { %608 = vmatpush.bf16.msra.mxu0 %v590_v27  ;;  %v636_v27 = vpop.permute.xlu2 %635 }
  0xac   : > { %825 = vmatmul.msk.bf16.vlgmr.msrb.gmra.mxu2 %vm211_vm0, %v873_v25 }
  0xad   : > { %798 = vmatmul.msk.bf16.gmra.mxu0 %vm211_vm0, %v870_v26 }
  0xae   : > { %756 = vmatmul.msk.bf16.gmra.mxu1 %vm211_vm0, %v862_v28 }
  0xb1   : > { %839 = vmatmul.msk.bf16.vlgmr.msrb.gmra.mxu3 %vm211_vm0, %v875_v29 }
  0xbc   : > { %826 = vmatmul.msk.bf16.gmra.mxu2 %vm211_vm0, %v874_v35 }
  0xbd   : > { %853 = vmatmul.msk.bf16.vlgmr.msra.gmra.mxu0 %vm211_vm0, %v877_v36 }
  0xbe   : > { %811 = vmatmul.msk.bf16.vlgmr.msra.gmra.mxu1 %vm211_vm0, %v871_v37 }
  0xc1   : > { %840 = vmatmul.msk.bf16.gmra.mxu3 %vm211_vm0, %v876_v38 }
  0xcd   : > { %854 = vmatmul.msk.bf16.gmra.mxu0 %vm211_vm0, %v878_v39 }
  0xce   : > { %812 = vmatmul.msk.bf16.gmra.mxu1 %vm211_vm0, %v872_v40 }
 0x10a   : > { %v227_v41 = vpop.f32.mrf.mxu0 }
 0x10b   : > { %v232_v42 = vpop.f32.mrf.mxu1 }
 0x10f   : > { %v310_v43 = vpop.f32.mrf.mxu2 }
 0x112   : > { %v229_v44 = vpop.f32.mrf.mxu0 }
 0x113   : > { %v234_v45 = vpop.f32.mrf.mxu1 }
 0x114   : > { %v360_v46 = vpop.f32.mrf.mxu3 }
 0x117   : > { %v312_v47 = vpop.f32.mrf.mxu2 }
 0x11a   : > { %v410_v48 = vpop.f32.mrf.mxu0 }
 0x11b   : > { %v264_v49 = vpop.f32.mrf.mxu1 }
 0x11c   : > { %v362_v50 = vpop.f32.mrf.mxu3  ;;  %v265_v58 = vadd.f32 %v264_v49, %v227_v41  ;;  %v641_v41 = vpop.permute.xlu0 %640 }
 0x11e   : > { %v320_v60 = vadd.f32 %v310_v43, %v265_v58 }
 0x11f   : > { %v315_v53 = vpop.f32.mrf.mxu2 }
 0x120   : > { %v370_v63 = vadd.f32 %v360_v46, %v320_v60 }
 0x122   : > { %v412_v51 = vpop.f32.mrf.mxu0  ;;  %v420_v3 = vadd.f32 %v410_v48, %v370_v63 }
 0x123   : > { %v266_v52 = vpop.f32.mrf.mxu1 }
 0x124   : > { %v365_v54 = vpop.f32.mrf.mxu3  ;;  %v267_v0 = vadd.f32 %v266_v52, %v229_v44 }
 0x126   : > { %v321_v4 = vadd.f32 %v312_v47, %v267_v0 }
 0x127   : > { %v317_v57 = vpop.f32.mrf.mxu2 }
 0x128   : > { %v371_v8 = vadd.f32 %v362_v50, %v321_v4 }
 0x12a   : > { %v415_v55 = vpop.f32.mrf.mxu0  ;;  %v421_v14 = vadd.f32 %v412_v51, %v371_v8 }
 0x12b   : > { %v269_v56 = vpop.f32.mrf.mxu1 }
 0x12c   : > { %v367_v59 = vpop.f32.mrf.mxu3  ;;  %v270_v9 = vadd.f32 %v269_v56, %v232_v42 }
 0x12e   : > { %v322_v15 = vadd.f32 %v315_v53, %v270_v9 }
 0x12f   : > { %v510_v1 = vpop.f32.mrf.mxu2 }
 0x130   : > { %v372_v22 = vadd.f32 %v365_v54, %v322_v15  ;;  %v646_v54 = vpop.permute.xlu1 %645 }
 0x132   : > { %v417_v61 = vpop.f32.mrf.mxu0  ;;  %v422_v28 = vadd.f32 %v415_v55, %v372_v22 }
 0x133   : > { %v271_v62 = vpop.f32.mrf.mxu1 }
 0x134   : > { %v560_v2 = vpop.f32.mrf.mxu3  ;;  %v272_v23 = vadd.f32 %v271_v62, %v234_v45 }
 0x136   : > { %v323_v29 = vadd.f32 %v317_v57, %v272_v23 }
 0x137   : > { %v512_v12 = vpop.f32.mrf.mxu2 }
 0x138   : > { %v373_v36 = vadd.f32 %v367_v59, %v323_v29 }
 0x13a   : > { %v610_v6 = vpop.f32.mrf.mxu0  ;;  %v423_v42 = vadd.f32 %v417_v61, %v373_v36 }
 0x13b   : > { %v460_v5 = vpop.f32.mrf.mxu1 }
 0x13c   : > { %v470_v7 = vadd.f32 %v460_v5, %v420_v3  ;;  %v562_v17 = vpop.f32.mrf.mxu3 }
 0x13e   : > { %v520_v10 = vadd.f32 %v510_v1, %v470_v7 }
 0x13f   : > { %v515_v31 = vpop.f32.mrf.mxu2 }
 0x140   : > { %v570_v11 = vadd.f32 %v560_v2, %v520_v10 }
 0x142   : > { %v620_v16 = vadd.f32 %v610_v6, %v570_v11  ;;  %v612_v21 = vpop.f32.mrf.mxu0 }
 0x143   : > { %v462_v18 = vpop.f32.mrf.mxu1 }
 0x144   : > { %v648_v19 = vadd.f32 %v631_v13, %v620_v16  ;;  %v471_v20 = vadd.f32 %v462_v18, %v421_v14  ;;  %v565_v35 = vpop.f32.mrf.mxu3 }
 0x146   : > { %v652_v24 = vpack.c.bf16 %v648_v19, %v648_v19  ;;  %v521_v25 = vadd.f32 %v512_v12, %v471_v20 }
 0x147   : > { %v517_v47 = vpop.f32.mrf.mxu2 }
 0x148   : > { %657 = vst.msk [vmem:[%s1043_s24] sm:$0xf] %vm656_vm1, %v652_v24  ;;  %v571_v26 = vadd.f32 %v562_v17, %v521_v25 }
 0x14a   : > { %v621_v30 = vadd.f32 %v612_v21, %v571_v26  ;;  %v615_v39 = vpop.f32.mrf.mxu0 }
 0x14b   : > { %v465_v32 = vpop.f32.mrf.mxu1 }
 0x14c   : > { %v649_v33 = vadd.f32 %v636_v27, %v621_v30  ;;  %v472_v34 = vadd.f32 %v465_v32, %v422_v28  ;;  %v567_v50 = vpop.f32.mrf.mxu3 }
 0x14e   : > { %v653_v37 = vpack.c.bf16 %v649_v33, %v649_v33  ;;  %v522_v38 = vadd.f32 %v515_v31, %v472_v34 }
 0x150   : > { %658 = vst.msk [vmem:[%s1043_s24 + $0x4] sm:$0xf] %vm656_vm1, %v653_v37  ;;  %v572_v40 = vadd.f32 %v565_v35, %v522_v38 }
 0x152   : > { %v622_v43 = vadd.f32 %v615_v39, %v572_v40  ;;  %v617_v52 = vpop.f32.mrf.mxu0 }
 0x153   : > { %v467_v44 = vpop.f32.mrf.mxu1 }
 0x154   : > { %v473_v45 = vadd.f32 %v467_v44, %v423_v42  ;;  %v650_v46 = vadd.f32 %v641_v41, %v622_v43 }
 0x156   : > { %v523_v48 = vadd.f32 %v517_v47, %v473_v45  ;;  %v654_v49 = vpack.c.bf16 %v650_v46, %v650_v46 }
 0x158   : > { %v573_v51 = vadd.f32 %v567_v50, %v523_v48  ;;  %659 = vst.msk [vmem:[%s1043_s24 + $0x8] sm:$0xf] %vm656_vm1, %v654_v49 }
 0x15a   : > { %v623_v53 = vadd.f32 %v617_v52, %v573_v51 }
 0x15c   : > { %v651_v55 = vadd.f32 %v646_v54, %v623_v53 }
 0x15e   : > { %v655_v56 = vpack.c.bf16 %v651_v55, %v651_v55 }
 0x160   : > { %660 = vst.msk [vmem:[%s1043_s24 + $0xc] sm:$0xf] %vm656_vm1, %v655_v56 }
 0x161 PF: > { %s13_s12 = sadd.s32 1, %s907_s12  }
 0x162   : > { %p10_p4 = scmp.ge.s32.totalorder %s13_s12, 4  }
 0x164   :  { %12 = sbr.rel (!%p10_p4) target bundleno = 1 (0x1), region = 70 }

// kernel: feature_net_forward.14
= control target key start
LH: loop header
LB: loop body
LE: loop exit
PB: predicated region body
PF: predicated region fallthrough
CT: control target
= control target key end

     0   :  { %s942_s12 = smov 0   ;;  %s1060_s0 = inlined_call_operand.vmem [shape: bf16[2,32,42], index: 0, kind: input, shape index: {}]   ;;  %s1061_s1 = inlined_call_operand.vmem [shape: bf16[9,32,32], index: 1, kind: input, shape index: {}]   ;;  %s1062_s2 = inlined_call_operand.vmem [shape: f32[32,1], index: 2, kind: input, shape index: {}]   ;;  %s1063_s3 = inlined_call_operand.vmem [shape: bf16[2,32,24], index: 3, kind: output, shape index: {}]  }
   0x1 LB: > { %s720_s13 = sadd.s32 4294967295, %s911_s12   ;;  %p724_p0 = scmp.ge.s32.totalorder %s911_s12, 1  ;;  %s911_s12 = sphi %s942_s12, %s13_s12  }
   0x2   : > { %p137_p1 = scmp.lt.s32.totalorder %s911_s12, 3 }
   0x4   : > { %p138_p2 = pnand %p724_p0, %p137_p1 }
   0x5   : > { %p161_p3 = scmp.lt.s32.totalorder (!%p138_p2), %s720_s13, 1  ;;  %s913_s18 = smov (!%p138_p2), 126  }
   0x6   : > { %141 = sbr.rel (%p138_p2) target bundleno = 355 (0x163), region = 32  ;;  %s914_s19 = smov (!%p138_p2), 127  }
   0x7   : > { %s915_s20 = smov (!%p138_p2), 122   ;;  %s916_s21 = smov (!%p138_p2), 121  }
   0x8   : > { %s917_s22 = smov (!%p138_p2), 116   ;;  %s918_s23 = smov (!%p138_p2), 115  }
   0x9   : > { %s919_s24 = smov (!%p138_p2), 120   ;;  %s920_s25 = smov (!%p138_p2), 114  }
   0xb   : > { %s1065_s13 = smov (!%p161_p3, %s720_s13), 1  ;;  %v869_v7 = vld [vmem:[%s1061_s1 + $0x20] sm:$0xff]  ;;  %v867_v11 = vld [vmem:[%s1061_s1 + $0x10] sm:$0xff]  ;;  %vm211_vm0 = vcmask 261120   ;;  %v868_v12 = vld [vmem:[%s1061_s1 + $0x18] sm:$0xff]  ;;  %v921_v32 = vmov 0  }
   0xc   : > { %s861_s14 = sshll.u32 %s1065_s13, 4  ;;  %v871_v13 = vld [vmem:[%s1061_s1 + $0x30] sm:$0xff]  ;;  %v870_v17 = vld [vmem:[%s1061_s1 + $0x28] sm:$0xff]  ;;  %v873_v20 = vld [vmem:[%s1061_s1 + $0x40] sm:$0xff]  ;;  %902 = vset.pattern.permute.xlu1 %v921_v32  ;;  %904 = vset.pattern.permute.xlu0 %v921_v32  ;;  %vm660_vm1 = vcmask 191488  }
   0xd   : > { %s165_s17 = scalar_lea.vmem %s1060_s0, %s861_s14  ;;  %v865_v21 = vld [vmem:[%s1061_s1] sm:$0xff]  ;;  %v872_v22 = vld [vmem:[%s1061_s1 + $0x38] sm:$0xff]  ;;  %v874_v26 = vld [vmem:[%s1061_s1 + $0x48] sm:$0xff]  ;;  %903 = vset.pattern.permute.xlu2 %v921_v32 }
   0xe   : > { %v864_v0 = vld [vmem:[%s165_s17 + $0x8] sm:$0xff]  ;;  %v863_v1 = vld [vmem:[%s165_s17] sm:$0xff]  ;;  %v879_v29 = vld [vmem:[%s1061_s1 + $0x70] sm:$0xff] }
   0xf   : > { %291 = vrot.lane.b32.xlu1 %v864_v0, %s913_s18  ;;  %207 = vrot.lane.b32.xlu0 %v864_v0, %s914_s19  ;;  %v877_v25 = vld [vmem:[%s1061_s1 + $0x60] sm:$0xff]  ;;  %v866_v28 = vld [vmem:[%s1061_s1 + $0x8] sm:$0xff] }
  0x10   : > { %289 = vrot.lane.b32.xlu2 %v863_v1, %s913_s18  ;;  %v624_v30 = vld [vmem:[%s1062_s2] sm:$0xff]  ;;  %v626_v31 = vld [vmem:[%s1062_s2 + $0x10] sm:$0xff]  ;;  %v625_v33 = vld [vmem:[%s1062_s2 + $0x8] sm:$0xff] }
  0x11   : > { %v627_v34 = vld [vmem:[%s1062_s2 + $0x18] sm:$0xff]  ;;  %v878_v35 = vld [vmem:[%s1061_s1 + $0x68] sm:$0xff]  ;;  %v881_v36 = vld [vmem:[%s1061_s1 + $0x80] sm:$0xff] }
  0x12   : > { %v875_v37 = vld [vmem:[%s1061_s1 + $0x50] sm:$0xff]  ;;  %v880_v38 = vld [vmem:[%s1061_s1 + $0x78] sm:$0xff]  ;;  %v882_v39 = vld [vmem:[%s1061_s1 + $0x88] sm:$0xff] }
  0x13   : > { %v876_v40 = vld [vmem:[%s1061_s1 + $0x58] sm:$0xff] }
  0x17   : > { %341 = vrot.lane.b32.xlu1 %v864_v0, %s915_s20  ;;  %205 = vrot.lane.b32.xlu0 %v863_v1, %s914_s19 }
  0x18   : > { %339 = vrot.lane.b32.xlu2 %v863_v1, %s915_s20 }
  0x1f   : > { %391 = vrot.lane.b32.xlu0 %v864_v0, %s916_s21  ;;  %389 = vrot.lane.b32.xlu1 %v863_v1, %s916_s21 }
  0x20   : > { %491 = vrot.lane.b32.xlu2 %v864_v0, %s917_s22 }
  0x27   : > { %541 = vrot.lane.b32.xlu0 %v864_v0, %s918_s23  ;;  %441 = vrot.lane.b32.xlu1 %v864_v0, %s919_s24 }
  0x28   : > { %489 = vrot.lane.b32.xlu2 %v863_v1, %s917_s22 }
  0x2f   : > { %539 = vrot.lane.b32.xlu0 %v863_v1, %s918_s23  ;;  %439 = vrot.lane.b32.xlu1 %v863_v1, %s919_s24  ;;  %s1047_s24 = scalar_lea.vmem %s1063_s3, %s861_s14 }
  0x30   : > { %591 = vrot.lane.b32.xlu2 %v864_v0, %s920_s25 }
  0x37   : > { %589 = vrot.lane.b32.xlu0 %v863_v1, %s920_s25  ;;  %630 = vperm.xlu1 %902, %v624_v30  }
  0x38   : > { %635 = vperm.xlu2 %903, %v625_v33  }
  0x3f   : > { %640 = vperm.xlu0 %904, %v626_v31   ;;  %645 = vperm.xlu1 %902, %v627_v34  }
  0x6a   : > { %v290_v2 = vpop.permute.xlu2 %289 }
  0x72   : > { %v340_v3 = vpop.permute.xlu2 %339 }
  0x7a   : > { %v492_v4 = vpop.permute.xlu2 %491 }
  0x81   : > { %v292_v5 = vpop.permute.xlu1 %291  ;;  %v208_v6 = vpop.permute.xlu0 %207 }
  0x82   : > { %224 = vmatpush.bf16.msra.mxu0 %v208_v6  ;;  %883 = vmatpush.bf16.msra.mxu1 %v208_v6  ;;  %v490_v8 = vpop.permute.xlu2 %489 }
  0x83   : > { %307 = vmatpush.bf16.msra.mxu2 %v292_v5 }
  0x87   : > { %308 = vmatpush.bf16.msra.mxu2 %v290_v2 }
  0x89   : > { %v342_v9 = vpop.permute.xlu1 %341  ;;  %v206_v10 = vpop.permute.xlu0 %205 }
  0x8a   : > { %357 = vmatpush.bf16.msra.mxu3 %v342_v9  ;;  %225 = vmatpush.bf16.msra.mxu0 %v206_v10  ;;  %v592_v16 = vpop.permute.xlu2 %591 }
  0x8b   : > { %507 = vmatpush.bf16.msrb.mxu2 %v492_v4  ;;  %884 = vmatpush.bf16.msra.mxu1 %v206_v10 }
  0x8c   : > { %773 = vmatmul.msk.bf16.vlgmr.msra.gmra.mxu2 %vm211_vm0, %v869_v7 }
  0x8d   : > { %749 = vmatmul.msk.bf16.vlgmr.msra.gmra.mxu0 %vm211_vm0, %v867_v11 }
  0x8e   : > { %750 = vmatmul.msk.bf16.vlgmr.msra.gmra.mxu1 %vm211_vm0, %v868_v12  ;;  %358 = vmatpush.bf16.msra.mxu3 %v340_v3 }
  0x8f   : > { %261 = vmatpush.bf16.msrb.mxu1 %v864_v0  ;;  %508 = vmatpush.bf16.msrb.mxu2 %v490_v8 }
  0x91   : > { %v392_v14 = vpop.permute.xlu0 %391  ;;  %787 = vmatmul.msk.bf16.vlgmr.msra.gmra.mxu3 %vm211_vm0, %v871_v13  ;;  %v390_v15 = vpop.permute.xlu1 %389 }
  0x92   : > { %407 = vmatpush.bf16.msrb.mxu0 %v392_v14 }
  0x93   : > { %262 = vmatpush.bf16.msrb.mxu1 %v863_v1 }
  0x96   : > { %408 = vmatpush.bf16.msrb.mxu0 %v390_v15 }
  0x99   : > { %v542_v18 = vpop.permute.xlu0 %541  ;;  %v442_v19 = vpop.permute.xlu1 %441 }
  0x9a   : > { %607 = vmatpush.bf16.msra.mxu0 %v592_v16  ;;  %557 = vmatpush.bf16.msrb.mxu3 %v542_v18 }
  0x9b   : > { %457 = vmatpush.bf16.msra.mxu1 %v442_v19 }
  0x9c   : > { %774 = vmatmul.msk.bf16.gmra.mxu2 %vm211_vm0, %v870_v17 }
  0x9d   : > { %801 = vmatmul.msk.bf16.vlgmr.msrb.gmra.mxu0 %vm211_vm0, %v873_v20 }
  0x9e   : > { %759 = vmatmul.msk.bf16.vlgmr.msrb.gmra.mxu1 %vm211_vm0, %v865_v21 }
  0xa1   : > { %788 = vmatmul.msk.bf16.gmra.mxu3 %vm211_vm0, %v872_v22  ;;  %v540_v23 = vpop.permute.xlu0 %539  ;;  %v440_v24 = vpop.permute.xlu1 %439 }
  0xa2   : > { %558 = vmatpush.bf16.msrb.mxu3 %v540_v23  ;;  %458 = vmatpush.bf16.msra.mxu1 %v440_v24 }
  0xa9   : > { %v590_v27 = vpop.permute.xlu0 %589  ;;  %v631_v13 = vpop.permute.xlu1 %630 }
  0xaa   : > { %608 = vmatpush.bf16.msra.mxu0 %v590_v27 }
  0xac   : > { %829 = vmatmul.msk.bf16.vlgmr.msrb.gmra.mxu2 %vm211_vm0, %v877_v25 }
  0xad   : > { %802 = vmatmul.msk.bf16.gmra.mxu0 %vm211_vm0, %v874_v26 }
  0xae   : > { %760 = vmatmul.msk.bf16.gmra.mxu1 %vm211_vm0, %v866_v28  ;;  %v636_v28 = vpop.permute.xlu2 %635 }
  0xb1   : > { %843 = vmatmul.msk.bf16.vlgmr.msrb.gmra.mxu3 %vm211_vm0, %v879_v29 }
  0xbc   : > { %830 = vmatmul.msk.bf16.gmra.mxu2 %vm211_vm0, %v878_v35 }
  0xbd   : > { %857 = vmatmul.msk.bf16.vlgmr.msra.gmra.mxu0 %vm211_vm0, %v881_v36 }
  0xbe   : > { %815 = vmatmul.msk.bf16.vlgmr.msra.gmra.mxu1 %vm211_vm0, %v875_v37 }
  0xc1   : > { %844 = vmatmul.msk.bf16.gmra.mxu3 %vm211_vm0, %v880_v38 }
  0xcd   : > { %858 = vmatmul.msk.bf16.gmra.mxu0 %vm211_vm0, %v882_v39 }
  0xce   : > { %816 = vmatmul.msk.bf16.gmra.mxu1 %vm211_vm0, %v876_v40 }
 0x10a   : > { %v227_v41 = vpop.f32.mrf.mxu0 }
 0x10b   : > { %v232_v42 = vpop.f32.mrf.mxu1 }
 0x10f   : > { %v310_v43 = vpop.f32.mrf.mxu2 }
 0x112   : > { %v229_v44 = vpop.f32.mrf.mxu0 }
 0x113   : > { %v234_v45 = vpop.f32.mrf.mxu1 }
 0x114   : > { %v360_v46 = vpop.f32.mrf.mxu3 }
 0x117   : > { %v312_v47 = vpop.f32.mrf.mxu2 }
 0x11a   : > { %v410_v48 = vpop.f32.mrf.mxu0 }
 0x11b   : > { %v264_v49 = vpop.f32.mrf.mxu1 }
 0x11c   : > { %v362_v50 = vpop.f32.mrf.mxu3  ;;  %v265_v58 = vadd.f32 %v264_v49, %v227_v41 }
 0x11e   : > { %v320_v60 = vadd.f32 %v310_v43, %v265_v58  ;;  %v641_v43 = vpop.permute.xlu0 %640 }
 0x11f   : > { %v315_v53 = vpop.f32.mrf.mxu2 }
 0x120   : > { %v370_v63 = vadd.f32 %v360_v46, %v320_v60 }
 0x122   : > { %v412_v51 = vpop.f32.mrf.mxu0  ;;  %v420_v3 = vadd.f32 %v410_v48, %v370_v63 }
 0x123   : > { %v266_v52 = vpop.f32.mrf.mxu1 }
 0x124   : > { %v365_v54 = vpop.f32.mrf.mxu3  ;;  %v267_v0 = vadd.f32 %v266_v52, %v229_v44 }
 0x126   : > { %v321_v4 = vadd.f32 %v312_v47, %v267_v0 }
 0x127   : > { %v317_v57 = vpop.f32.mrf.mxu2 }
 0x128   : > { %v371_v8 = vadd.f32 %v362_v50, %v321_v4 }
 0x12a   : > { %v415_v55 = vpop.f32.mrf.mxu0  ;;  %v421_v14 = vadd.f32 %v412_v51, %v371_v8 }
 0x12b   : > { %v269_v56 = vpop.f32.mrf.mxu1 }
 0x12c   : > { %v367_v59 = vpop.f32.mrf.mxu3  ;;  %v270_v9 = vadd.f32 %v269_v56, %v232_v42 }
 0x12e   : > { %v322_v15 = vadd.f32 %v315_v53, %v270_v9 }
 0x12f   : > { %v510_v1 = vpop.f32.mrf.mxu2 }
 0x130   : > { %v372_v22 = vadd.f32 %v365_v54, %v322_v15 }
 0x132   : > { %v417_v61 = vpop.f32.mrf.mxu0  ;;  %v422_v29 = vadd.f32 %v415_v55, %v372_v22 }
 0x133   : > { %v271_v62 = vpop.f32.mrf.mxu1 }
 0x134   : > { %v560_v2 = vpop.f32.mrf.mxu3  ;;  %v272_v23 = vadd.f32 %v271_v62, %v234_v45 }
 0x136   : > { %v323_v30 = vadd.f32 %v317_v57, %v272_v23  ;;  %v646_v57 = vpop.permute.xlu1 %645 }
 0x137   : > { %v512_v12 = vpop.f32.mrf.mxu2 }
 0x138   : > { %v373_v37 = vadd.f32 %v367_v59, %v323_v30 }
 0x13a   : > { %v610_v6 = vpop.f32.mrf.mxu0  ;;  %v423_v44 = vadd.f32 %v417_v61, %v373_v37 }
 0x13b   : > { %v460_v5 = vpop.f32.mrf.mxu1 }
 0x13c   : > { %v470_v7 = vadd.f32 %v460_v5, %v420_v3  ;;  %v562_v17 = vpop.f32.mrf.mxu3 }
 0x13e   : > { %v520_v10 = vadd.f32 %v510_v1, %v470_v7 }
 0x13f   : > { %v515_v32 = vpop.f32.mrf.mxu2 }
 0x140   : > { %v570_v11 = vadd.f32 %v560_v2, %v520_v10 }
 0x142   : > { %v620_v16 = vadd.f32 %v610_v6, %v570_v11  ;;  %v612_v21 = vpop.f32.mrf.mxu0 }
 0x143   : > { %v462_v18 = vpop.f32.mrf.mxu1 }
 0x144   : > { %v648_v19 = vadd.f32 %v631_v13, %v620_v16  ;;  %v471_v20 = vadd.f32 %v462_v18, %v421_v14  ;;  %v565_v36 = vpop.f32.mrf.mxu3 }
 0x146   : > { %v652_v24 = vmax.f32 %v648_v19, 0.0  ;;  %v521_v25 = vadd.f32 %v512_v12, %v471_v20 }
 0x147   : > { %v517_v49 = vpop.f32.mrf.mxu2 }
 0x148   : > { %v656_v26 = vpack.c.bf16 %v652_v24, %v652_v24  ;;  %v571_v27 = vadd.f32 %v562_v17, %v521_v25 }
 0x14a   : > { %661 = vst.msk [vmem:[%s1047_s24] sm:$0xf] %vm660_vm1, %v656_v26  ;;  %v621_v31 = vadd.f32 %v612_v21, %v571_v27  ;;  %v615_v40 = vpop.f32.mrf.mxu0 }
 0x14b   : > { %v465_v33 = vpop.f32.mrf.mxu1 }
 0x14c   : > { %v649_v34 = vadd.f32 %v636_v28, %v621_v31  ;;  %v472_v35 = vadd.f32 %v465_v33, %v422_v29  ;;  %v567_v52 = vpop.f32.mrf.mxu3 }
 0x14e   : > { %v653_v38 = vmax.f32 %v649_v34, 0.0  ;;  %v522_v39 = vadd.f32 %v515_v32, %v472_v35 }
 0x150   : > { %v657_v41 = vpack.c.bf16 %v653_v38, %v653_v38  ;;  %v572_v42 = vadd.f32 %v565_v36, %v522_v39 }
 0x152   : > { %662 = vst.msk [vmem:[%s1047_s24 + $0x4] sm:$0xf] %vm660_vm1, %v657_v41  ;;  %v622_v45 = vadd.f32 %v615_v40, %v572_v42  ;;  %v617_v55 = vpop.f32.mrf.mxu0 }
 0x153   : > { %v467_v46 = vpop.f32.mrf.mxu1 }
 0x154   : > { %v473_v47 = vadd.f32 %v467_v46, %v423_v44  ;;  %v650_v48 = vadd.f32 %v641_v43, %v622_v45 }
 0x156   : > { %v523_v50 = vadd.f32 %v517_v49, %v473_v47  ;;  %v654_v51 = vmax.f32 %v650_v48, 0.0 }
 0x158   : > { %v573_v53 = vadd.f32 %v567_v52, %v523_v50  ;;  %v658_v54 = vpack.c.bf16 %v654_v51, %v654_v51 }
 0x15a   : > { %v623_v56 = vadd.f32 %v617_v55, %v573_v53  ;;  %663 = vst.msk [vmem:[%s1047_s24 + $0x8] sm:$0xf] %vm660_vm1, %v658_v54 }
 0x15c   : > { %v651_v58 = vadd.f32 %v646_v57, %v623_v56 }
 0x15e   : > { %v655_v59 = vmax.f32 %v651_v58, 0.0 }
 0x160   : > { %v659_v60 = vpack.c.bf16 %v655_v59, %v655_v59 }
 0x162   : > { %664 = vst.msk [vmem:[%s1047_s24 + $0xc] sm:$0xf] %vm660_vm1, %v659_v60 }
 0x163 PF: > { %s13_s12 = sadd.s32 1, %s911_s12  }
 0x164   : > { %p10_p4 = scmp.ge.s32.totalorder %s13_s12, 4  }
 0x166   :  { %12 = sbr.rel (!%p10_p4) target bundleno = 1 (0x1), region = 70 }

// kernel: feature_net_forward.13
= control target key start
LH: loop header
LB: loop body
LE: loop exit
PB: predicated region body
PF: predicated region fallthrough
CT: control target
= control target key end

     0   :  { %s1942_s12 = smov 0   ;;  %s2191_s0 = inlined_call_operand.vmem [shape: bf16[2,64,42], index: 0, kind: input, shape index: {}]   ;;  %s2192_s1 = inlined_call_operand.vmem [shape: bf16[25,32,16], index: 1, kind: input, shape index: {}]   ;;  %s2193_s2 = inlined_call_operand.vmem [shape: f32[32,1], index: 2, kind: input, shape index: {}]   ;;  %s2194_s3 = inlined_call_operand.vmem [shape: bf16[2,32,24], index: 3, kind: output, shape index: {}]  }
   0x1 LB: > { %s1455_s13 = sadd.s32 4294967295, %s1911_s12   ;;  %p1459_p0 = scmp.ge.s32.totalorder %s1911_s12, 1  ;;  %s1911_s12 = sphi %s1942_s12, %s13_s12  }
   0x2   : > { %p137_p1 = scmp.lt.s32.totalorder %s1911_s12, 3 }
   0x4   : > { %p138_p2 = pnand %p1459_p0, %p137_p1 }
   0x5   : > { %p161_p3 = scmp.lt.s32.totalorder (!%p138_p2), %s1455_s13, 1  ;;  %s1913_s18 = smov (!%p138_p2), 127  }
   0x6   : > { %141 = sbr.rel (%p138_p2) target bundleno = 468 (0x1d4), region = 32  ;;  %s1914_s19 = smov (!%p138_p2), 126  }
   0x7   : > { %s1915_s24 = smov (!%p138_p2), 122   ;;  %s1916_s27 = smov (!%p138_p2), 121  }
   0x8   : > { %s1917_s28 = smov (!%p138_p2), 120   ;;  %s1918_s4 = smov (!%p138_p2), 116  }
   0x9   : > { %s1919_s5 = smov (!%p138_p2), 115   ;;  %s1920_s6 = smov (!%p138_p2), 114  }
   0xb   : > { %s2196_s13 = smov (!%p161_p3, %s1455_s13), 1  ;;  %v1835_v3 = vld [vmem:[%s2192_s1 + $0x18] sm:$0xff]  ;;  %vm201_vm0 = vcmask 130048   ;;  %v1834_v5 = vld [vmem:[%s2192_s1 + $0x10] sm:$0xff]  ;;  %v1831_v6 = vld [vmem:[%s2192_s1] sm:$0xff]  ;;  %vm1395_vm1 = vcmask 191488  }
   0xc   : > { %s1828_s14 = sshll.u32 %s2196_s13, 5  ;;  %v1832_v7 = vld [vmem:[%s2192_s1 + $0x8] sm:$0xff]  ;;  %v1843_v8 = vld [vmem:[%s2192_s1 + $0x50] sm:$0xff]  ;;  %v1836_v12 = vld [vmem:[%s2192_s1 + $0x20] sm:$0xff]  ;;  %s1829_s7 = sshll.u32 %s2196_s13, 4 }
   0xd   : > { %s165_s17 = scalar_lea.vmem %s2191_s0, %s1828_s14  ;;  %v1840_v13 = vld [vmem:[%s2192_s1 + $0x40] sm:$0xff]  ;;  %v1844_v14 = vld [vmem:[%s2192_s1 + $0x58] sm:$0xff]  ;;  %v1838_v18 = vld [vmem:[%s2192_s1 + $0x30] sm:$0xff]  ;;  %s2178_s10 = scalar_lea.vmem %s2194_s3, %s1829_s7 }
   0xe   : > { %v1830_v0 = vld [vmem:[%s165_s17] sm:$0xff]  ;;  %v1833_v1 = vld [vmem:[%s165_s17 + $0x8] sm:$0xff]  ;;  %v1845_v2 = vld [vmem:[%s165_s17 + $0x18] sm:$0xff] }
   0xf   : > { %283 = vrot.lane.b32.xlu0 %v1830_v0, %s1913_s18  ;;  %377 = vrot.lane.b32.xlu1 %v1830_v0, %s1914_s19  ;;  %v1842_v4 = vld [vmem:[%s165_s17 + $0x10] sm:$0xff]  ;;  %v1837_v20 = vld [vmem:[%s2192_s1 + $0x28] sm:$0xff] }
  0x10   : > { %575 = vrot.lane.b32.xlu2 %v1845_v2, %s1913_s18  ;;  %1884 = vmatpush.bf16.msra.mxu1 %v1833_v1  ;;  %v1841_v21 = vld [vmem:[%s2192_s1 + $0x48] sm:$0xff]  ;;  %v1852_v24 = vld [vmem:[%s2192_s1 + $0x90] sm:$0xff]  ;;  %v1839_v25 = vld [vmem:[%s2192_s1 + $0x38] sm:$0xff] }
  0x11   : > { %215 = vmatpush.bf16.msra.mxu0 %v1833_v1  ;;  %v1846_v26 = vld [vmem:[%s2192_s1 + $0x60] sm:$0xff]  ;;  %v1853_v28 = vld [vmem:[%s2192_s1 + $0x98] sm:$0xff]  ;;  %v1848_v30 = vld [vmem:[%s2192_s1 + $0x70] sm:$0xff] }
  0x12   : > { %v1850_v27 = vld [vmem:[%s2192_s1 + $0x80] sm:$0xff]  ;;  %v1847_v35 = vld [vmem:[%s2192_s1 + $0x68] sm:$0xff]  ;;  %v1860_v37 = vld [vmem:[%s2192_s1 + $0xd0] sm:$0xff] }
  0x13   : > { %1481 = vmatmul.msk.bf16.vlgmr.msra.gmra.mxu1 %vm201_vm0, %v1835_v3  ;;  %v1851_v36 = vld [vmem:[%s2192_s1 + $0x88] sm:$0xff]  ;;  %v1849_v39 = vld [vmem:[%s2192_s1 + $0x78] sm:$0xff]  ;;  %v1854_v41 = vld [vmem:[%s2192_s1 + $0xa0] sm:$0xff] }
  0x14   : > { %256 = vmatpush.bf16.msrb.mxu1 %v1830_v0  ;;  %1480 = vmatmul.msk.bf16.vlgmr.msra.gmra.mxu0 %vm201_vm0, %v1834_v5  ;;  %v1858_v42 = vld [vmem:[%s2192_s1 + $0xc0] sm:$0xff]  ;;  %v1861_v43 = vld [vmem:[%s2192_s1 + $0xd8] sm:$0xff]  ;;  %v1856_v46 = vld [vmem:[%s2192_s1 + $0xb0] sm:$0xff] }
  0x15   : > { %v1855_v52 = vld [vmem:[%s2192_s1 + $0xa8] sm:$0xff]  ;;  %v1868_v54 = vld [vmem:[%s2192_s1 + $0x110] sm:$0xff]  ;;  %v1857_v57 = vld [vmem:[%s2192_s1 + $0xb8] sm:$0xff] }
  0x16   : > { %v1859_v53 = vld [vmem:[%s2192_s1 + $0xc8] sm:$0xff]  ;;  %v1862_v58 = vld [vmem:[%s2192_s1 + $0xe0] sm:$0xff]  ;;  %v1869_v60 = vld [vmem:[%s2192_s1 + $0x118] sm:$0xff] }
  0x17   : > { %330 = vrot.lane.b32.xlu0 %v1833_v1, %s1913_s18  ;;  %528 = vrot.lane.b32.xlu1 %v1842_v4, %s1913_s18  ;;  %v1866_v59 = vld [vmem:[%s2192_s1 + $0x100] sm:$0xff]  ;;  %v1864_v61 = vld [vmem:[%s2192_s1 + $0xf0] sm:$0xff] }
  0x18   : > { %445 = vmatpush.bf16.msra.mxu1 %v1842_v4  ;;  %669 = vrot.lane.b32.xlu2 %v1830_v0, %s1915_s24 }
  0x1f   : > { %716 = vrot.lane.b32.xlu0 %v1833_v1, %s1915_s24  ;;  %622 = vrot.lane.b32.xlu1 %v1842_v4, %s1914_s19 }
  0x20   : > { %763 = vrot.lane.b32.xlu2 %v1830_v0, %s1916_s27 }
  0x23   : > { %1494 = vmatmul.msk.bf16.vlgmr.msrb.gmra.mxu1 %vm201_vm0, %v1831_v6  ;;  %v1865_v6 = vld [vmem:[%s2192_s1 + $0xf8] sm:$0xff] }
  0x27   : > { %857 = vrot.lane.b32.xlu0 %v1830_v0, %s1917_s28  ;;  %904 = vrot.lane.b32.xlu1 %v1842_v4, %s1915_s24 }
  0x28   : > { %810 = vrot.lane.b32.xlu2 %v1833_v1, %s1916_s27 }
  0x2f   : > { %951 = vrot.lane.b32.xlu0 %v1845_v2, %s1915_s24  ;;  %1045 = vrot.lane.b32.xlu1 %v1845_v2, %s1916_s27 }
  0x30   : > { %1092 = vrot.lane.b32.xlu2 %v1842_v4, %s1917_s28 }
  0x33   : > { %1495 = vmatmul.msk.bf16.gmra.mxu1 %vm201_vm0, %v1832_v7 }
  0x37   : > { %998 = vrot.lane.b32.xlu0 %v1842_v4, %s1916_s27  ;;  %1139 = vrot.lane.b32.xlu1 %v1830_v0, %s1918_s4  ;;  %v1876_v4 = vld [vmem:[%s2192_s1 + $0x150] sm:$0xff] }
  0x38   : > { %1233 = vrot.lane.b32.xlu2 %v1830_v0, %s1919_s5 }
  0x3f   : > { %1280 = vrot.lane.b32.xlu0 %v1833_v1, %s1919_s5  ;;  %1186 = vrot.lane.b32.xlu1 %v1833_v1, %s1918_s4  ;;  %v1863_v1 = vld [vmem:[%s2192_s1 + $0xe8] sm:$0xff] }
  0x40   : > { %1327 = vrot.lane.b32.xlu2 %v1830_v0, %s1920_s6 }
  0x43   : > { %1554 = vmatmul.msk.bf16.vlgmr.msra.gmra.mxu1 %vm201_vm0, %v1843_v8  ;;  %v1870_v8 = vld [vmem:[%s2192_s1 + $0x120] sm:$0xff] }
  0x53   : > { %1555 = vmatmul.msk.bf16.gmra.mxu1 %vm201_vm0, %v1844_v14 }
  0x6a   : > { %v576_v9 = vpop.permute.xlu2 %575 }
  0x72   : > { %v670_v15 = vpop.permute.xlu2 %669 }
  0x7a   : > { %v764_v19 = vpop.permute.xlu2 %763 }
  0x81   : > { %v284_v10 = vpop.permute.xlu0 %283  ;;  %v378_v11 = vpop.permute.xlu1 %377 }
  0x82   : > { %299 = vmatpush.bf16.msra.mxu2 %v284_v10  ;;  %393 = vmatpush.bf16.msrb.mxu0 %v378_v11  ;;  %v811_v32 = vpop.permute.xlu2 %810 }
  0x85   : > { %1508 = vmatmul.msk.bf16.vlgmr.msra.gmra.mxu2 %vm201_vm0, %v1836_v12  ;;  %1536 = vmatmul.msk.bf16.vlgmr.msrb.gmra.mxu0 %vm201_vm0, %v1840_v13  ;;  %v1877_v12 = vld [vmem:[%s2192_s1 + $0x158] sm:$0xff] }
  0x86   : > { %497 = vmatpush.bf16.msrb.mxu2 %v1845_v2  ;;  %591 = vmatpush.bf16.msra.mxu0 %v576_v9  ;;  %v1867_v2 = vld [vmem:[%s2192_s1 + $0x108] sm:$0xff]  ;;  %v1874_v9 = vld [vmem:[%s2192_s1 + $0x140] sm:$0xff] }
  0x89   : > { %v331_v16 = vpop.permute.xlu0 %330  ;;  %v529_v17 = vpop.permute.xlu1 %528 }
  0x8a   : > { %685 = vmatpush.bf16.msra.mxu2 %v670_v15  ;;  %346 = vmatpush.bf16.msra.mxu3 %v331_v16  ;;  %v1093_v47 = vpop.permute.xlu2 %1092  ;;  %v1872_v15 = vld [vmem:[%s2192_s1 + $0x130] sm:$0xff] }
  0x8b   : > { %779 = vmatpush.bf16.msrb.mxu0 %v764_v19 }
  0x8d   : > { %1522 = vmatmul.msk.bf16.vlgmr.msra.gmra.mxu3 %vm201_vm0, %v1838_v18 }
  0x8e   : > { %544 = vmatpush.bf16.msrb.mxu3 %v529_v17 }
  0x90   : > { %v222_v33 = vpop.f32.mrf.mxu1 }
  0x91   : > { %v717_v22 = vpop.permute.xlu0 %716  ;;  %v623_v23 = vpop.permute.xlu1 %622 }
  0x92   : > { %732 = vmatpush.bf16.msra.mxu3 %v717_v22  ;;  %638 = vmatpush.bf16.msrb.mxu1 %v623_v23  ;;  %v217_v55 = vpop.f32.mrf.mxu0  ;;  %v1234_v62 = vpop.permute.xlu2 %1233  ;;  %v1871_v23 = vld [vmem:[%s2192_s1 + $0x128] sm:$0xff] }
  0x95   : > { %1509 = vmatmul.msk.bf16.gmra.mxu2 %vm201_vm0, %v1837_v20  ;;  %1537 = vmatmul.msk.bf16.gmra.mxu0 %vm201_vm0, %v1841_v21 }
  0x96   : > { %1614 = vmatmul.msk.bf16.vlgmr.msrb.gmra.mxu1 %vm201_vm0, %v1852_v24  ;;  %v1875_v24 = vld [vmem:[%s2192_s1 + $0x148] sm:$0xff] }
  0x97   : > { %826 = vmatpush.bf16.msra.mxu1 %v811_v32 }
  0x98   : > { %v2035_v38 = vpop.f32.mrf.mxu1 }
  0x99   : > { %v858_v29 = vpop.permute.xlu0 %857  ;;  %v905_v31 = vpop.permute.xlu1 %904 }
  0x9a   : > { %v1328_v3 = vpop.permute.xlu2 %1327  ;;  %v219_v5 = vpop.f32.mrf.mxu0 }
  0x9d   : > { %1523 = vmatmul.msk.bf16.gmra.mxu3 %vm201_vm0, %v1839_v25 }
  0xa0   : > { %v258_v40 = vpop.f32.mrf.mxu1 }
  0xa1   : > { %v952_v34 = vpop.permute.xlu0 %951  ;;  %v1046_v44 = vpop.permute.xlu1 %1045  ;;  %v259_v56 = vadd.f32 %v258_v40, %v217_v55  ;;  %v1360_v55 = vld [vmem:[%s2193_s2 + $0x8] sm:$0xff] }
  0xa5   : > { %1572 = vmatmul.msk.bf16.vlgmr.msrb.gmra.mxu2 %vm201_vm0, %v1846_v26  ;;  %1600 = vmatmul.msk.bf16.vlgmr.msra.gmra.mxu0 %vm201_vm0, %v1850_v27 }
  0xa6   : > { %873 = vmatpush.bf16.msrb.mxu2 %v858_v29  ;;  %1615 = vmatmul.msk.bf16.gmra.mxu1 %vm201_vm0, %v1853_v28 }
  0xa7   : > { %967 = vmatpush.bf16.msra.mxu0 %v952_v34 }
  0xa8   : > { %v260_v45 = vpop.f32.mrf.mxu1 }
  0xa9   : > { %v999_v48 = vpop.permute.xlu0 %998  ;;  %v1140_v49 = vpop.permute.xlu1 %1139  ;;  %v261_v18 = vadd.f32 %v260_v45, %v219_v5  ;;  %v1882_v45 = vld [vmem:[%s2192_s1 + $0x180] sm:$0xff] }
  0xaa   : > { %1014 = vmatpush.bf16.msrb.mxu1 %v999_v48 }
  0xad   : > { %1586 = vmatmul.msk.bf16.vlgmr.msrb.gmra.mxu3 %vm201_vm0, %v1848_v30 }
  0xae   : > { %920 = vmatpush.bf16.msrb.mxu3 %v905_v31 }
  0xb0   : > { %v263_v50 = vpop.f32.mrf.mxu1 }
  0xb1   : > { %v2058_v51 = vadd.f32 %v263_v50, %v222_v33  ;;  %v1281_v63 = vpop.permute.xlu0 %1280  ;;  %v1187_v0 = vpop.permute.xlu1 %1186  ;;  %v1873_v33 = vld [vmem:[%s2192_s1 + $0x138] sm:$0xff] }
  0xb5   : > { %1573 = vmatmul.msk.bf16.gmra.mxu2 %vm201_vm0, %v1847_v35  ;;  %1601 = vmatmul.msk.bf16.gmra.mxu0 %vm201_vm0, %v1851_v36 }
  0xb6   : > { %1670 = vmatmul.msk.bf16.vlgmr.msra.gmra.mxu1 %vm201_vm0, %v1860_v37 }
  0xb7   : > { %1202 = vmatpush.bf16.msra.mxu1 %v1187_v0  ;;  %v1879_v0 = vld [vmem:[%s2192_s1 + $0x168] sm:$0xff] }
  0xb8   : > { %v265_v7 = vpop.f32.mrf.mxu1 }
  0xb9   : > { %v266_v37 = vadd.f32 %v265_v7, %v2035_v38 }
  0xbd   : > { %1587 = vmatmul.msk.bf16.gmra.mxu3 %vm201_vm0, %v1849_v39 }
  0xc0   : > { %v447_v11 = vpop.f32.mrf.mxu1 }
  0xc5   : > { %1628 = vmatmul.msk.bf16.vlgmr.msra.gmra.mxu2 %vm201_vm0, %v1854_v41  ;;  %1656 = vmatmul.msk.bf16.vlgmr.msrb.gmra.mxu0 %vm201_vm0, %v1858_v42 }
  0xc6   : > { %1061 = vmatpush.bf16.msra.mxu2 %v1046_v44  ;;  %1671 = vmatmul.msk.bf16.gmra.mxu1 %vm201_vm0, %v1861_v43  ;;  %v1878_v43 = vld [vmem:[%s2192_s1 + $0x160] sm:$0xff] }
  0xc7   : > { %1155 = vmatpush.bf16.msrb.mxu0 %v1140_v49 }
  0xc8   : > { %v449_v17 = vpop.f32.mrf.mxu1 }
  0xcd   : > { %1642 = vmatmul.msk.bf16.vlgmr.msra.gmra.mxu3 %vm201_vm0, %v1856_v46  ;;  %v1921_v46 = vmov 0  }
  0xce   : > { %1108 = vmatpush.bf16.msra.mxu3 %v1093_v47  ;;  %1902 = vset.pattern.permute.xlu0 %v1921_v46  ;;  %v1359_v47 = vld [vmem:[%s2193_s2] sm:$0xff] }
  0xcf   : > { %1903 = vset.pattern.permute.xlu1 %v1921_v46  ;;  %1365 = vperm.xlu0 %1902, %v1359_v47  }
  0xd0   : > { %v452_v28 = vpop.f32.mrf.mxu1  ;;  %1904 = vset.pattern.permute.xlu2 %v1921_v46  ;;  %1370 = vperm.xlu1 %1903, %v1360_v55  }
  0xd5   : > { %1629 = vmatmul.msk.bf16.gmra.mxu2 %vm201_vm0, %v1855_v52  ;;  %1657 = vmatmul.msk.bf16.gmra.mxu0 %vm201_vm0, %v1859_v53 }
  0xd6   : > { %1726 = vmatmul.msk.bf16.vlgmr.msrb.gmra.mxu1 %vm201_vm0, %v1868_v54  ;;  %v1880_v54 = vld [vmem:[%s2192_s1 + $0x170] sm:$0xff] }
  0xd8   : > { %v454_v44 = vpop.f32.mrf.mxu1 }
  0xdd   : > { %1643 = vmatmul.msk.bf16.gmra.mxu3 %vm201_vm0, %v1857_v57 }
  0xe5   : > { %1684 = vmatmul.msk.bf16.vlgmr.msrb.gmra.mxu2 %vm201_vm0, %v1862_v58  ;;  %1712 = vmatmul.msk.bf16.vlgmr.msra.gmra.mxu0 %vm201_vm0, %v1866_v59 }
  0xe6   : > { %1727 = vmatmul.msk.bf16.gmra.mxu1 %vm201_vm0, %v1869_v60  ;;  %1249 = vmatpush.bf16.msrb.mxu2 %v1234_v62 }
  0xe7   : > { %1343 = vmatpush.bf16.msra.mxu0 %v1328_v3 }
  0xed   : > { %1698 = vmatmul.msk.bf16.vlgmr.msrb.gmra.mxu3 %vm201_vm0, %v1864_v61 }
  0xee   : > { %1296 = vmatpush.bf16.msrb.mxu3 %v1281_v63 }
  0xf5   : > { %1685 = vmatmul.msk.bf16.gmra.mxu2 %vm201_vm0, %v1863_v1  ;;  %1713 = vmatmul.msk.bf16.gmra.mxu0 %vm201_vm0, %v1867_v2  ;;  %v1883_v1 = vld [vmem:[%s2192_s1 + $0x188] sm:$0xff]  ;;  %v1362_v2 = vld [vmem:[%s2193_s2 + $0x18] sm:$0xff] }
  0xf6   : > { %1782 = vmatmul.msk.bf16.vlgmr.msra.gmra.mxu1 %vm201_vm0, %v1876_v4  ;;  %1380 = vperm.xlu1 %1903, %v1362_v2  }
  0xfd   : > { %1699 = vmatmul.msk.bf16.gmra.mxu3 %vm201_vm0, %v1865_v6 }
 0x102   : > { %v395_v10 = vpop.f32.mrf.mxu0 }
 0x105   : > { %1740 = vmatmul.msk.bf16.vlgmr.msra.gmra.mxu2 %vm201_vm0, %v1870_v8  ;;  %1768 = vmatmul.msk.bf16.vlgmr.msrb.gmra.mxu0 %vm201_vm0, %v1874_v9 }
 0x106   : > { %1783 = vmatmul.msk.bf16.gmra.mxu1 %vm201_vm0, %v1877_v12 }
 0x108   : > { %v301_v13 = vpop.f32.mrf.mxu2 }
 0x109   : > { %v311_v14 = vadd.f32 %v301_v13, %v259_v56 }
 0x10a   : > { %v397_v16 = vpop.f32.mrf.mxu0 }
 0x10d   : > { %1754 = vmatmul.msk.bf16.vlgmr.msra.gmra.mxu3 %vm201_vm0, %v1872_v15 }
 0x110   : > { %v303_v19 = vpop.f32.mrf.mxu2  ;;  %v348_v20 = vpop.f32.mrf.mxu3 }
 0x111   : > { %v312_v21 = vadd.f32 %v303_v19, %v261_v18  ;;  %v358_v22 = vadd.f32 %v348_v20, %v311_v14 }
 0x112   : > { %v400_v25 = vpop.f32.mrf.mxu0 }
 0x113   : > { %v405_v26 = vadd.f32 %v395_v10, %v358_v22  ;;  %v640_v58 = vpop.f32.mrf.mxu1 }
 0x115   : > { %v457_v27 = vadd.f32 %v447_v11, %v405_v26  ;;  %1741 = vmatmul.msk.bf16.gmra.mxu2 %vm201_vm0, %v1871_v23  ;;  %1769 = vmatmul.msk.bf16.gmra.mxu0 %vm201_vm0, %v1875_v24  ;;  %v1881_v11 = vld [vmem:[%s2192_s1 + $0x178] sm:$0xff] }
 0x118   : > { %v306_v29 = vpop.f32.mrf.mxu2  ;;  %v350_v30 = vpop.f32.mrf.mxu3 }
 0x119   : > { %v313_v31 = vadd.f32 %v306_v29, %v2058_v51  ;;  %v359_v32 = vadd.f32 %v350_v30, %v312_v21 }
 0x11a   : > { %v402_v34 = vpop.f32.mrf.mxu0 }
 0x11b   : > { %v406_v35 = vadd.f32 %v397_v16, %v359_v32  ;;  %v642_v6 = vpop.f32.mrf.mxu1 }
 0x11d   : > { %v458_v36 = vadd.f32 %v449_v17, %v406_v35  ;;  %1755 = vmatmul.msk.bf16.gmra.mxu3 %vm201_vm0, %v1873_v33 }
 0x120   : > { %v308_v39 = vpop.f32.mrf.mxu2  ;;  %v353_v40 = vpop.f32.mrf.mxu3 }
 0x121   : > { %v314_v41 = vadd.f32 %v308_v39, %v266_v37  ;;  %v360_v42 = vadd.f32 %v353_v40, %v313_v31 }
 0x122   : > { %v593_v38 = vpop.f32.mrf.mxu0 }
 0x123   : > { %v407_v48 = vadd.f32 %v400_v25, %v360_v42  ;;  %v645_v15 = vpop.f32.mrf.mxu1 }
 0x125   : > { %v459_v49 = vadd.f32 %v452_v28, %v407_v48  ;;  %1796 = vmatmul.msk.bf16.vlgmr.msrb.gmra.mxu2 %vm201_vm0, %v1878_v43  ;;  %1824 = vmatmul.msk.bf16.vlgmr.msra.gmra.mxu0 %vm201_vm0, %v1882_v45  ;;  %v1361_v28 = vld [vmem:[%s2193_s2 + $0x10] sm:$0xff] }
 0x126   : > { %1375 = vperm.xlu2 %1904, %v1361_v28  }
 0x128   : > { %v355_v50 = vpop.f32.mrf.mxu3  ;;  %v499_v51 = vpop.f32.mrf.mxu2 }
 0x129   : > { %v361_v52 = vadd.f32 %v355_v50, %v314_v41  ;;  %v509_v53 = vadd.f32 %v499_v51, %v457_v27 }
 0x12a   : > { %v595_v56 = vpop.f32.mrf.mxu0 }
 0x12b   : > { %v408_v57 = vadd.f32 %v402_v34, %v361_v52  ;;  %v647_v27 = vpop.f32.mrf.mxu1 }
 0x12d   : > { %v460_v59 = vadd.f32 %v454_v44, %v408_v57  ;;  %1810 = vmatmul.msk.bf16.vlgmr.msrb.gmra.mxu3 %vm201_vm0, %v1880_v54 }
 0x130   : > { %v501_v60 = vpop.f32.mrf.mxu2  ;;  %v546_v61 = vpop.f32.mrf.mxu3 }
 0x131   : > { %v510_v62 = vadd.f32 %v501_v60, %v458_v36  ;;  %v556_v63 = vadd.f32 %v546_v61, %v509_v53 }
 0x132   : > { %v598_v3 = vpop.f32.mrf.mxu0 }
 0x133   : > { %v603_v4 = vadd.f32 %v593_v38, %v556_v63  ;;  %v828_v39 = vpop.f32.mrf.mxu1 }
 0x135   : > { %v650_v5 = vadd.f32 %v640_v58, %v603_v4  ;;  %1797 = vmatmul.msk.bf16.gmra.mxu2 %vm201_vm0, %v1879_v0  ;;  %1825 = vmatmul.msk.bf16.gmra.mxu0 %vm201_vm0, %v1883_v1 }
 0x138   : > { %v504_v7 = vpop.f32.mrf.mxu2  ;;  %v548_v8 = vpop.f32.mrf.mxu3 }
 0x139   : > { %v511_v9 = vadd.f32 %v504_v7, %v459_v49  ;;  %v557_v10 = vadd.f32 %v548_v8, %v510_v62 }
 0x13a   : > { %v600_v12 = vpop.f32.mrf.mxu0 }
 0x13b   : > { %v604_v13 = vadd.f32 %v595_v56, %v557_v10  ;;  %v830_v46 = vpop.f32.mrf.mxu1 }
 0x13d   : > { %v651_v14 = vadd.f32 %v642_v6, %v604_v13  ;;  %1811 = vmatmul.msk.bf16.gmra.mxu3 %vm201_vm0, %v1881_v11 }
 0x140   : > { %v506_v16 = vpop.f32.mrf.mxu2  ;;  %v551_v17 = vpop.f32.mrf.mxu3 }
 0x141   : > { %v512_v18 = vadd.f32 %v506_v16, %v460_v59  ;;  %v558_v19 = vadd.f32 %v551_v17, %v511_v9 }
 0x142   : > { %v781_v20 = vpop.f32.mrf.mxu0 }
 0x143   : > { %v605_v21 = vadd.f32 %v598_v3, %v558_v19  ;;  %v833_v52 = vpop.f32.mrf.mxu1 }
 0x145   : > { %v652_v22 = vadd.f32 %v645_v15, %v605_v21 }
 0x148   : > { %v553_v23 = vpop.f32.mrf.mxu3  ;;  %v687_v24 = vpop.f32.mrf.mxu2 }
 0x149   : > { %v559_v25 = vadd.f32 %v553_v23, %v512_v18  ;;  %v697_v26 = vadd.f32 %v687_v24, %v650_v5 }
 0x14a   : > { %v783_v29 = vpop.f32.mrf.mxu0 }
 0x14b   : > { %v606_v30 = vadd.f32 %v600_v12, %v559_v25  ;;  %v835_v60 = vpop.f32.mrf.mxu1 }
 0x14d   : > { %v653_v31 = vadd.f32 %v647_v27, %v606_v30 }
 0x150   : > { %v689_v32 = vpop.f32.mrf.mxu2  ;;  %v734_v33 = vpop.f32.mrf.mxu3 }
 0x151   : > { %v698_v34 = vadd.f32 %v689_v32, %v651_v14  ;;  %v744_v35 = vadd.f32 %v734_v33, %v697_v26 }
 0x152   : > { %v786_v36 = vpop.f32.mrf.mxu0 }
 0x153   : > { %v791_v37 = vadd.f32 %v781_v20, %v744_v35  ;;  %v1016_v1 = vpop.f32.mrf.mxu1 }
 0x155   : > { %v838_v12 = vadd.f32 %v828_v39, %v791_v37 }
 0x158   : > { %v692_v40 = vpop.f32.mrf.mxu2  ;;  %v736_v41 = vpop.f32.mrf.mxu3 }
 0x159   : > { %v699_v42 = vadd.f32 %v692_v40, %v652_v22  ;;  %v745_v43 = vadd.f32 %v736_v41, %v698_v34 }
 0x15a   : > { %v788_v44 = vpop.f32.mrf.mxu0 }
 0x15b   : > { %v792_v45 = vadd.f32 %v783_v29, %v745_v43  ;;  %v1018_v5 = vpop.f32.mrf.mxu1 }
 0x15d   : > { %v839_v19 = vadd.f32 %v830_v46, %v792_v45 }
 0x160   : > { %v694_v47 = vpop.f32.mrf.mxu2  ;;  %v739_v38 = vpop.f32.mrf.mxu3 }
 0x161   : > { %v700_v48 = vadd.f32 %v694_v47, %v653_v31  ;;  %v746_v49 = vadd.f32 %v739_v38, %v699_v42 }
 0x162   : > { %v969_v50 = vpop.f32.mrf.mxu0 }
 0x163   : > { %v793_v51 = vadd.f32 %v786_v36, %v746_v49  ;;  %v1021_v9 = vpop.f32.mrf.mxu1 }
 0x165   : > { %v840_v29 = vadd.f32 %v833_v52, %v793_v51 }
 0x168   : > { %v741_v53 = vpop.f32.mrf.mxu3  ;;  %v875_v54 = vpop.f32.mrf.mxu2 }
 0x169   : > { %v747_v55 = vadd.f32 %v741_v53, %v700_v48  ;;  %v885_v13 = vadd.f32 %v875_v54, %v838_v12  ;;  %v1366_v53 = vpop.permute.xlu0 %1365 }
 0x16a   : > { %v971_v56 = vpop.f32.mrf.mxu0 }
 0x16b   : > { %v794_v57 = vadd.f32 %v788_v44, %v747_v55  ;;  %v1023_v18 = vpop.f32.mrf.mxu1 }
 0x16d   : > { %v841_v41 = vadd.f32 %v835_v60, %v794_v57 }
 0x170   : > { %v877_v58 = vpop.f32.mrf.mxu2  ;;  %v922_v59 = vpop.f32.mrf.mxu3 }
 0x171   : > { %v932_v17 = vadd.f32 %v922_v59, %v885_v13  ;;  %v886_v21 = vadd.f32 %v877_v58, %v839_v19 }
 0x172   : > { %v974_v61 = vpop.f32.mrf.mxu0 }
 0x173   : > { %v979_v20 = vadd.f32 %v969_v50, %v932_v17  ;;  %v1204_v28 = vpop.f32.mrf.mxu1 }
 0x175   : > { %v1026_v24 = vadd.f32 %v1016_v1, %v979_v20 }
 0x178   : > { %v880_v62 = vpop.f32.mrf.mxu2  ;;  %v924_v63 = vpop.f32.mrf.mxu3 }
 0x179   : > { %v933_v25 = vadd.f32 %v924_v63, %v886_v21  ;;  %v887_v32 = vadd.f32 %v880_v62, %v840_v29 }
 0x17a   : > { %v976_v0 = vpop.f32.mrf.mxu0 }
 0x17b   : > { %v980_v30 = vadd.f32 %v971_v56, %v933_v25  ;;  %v1206_v45 = vpop.f32.mrf.mxu1 }
 0x17d   : > { %v1027_v35 = vadd.f32 %v1018_v5, %v980_v30 }
 0x180   : > { %v882_v2 = vpop.f32.mrf.mxu2  ;;  %v927_v3 = vpop.f32.mrf.mxu3 }
 0x181   : > { %v934_v36 = vadd.f32 %v927_v3, %v887_v32  ;;  %v888_v46 = vadd.f32 %v882_v2, %v841_v41  ;;  %v1376_v20 = vpop.permute.xlu2 %1375 }
 0x182   : > { %v1157_v4 = vpop.f32.mrf.mxu0 }
 0x183   : > { %v981_v42 = vadd.f32 %v974_v61, %v934_v36  ;;  %v1209_v63 = vpop.f32.mrf.mxu1 }
 0x185   : > { %v1028_v49 = vadd.f32 %v1021_v9, %v981_v42 }
 0x188   : > { %v929_v6 = vpop.f32.mrf.mxu3  ;;  %v1063_v7 = vpop.f32.mrf.mxu2 }
 0x189   : > { %v1073_v27 = vadd.f32 %v1063_v7, %v1026_v24  ;;  %v935_v50 = vadd.f32 %v929_v6, %v888_v46  ;;  %v1371_v6 = vpop.permute.xlu1 %1370 }
 0x18a   : > { %v1159_v8 = vpop.f32.mrf.mxu0 }
 0x18b   : > { %v982_v56 = vadd.f32 %v976_v0, %v935_v50  ;;  %v1211_v19 = vpop.f32.mrf.mxu1 }
 0x18d   : > { %v1029_v2 = vadd.f32 %v1023_v18, %v982_v56 }
 0x190   : > { %v1065_v10 = vpop.f32.mrf.mxu2  ;;  %v1110_v11 = vpop.f32.mrf.mxu3 }
 0x191   : > { %v1120_v31 = vadd.f32 %v1110_v11, %v1073_v27  ;;  %v1074_v39 = vadd.f32 %v1065_v10, %v1027_v35  ;;  %v1381_v32 = vpop.permute.xlu1 %1380 }
 0x192   : > { %v1162_v14 = vpop.f32.mrf.mxu0 }
 0x193   : > { %v1167_v37 = vadd.f32 %v1157_v4, %v1120_v31 }
 0x195   : > { %v1214_v43 = vadd.f32 %v1204_v28, %v1167_v37 }
 0x198   : > { %v1068_v15 = vpop.f32.mrf.mxu2  ;;  %v1112_v16 = vpop.f32.mrf.mxu3 }
 0x199   : > { %v1121_v44 = vadd.f32 %v1112_v16, %v1074_v39  ;;  %v1075_v54 = vadd.f32 %v1068_v15, %v1028_v49 }
 0x19a   : > { %v1164_v26 = vpop.f32.mrf.mxu0 }
 0x19b   : > { %v1168_v51 = vadd.f32 %v1159_v8, %v1121_v44 }
 0x19d   : > { %v1215_v58 = vadd.f32 %v1206_v45, %v1168_v51 }
 0x1a0   : > { %v1070_v22 = vpop.f32.mrf.mxu2  ;;  %v1115_v23 = vpop.f32.mrf.mxu3 }
 0x1a1   : > { %v1122_v59 = vadd.f32 %v1115_v23, %v1075_v54  ;;  %v1076_v7 = vadd.f32 %v1070_v22, %v1029_v2 }
 0x1a2   : > { %v1345_v40 = vpop.f32.mrf.mxu0 }
 0x1a3   : > { %v1169_v3 = vadd.f32 %v1162_v14, %v1122_v59 }
 0x1a5   : > { %v1216_v9 = vadd.f32 %v1209_v63, %v1169_v3 }
 0x1a8   : > { %v1117_v33 = vpop.f32.mrf.mxu3  ;;  %v1251_v34 = vpop.f32.mrf.mxu2 }
 0x1a9   : > { %v1261_v47 = vadd.f32 %v1251_v34, %v1214_v43  ;;  %v1123_v10 = vadd.f32 %v1117_v33, %v1076_v7 }
 0x1aa   : > { %v1347_v60 = vpop.f32.mrf.mxu0 }
 0x1ab   : > { %v1170_v17 = vadd.f32 %v1164_v26, %v1123_v10 }
 0x1ad   : > { %v1217_v23 = vadd.f32 %v1211_v19, %v1170_v17 }
 0x1b0   : > { %v1253_v38 = vpop.f32.mrf.mxu2  ;;  %v1298_v48 = vpop.f32.mrf.mxu3 }
 0x1b1   : > { %v1308_v52 = vadd.f32 %v1298_v48, %v1261_v47  ;;  %v1262_v61 = vadd.f32 %v1253_v38, %v1215_v58 }
 0x1b2   : > { %v1350_v15 = vpop.f32.mrf.mxu0 }
 0x1b3   : > { %v1355_v55 = vadd.f32 %v1345_v40, %v1308_v52 }
 0x1b5   : > { %v1383_v57 = vadd.f32 %v1366_v53, %v1355_v55 }
 0x1b7   : > { %v1387_v62 = vmax.f32 %v1383_v57, 0.0 }
 0x1b8   : > { %v1300_v1 = vpop.f32.mrf.mxu3  ;;  %v1256_v5 = vpop.f32.mrf.mxu2 }
 0x1b9   : > { %v1391_v4 = vpack.c.bf16 %v1387_v62, %v1387_v62  ;;  %v1309_v0 = vadd.f32 %v1300_v1, %v1262_v61  ;;  %v1263_v12 = vadd.f32 %v1256_v5, %v1216_v9 }
 0x1ba   : > { %v1352_v31 = vpop.f32.mrf.mxu0 }
 0x1bb   : > { %1396 = vst.msk [vmem:[%s2178_s10] sm:$0xf] %vm1395_vm1, %v1391_v4  ;;  %v1356_v8 = vadd.f32 %v1347_v60, %v1309_v0 }
 0x1bd   : > { %v1384_v11 = vadd.f32 %v1371_v6, %v1356_v8 }
 0x1bf   : > { %v1388_v13 = vmax.f32 %v1384_v11, 0.0 }
 0x1c0   : > { %v1303_v16 = vpop.f32.mrf.mxu3  ;;  %v1258_v22 = vpop.f32.mrf.mxu2 }
 0x1c1   : > { %v1392_v18 = vpack.c.bf16 %v1388_v13, %v1388_v13  ;;  %v1310_v14 = vadd.f32 %v1303_v16, %v1263_v12  ;;  %v1264_v25 = vadd.f32 %v1258_v22, %v1217_v23 }
 0x1c3   : > { %1397 = vst.msk [vmem:[%s2178_s10 + $0x4] sm:$0xf] %vm1395_vm1, %v1392_v18  ;;  %v1357_v21 = vadd.f32 %v1350_v15, %v1310_v14 }
 0x1c5   : > { %v1385_v24 = vadd.f32 %v1376_v20, %v1357_v21 }
 0x1c7   : > { %v1389_v27 = vmax.f32 %v1385_v24, 0.0 }
 0x1c8   : > { %v1305_v28 = vpop.f32.mrf.mxu3 }
 0x1c9   : > { %v1393_v29 = vpack.c.bf16 %v1389_v27, %v1389_v27  ;;  %v1311_v30 = vadd.f32 %v1305_v28, %v1264_v25 }
 0x1cb   : > { %1398 = vst.msk [vmem:[%s2178_s10 + $0x8] sm:$0xf] %vm1395_vm1, %v1393_v29  ;;  %v1358_v26 = vadd.f32 %v1352_v31, %v1311_v30 }
 0x1cd   : > { %v1386_v33 = vadd.f32 %v1381_v32, %v1358_v26 }
 0x1cf   : > { %v1390_v34 = vmax.f32 %v1386_v33, 0.0 }
 0x1d1   : > { %v1394_v35 = vpack.c.bf16 %v1390_v34, %v1390_v34 }
 0x1d3   : > { %1399 = vst.msk [vmem:[%s2178_s10 + $0xc] sm:$0xf] %vm1395_vm1, %v1394_v35 }
 0x1d4 PF: > { %s13_s12 = sadd.s32 1, %s1911_s12  }
 0x1d5   : > { %p10_p4 = scmp.ge.s32.totalorder %s13_s12, 4  }
 0x1d7   :  { %12 = sbr.rel (!%p10_p4) target bundleno = 1 (0x1), region = 86 }

</bundles_post_ra>
